<compile_context>
chip_gen: v7x
topology: tpu7x:2x2x1
jax: 0.10.0
libtpu: 0.0.40
codegen_flags: <defaults>
</compile_context>

<pallas_src>
import functools
import math

import jax
import jax.numpy as jnp
from jax.experimental import pallas as pl
from jax.experimental.pallas import tpu as pltpu


def _round_up(x, m):
    return ((x + m - 1) // m) * m


# ---------------------------------------------------------------------------
# Pallas kernels
# ---------------------------------------------------------------------------

def _matmul_bias_act_kernel(a_ref, b_ref, bias_ref, o_ref, *, act):
    # Single-K-block matmul; bias + activation fused into the epilogue.
    acc = jnp.dot(a_ref[...], b_ref[...], preferred_element_type=jnp.float32)
    y = acc + bias_ref[...]                      # (tm, tn) + (1, tn), f32
    if act == "relu":
        y = jnp.maximum(y, 0.0)
    o_ref[...] = y.astype(o_ref.dtype)


def fused_matmul_bias_act(a, b_padded, bias_padded, act=None,
                          out_dtype=jnp.bfloat16):
    """(M, K) @ (Kp, Np) + bias (+ReLU) -> (Mp, Np).

    bf16 MXU inputs, f32 accumulate, epilogue fused (single HBM write).
    Weights / bias are pre-padded to (Kp, Np) at init; the activation matrix is
    padded here (rows to the row tile, K to Kp)."""
    M, K = a.shape
    Kp, Np = b_padded.shape
    tm = 512 if M >= 512 else _round_up(M, 128)
    tn = 128
    Mp = _round_up(M, tm)
    a_p = jnp.pad(a.astype(jnp.bfloat16), ((0, Mp - M), (0, Kp - K)))
    return pl.pallas_call(
        functools.partial(_matmul_bias_act_kernel, act=act),
        out_shape=jax.ShapeDtypeStruct((Mp, Np), out_dtype),
        grid=(Mp // tm, Np // tn),
        in_specs=[pl.BlockSpec((tm, Kp), lambda i, j: (i, 0)),
                  pl.BlockSpec((Kp, tn), lambda i, j: (0, j)),
                  pl.BlockSpec((1, tn), lambda i, j: (0, j))],
        out_specs=pl.BlockSpec((tm, tn), lambda i, j: (i, j)),
        compiler_params=pltpu.CompilerParams(
            dimension_semantics=("parallel", "parallel")),
    )(a_p, b_padded, bias_padded)


def _max4_kernel(a_ref, b_ref, c_ref, d_ref, o_ref):
    o_ref[...] = jnp.maximum(jnp.maximum(a_ref[...], b_ref[...]),
                             jnp.maximum(c_ref[...], d_ref[...]))


def maxpool2x2(x):
    """2x2 / stride-2 max pool, channels-last (N, H, W, C).

    Window extraction is XLA strided slicing (glue); the 4-way elementwise max
    runs in a row-tiled Pallas kernel (channels on the lane axis)."""
    N, H, W, C = x.shape
    Ho, Wo = H // 2, W // 2
    slabs = [x[:, 0::2, 0::2, :], x[:, 0::2, 1::2, :],
             x[:, 1::2, 0::2, :], x[:, 1::2, 1::2, :]]
    R = N * Ho * Wo
    tr = min(512, _round_up(R, 8))
    Rp = _round_up(R, tr)
    slabs = [jnp.pad(s.reshape(R, C), ((0, Rp - R), (0, 0))) for s in slabs]
    out = pl.pallas_call(
        _max4_kernel,
        out_shape=jax.ShapeDtypeStruct((Rp, C), x.dtype),
        grid=(Rp // tr,),
        in_specs=[pl.BlockSpec((tr, C), lambda i: (i, 0))] * 4,
        out_specs=pl.BlockSpec((tr, C), lambda i: (i, 0)),
        compiler_params=pltpu.CompilerParams(
            dimension_semantics=("parallel",)),
    )(*slabs)
    return out[:R].reshape(N, Ho, Wo, C)


def _gap_fc_kernel(x_ref, w_ref, b_ref, o_ref):
    # Fused AdaptiveAvgPool2d((1,1)) + Linear + bias.
    x = x_ref[...].astype(jnp.float32)                         # (N, HW, C)
    pooled = jnp.mean(x, axis=1)                               # (N, C)
    y = jnp.dot(pooled, w_ref[...], preferred_element_type=jnp.float32)
    o_ref[...] = y + b_ref[...]


def global_pool_fc(x, w_padded, b_padded):
    """x: (N, HW, C) -> mean over HW -> @ (C, Np) + bias -> (N, Np) f32."""
    N, HW, C = x.shape
    Cp, Np = w_padded.shape
    return pl.pallas_call(
        _gap_fc_kernel,
        out_shape=jax.ShapeDtypeStruct((N, Np), jnp.float32),
        grid=(1,),
        in_specs=[pl.BlockSpec((N, HW, C), lambda i: (0, 0, 0)),
                  pl.BlockSpec((Cp, Np), lambda i: (0, 0)),
                  pl.BlockSpec((1, Np), lambda i: (0, 0))],
        out_specs=pl.BlockSpec((N, Np), lambda i: (0, 0)),
    )(x, w_padded, b_padded)


# ---------------------------------------------------------------------------
# Conv glue (im2col patch extraction in XLA; the MAC runs in Pallas)
# ---------------------------------------------------------------------------

def extract_patches(x, K):
    """x: (N, H, W, C) -> (N*Ho*Wo, K*K*C), VALID conv, stride 1.
    (kh, kw, cin)-major ordering matches the (K*K*Cin, Cout) weight layout."""
    N, H, W, C = x.shape
    Ho, Wo = H - K + 1, W - K + 1
    cols = []
    for i in range(K):
        for j in range(K):
            cols.append(x[:, i:i + Ho, j:j + Wo, :])
    p = jnp.stack(cols, axis=3)                                # (N,Ho,Wo,KK,C)
    return p.reshape(N * Ho * Wo, K * K * C), Ho, Wo


def conv2d_relu(x, w_padded, b_padded, K, cout):
    N = x.shape[0]
    cols, Ho, Wo = extract_patches(x, K)
    y = fused_matmul_bias_act(cols, w_padded, b_padded, act="relu")
    return y[:N * Ho * Wo, :cout].reshape(N, Ho, Wo, cout)


# ---------------------------------------------------------------------------
# Parameters (synthetic, deterministic; PyTorch-default-style uniform init)
# ---------------------------------------------------------------------------

def init_params(key, num_classes):
    ks = jax.random.split(key, 8)

    def conv_params(k, cin, cout, ksize):
        fan_in = cin * ksize * ksize
        bound = 1.0 / math.sqrt(fan_in)
        kw, kb = jax.random.split(k)
        w = jax.random.uniform(kw, (ksize * ksize * cin, cout),
                               jnp.float32, -bound, bound)
        b = jax.random.uniform(kb, (cout,), jnp.float32, -bound, bound)
        # pre-pad weights/bias once to MXU-friendly (Kp, Np) / (1, Np)
        Kp = _round_up(ksize * ksize * cin, 128)
        Np = _round_up(cout, 128)
        w_p = jnp.pad(w, ((0, Kp - w.shape[0]),
                          (0, Np - cout))).astype(jnp.bfloat16)
        b_p = jnp.pad(b, (0, Np - cout)).reshape(1, Np)        # f32 epilogue
        return w_p, b_p

    p = {
        "conv1": conv_params(ks[0], 3, 32, 7),
        "conv2": conv_params(ks[1], 32, 64, 3),
        "conv3": conv_params(ks[2], 64, 128, 3),
    }

    bound = 1.0 / math.sqrt(128)
    fc_w = jax.random.uniform(ks[3], (128, num_classes), jnp.float32,
                              -bound, bound)
    fc_b = jax.random.uniform(ks[4], (num_classes,), jnp.float32,
                              -bound, bound)
    Np = _round_up(num_classes, 128)                           # lane-dense out
    p["fc_w"] = jnp.pad(fc_w, ((0, 0), (0, Np - num_classes)))
    p["fc_b"] = jnp.pad(fc_b, (0, Np - num_classes)).reshape(1, Np)
    p["num_classes"] = num_classes
    return p


# ---------------------------------------------------------------------------
# Forward pass (eval mode: Dropout = identity)
# ---------------------------------------------------------------------------

def forward(params, x_nchw):
    # PyTorch NCHW -> channels-last NHWC (C on the 128-lane axis), bf16 storage
    x = jnp.transpose(x_nchw, (0, 2, 3, 1)).astype(jnp.bfloat16)
    h = conv2d_relu(x, *params["conv1"], K=7, cout=32)    # conv1 + ReLU (fused)
    h = conv2d_relu(h, *params["conv2"], K=3, cout=64)    # conv2 + ReLU (fused)
    h = maxpool2x2(h)                                     # max_pool2d(2)
    # dropout1: identity in eval mode
    h = conv2d_relu(h, *params["conv3"], K=3, cout=128)   # conv3 + ReLU (fused)
    h = maxpool2x2(h)                                     # max_pool2d(2)
    # dropout2: identity in eval mode
    N, Ho, Wo, C = h.shape
    logits = global_pool_fc(h.reshape(N, Ho * Wo, C),     # avgpool + fc fused
                            params["fc_w"], params["fc_b"])
    return logits[:, :params["num_classes"]]


if __name__ == "__main__":
    num_classes = 10
    key = jax.random.PRNGKey(0)
    pkey, xkey = jax.random.split(key)
    params = init_params(pkey, num_classes)

    # NCHW input, small shape consistent with the module (7x7 then two 3x3
    # VALID convs and two 2x2 pools need >= ~14x14; use 32x32).
    x = jax.random.normal(xkey, (2, 3, 32, 32), jnp.float32)

    fwd = jax.jit(lambda inp: forward(params, inp))
    out = jax.block_until_ready(fwd(x))

    assert out.shape == (2, num_classes), out.shape
    assert bool(jnp.all(jnp.isfinite(out)))
    print("KERNEL_OK")
</pallas_src>

<mosaic_0001>
module attributes {stable_mosaic.version = 11 : i64} {
  func.func @_matmul_bias_act_kernel(%arg0: i32, %arg1: i32, %arg2: memref<512x256xbf16, #tpu.memory_space<vmem>>, %arg3: memref<256x128xbf16, #tpu.memory_space<vmem>>, %arg4: memref<1x128xf32, #tpu.memory_space<vmem>>, %arg5: memref<512x128xbf16, #tpu.memory_space<vmem>>) attributes {dimension_semantics = [#tpu.dimension_semantics<parallel>, #tpu.dimension_semantics<parallel>], iteration_bounds = array<i64: 3, 1>, scalar_prefetch = 0 : i64, scratch_operands = 0 : i64, tpu.core_type = #tpu.core_type<tc>, window_params = [{transform_indices = @transform_0, window_bounds = array<i64: 512, 256>}, {transform_indices = @transform_1, window_bounds = array<i64: 256, 128>}, {transform_indices = @transform_2, window_bounds = array<i64: 1, 128>}, {transform_indices = @transform_3, window_bounds = array<i64: 512, 128>}]} {
    %c0 = arith.constant 0 : index
    %c0_0 = arith.constant 0 : index
    %0 = vector.load %arg2[%c0, %c0_0] : memref<512x256xbf16, #tpu.memory_space<vmem>>, vector<512x256xbf16>
    %c0_1 = arith.constant 0 : index
    %c0_2 = arith.constant 0 : index
    %1 = vector.load %arg3[%c0_1, %c0_2] : memref<256x128xbf16, #tpu.memory_space<vmem>>, vector<256x128xbf16>
    %cst = arith.constant dense<0.000000e+00> : vector<512x128xf32>
    %2 = tpu.matmul %0, %1, %cst {dimension_numbers = #tpu.dot_dimension_numbers<[1], [0], [0], [1], [0, 0, 1, 1], [], []>} : vector<512x256xbf16>, vector<256x128xbf16>, vector<512x128xf32> -> vector<512x128xf32>
    %c0_3 = arith.constant 0 : index
    %c0_4 = arith.constant 0 : index
    %3 = vector.load %arg4[%c0_3, %c0_4] : memref<1x128xf32, #tpu.memory_space<vmem>>, vector<1x128xf32>
    %4 = vector.broadcast %3 : vector<1x128xf32> to vector<512x128xf32>
    %5 = arith.addf %2, %4 : vector<512x128xf32>
    %cst_5 = arith.constant 0.000000e+00 : f32
    %6 = vector.broadcast %cst_5 : f32 to vector<512x128xf32>
    %7 = arith.maximumf %5, %6 : vector<512x128xf32>
    %8 = arith.truncf %7 : vector<512x128xf32> to vector<512x128xbf16>
    %c0_6 = arith.constant 0 : index
    %c0_7 = arith.constant 0 : index
    %9 = vector.load %arg5[%c0_6, %c0_7] : memref<512x128xbf16, #tpu.memory_space<vmem>>, vector<512x128xbf16>
    tpu.vector_store %arg5[%c0_6, %c0_7], %8 {strides = array<i32>} : memref<512x128xbf16, #tpu.memory_space<vmem>>, vector<512x128xbf16>,
    return
  }
  func.func @transform_0(%arg0: i32, %arg1: i32) -> (i32, i32) {
    %c0_i32 = arith.constant 0 : i32
    %c0_i32_0 = arith.constant 0 : i32
    return %arg0, %c0_i32 : i32, i32
  }
  func.func @transform_1(%arg0: i32, %arg1: i32) -> (i32, i32) {
    %c0_i32 = arith.constant 0 : i32
    %c0_i32_0 = arith.constant 0 : i32
    return %c0_i32, %arg1 : i32, i32
  }
  func.func @transform_2(%arg0: i32, %arg1: i32) -> (i32, i32) {
    %c0_i32 = arith.constant 0 : i32
    %c0_i32_0 = arith.constant 0 : i32
    return %c0_i32, %arg1 : i32, i32
  }
  func.func @transform_3(%arg0: i32, %arg1: i32) -> (i32, i32) {
    %c0_i32 = arith.constant 0 : i32
    return %arg0, %arg1 : i32, i32
  }
}

module attributes {stable_mosaic.version = 11 : i64} {
  func.func @_matmul_bias_act_kernel(%arg0: i32, %arg1: i32, %arg2: memref<512x384xbf16, #tpu.memory_space<vmem>>, %arg3: memref<384x128xbf16, #tpu.memory_space<vmem>>, %arg4: memref<1x128xf32, #tpu.memory_space<vmem>>, %arg5: memref<512x128xbf16, #tpu.memory_space<vmem>>) attributes {dimension_semantics = [#tpu.dimension_semantics<parallel>, #tpu.dimension_semantics<parallel>], iteration_bounds = array<i64: 3, 1>, scalar_prefetch = 0 : i64, scratch_operands = 0 : i64, tpu.core_type = #tpu.core_type<tc>, window_params = [{transform_indices = @transform_0, window_bounds = array<i64: 512, 384>}, {transform_indices = @transform_1, window_bounds = array<i64: 384, 128>}, {transform_indices = @transform_2, window_bounds = array<i64: 1, 128>}, {transform_indices = @transform_3, window_bounds = array<i64: 512, 128>}]} {
    %c0 = arith.constant 0 : index
    %c0_0 = arith.constant 0 : index
    %0 = vector.load %arg2[%c0, %c0_0] : memref<512x384xbf16, #tpu.memory_space<vmem>>, vector<512x384xbf16>
    %c0_1 = arith.constant 0 : index
    %c0_2 = arith.constant 0 : index
    %1 = vector.load %arg3[%c0_1, %c0_2] : memref<384x128xbf16, #tpu.memory_space<vmem>>, vector<384x128xbf16>
    %cst = arith.constant dense<0.000000e+00> : vector<512x128xf32>
    %2 = tpu.matmul %0, %1, %cst {dimension_numbers = #tpu.dot_dimension_numbers<[1], [0], [0], [1], [0, 0, 1, 1], [], []>} : vector<512x384xbf16>, vector<384x128xbf16>, vector<512x128xf32> -> vector<512x128xf32>
    %c0_3 = arith.constant 0 : index
    %c0_4 = arith.constant 0 : index
    %3 = vector.load %arg4[%c0_3, %c0_4] : memref<1x128xf32, #tpu.memory_space<vmem>>, vector<1x128xf32>
    %4 = vector.broadcast %3 : vector<1x128xf32> to vector<512x128xf32>
    %5 = arith.addf %2, %4 : vector<512x128xf32>
    %cst_5 = arith.constant 0.000000e+00 : f32
    %6 = vector.broadcast %cst_5 : f32 to vector<512x128xf32>
    %7 = arith.maximumf %5, %6 : vector<512x128xf32>
    %8 = arith.truncf %7 : vector<512x128xf32> to vector<512x128xbf16>
    %c0_6 = arith.constant 0 : index
    %c0_7 = arith.constant 0 : index
    %9 = vector.load %arg5[%c0_6, %c0_7] : memref<512x128xbf16, #tpu.memory_space<vmem>>, vector<512x128xbf16>
    tpu.vector_store %arg5[%c0_6, %c0_7], %8 {strides = array<i32>} : memref<512x128xbf16, #tpu.memory_space<vmem>>, vector<512x128xbf16>,
    return
  }
  func.func @transform_0(%arg0: i32, %arg1: i32) -> (i32, i32) {
    %c0_i32 = arith.constant 0 : i32
    %c0_i32_0 = arith.constant 0 : i32
    return %arg0, %c0_i32 : i32, i32
  }
  func.func @transform_1(%arg0: i32, %arg1: i32) -> (i32, i32) {
    %c0_i32 = arith.constant 0 : i32
    %c0_i32_0 = arith.constant 0 : i32
    return %c0_i32, %arg1 : i32, i32
  }
  func.func @transform_2(%arg0: i32, %arg1: i32) -> (i32, i32) {
    %c0_i32 = arith.constant 0 : i32
    %c0_i32_0 = arith.constant 0 : i32
    return %c0_i32, %arg1 : i32, i32
  }
  func.func @transform_3(%arg0: i32, %arg1: i32) -> (i32, i32) {
    %c0_i32 = arith.constant 0 : i32
    return %arg0, %arg1 : i32, i32
  }
}

module attributes {stable_mosaic.version = 11 : i64} {
  func.func @_max4_kernel(%arg0: i32, %arg1: memref<288x64xbf16, #tpu.memory_space<vmem>>, %arg2: memref<288x64xbf16, #tpu.memory_space<vmem>>, %arg3: memref<288x64xbf16, #tpu.memory_space<vmem>>, %arg4: memref<288x64xbf16, #tpu.memory_space<vmem>>, %arg5: memref<288x64xbf16, #tpu.memory_space<vmem>>) attributes {dimension_semantics = [#tpu.dimension_semantics<parallel>], iteration_bounds = array<i64: 1>, scalar_prefetch = 0 : i64, scratch_operands = 0 : i64, tpu.core_type = #tpu.core_type<tc>, window_params = [{transform_indices = @transform_0, window_bounds = array<i64: 288, 64>}, {transform_indices = @transform_1, window_bounds = array<i64: 288, 64>}, {transform_indices = @transform_2, window_bounds = array<i64: 288, 64>}, {transform_indices = @transform_3, window_bounds = array<i64: 288, 64>}, {transform_indices = @transform_4, window_bounds = array<i64: 288, 64>}]} {
    %c0 = arith.constant 0 : index
    %c0_0 = arith.constant 0 : index
    %0 = vector.load %arg1[%c0, %c0_0] : memref<288x64xbf16, #tpu.memory_space<vmem>>, vector<288x64xbf16>
    %c0_1 = arith.constant 0 : index
    %c0_2 = arith.constant 0 : index
    %1 = vector.load %arg2[%c0_1, %c0_2] : memref<288x64xbf16, #tpu.memory_space<vmem>>, vector<288x64xbf16>
    %2 = arith.maximumf %0, %1 : vector<288x64xbf16>
    %c0_3 = arith.constant 0 : index
    %c0_4 = arith.constant 0 : index
    %3 = vector.load %arg3[%c0_3, %c0_4] : memref<288x64xbf16, #tpu.memory_space<vmem>>, vector<288x64xbf16>
    %c0_5 = arith.constant 0 : index
    %c0_6 = arith.constant 0 : index
    %4 = vector.load %arg4[%c0_5, %c0_6] : memref<288x64xbf16, #tpu.memory_space<vmem>>, vector<288x64xbf16>
    %5 = arith.maximumf %3, %4 : vector<288x64xbf16>
    %6 = arith.maximumf %2, %5 : vector<288x64xbf16>
    %c0_7 = arith.constant 0 : index
    %c0_8 = arith.constant 0 : index
    %7 = vector.load %arg5[%c0_7, %c0_8] : memref<288x64xbf16, #tpu.memory_space<vmem>>, vector<288x64xbf16>
    tpu.vector_store %arg5[%c0_7, %c0_8], %6 {strides = array<i32>} : memref<288x64xbf16, #tpu.memory_space<vmem>>, vector<288x64xbf16>,
    return
  }
  func.func @transform_0(%arg0: i32) -> (i32, i32) {
    %c0_i32 = arith.constant 0 : i32
    %c0_i32_0 = arith.constant 0 : i32
    return %arg0, %c0_i32 : i32, i32
  }
  func.func @transform_1(%arg0: i32) -> (i32, i32) {
    %c0_i32 = arith.constant 0 : i32
    %c0_i32_0 = arith.constant 0 : i32
    return %arg0, %c0_i32 : i32, i32
  }
  func.func @transform_2(%arg0: i32) -> (i32, i32) {
    %c0_i32 = arith.constant 0 : i32
    %c0_i32_0 = arith.constant 0 : i32
    return %arg0, %c0_i32 : i32, i32
  }
  func.func @transform_3(%arg0: i32) -> (i32, i32) {
    %c0_i32 = arith.constant 0 : i32
    %c0_i32_0 = arith.constant 0 : i32
    return %arg0, %c0_i32 : i32, i32
  }
  func.func @transform_4(%arg0: i32) -> (i32, i32) {
    %c0_i32 = arith.constant 0 : i32
    %c0_i32_0 = arith.constant 0 : i32
    return %arg0, %c0_i32 : i32, i32
  }
}

module attributes {stable_mosaic.version = 11 : i64} {
  func.func @_matmul_bias_act_kernel(%arg0: i32, %arg1: i32, %arg2: memref<256x640xbf16, #tpu.memory_space<vmem>>, %arg3: memref<640x128xbf16, #tpu.memory_space<vmem>>, %arg4: memref<1x128xf32, #tpu.memory_space<vmem>>, %arg5: memref<256x128xbf16, #tpu.memory_space<vmem>>) attributes {dimension_semantics = [#tpu.dimension_semantics<parallel>, #tpu.dimension_semantics<parallel>], iteration_bounds = array<i64: 1, 1>, scalar_prefetch = 0 : i64, scratch_operands = 0 : i64, tpu.core_type = #tpu.core_type<tc>, window_params = [{transform_indices = @transform_0, window_bounds = array<i64: 256, 640>}, {transform_indices = @transform_1, window_bounds = array<i64: 640, 128>}, {transform_indices = @transform_2, window_bounds = array<i64: 1, 128>}, {transform_indices = @transform_3, window_bounds = array<i64: 256, 128>}]} {
    %c0 = arith.constant 0 : index
    %c0_0 = arith.constant 0 : index
    %0 = vector.load %arg2[%c0, %c0_0] : memref<256x640xbf16, #tpu.memory_space<vmem>>, vector<256x640xbf16>
    %c0_1 = arith.constant 0 : index
    %c0_2 = arith.constant 0 : index
    %1 = vector.load %arg3[%c0_1, %c0_2] : memref<640x128xbf16, #tpu.memory_space<vmem>>, vector<640x128xbf16>
    %cst = arith.constant dense<0.000000e+00> : vector<256x128xf32>
    %2 = tpu.matmul %0, %1, %cst {dimension_numbers = #tpu.dot_dimension_numbers<[1], [0], [0], [1], [0, 0, 1, 1], [], []>} : vector<256x640xbf16>, vector<640x128xbf16>, vector<256x128xf32> -> vector<256x128xf32>
    %c0_3 = arith.constant 0 : index
    %c0_4 = arith.constant 0 : index
    %3 = vector.load %arg4[%c0_3, %c0_4] : memref<1x128xf32, #tpu.memory_space<vmem>>, vector<1x128xf32>
    %4 = vector.broadcast %3 : vector<1x128xf32> to vector<256x128xf32>
    %5 = arith.addf %2, %4 : vector<256x128xf32>
    %cst_5 = arith.constant 0.000000e+00 : f32
    %6 = vector.broadcast %cst_5 : f32 to vector<256x128xf32>
    %7 = arith.maximumf %5, %6 : vector<256x128xf32>
    %8 = arith.truncf %7 : vector<256x128xf32> to vector<256x128xbf16>
    %c0_6 = arith.constant 0 : index
    %c0_7 = arith.constant 0 : index
    %9 = vector.load %arg5[%c0_6, %c0_7] : memref<256x128xbf16, #tpu.memory_space<vmem>>, vector<256x128xbf16>
    tpu.vector_store %arg5[%c0_6, %c0_7], %8 {strides = array<i32>} : memref<256x128xbf16, #tpu.memory_space<vmem>>, vector<256x128xbf16>,
    return
  }
  func.func @transform_0(%arg0: i32, %arg1: i32) -> (i32, i32) {
    %c0_i32 = arith.constant 0 : i32
    %c0_i32_0 = arith.constant 0 : i32
    return %arg0, %c0_i32 : i32, i32
  }
  func.func @transform_1(%arg0: i32, %arg1: i32) -> (i32, i32) {
    %c0_i32 = arith.constant 0 : i32
    %c0_i32_0 = arith.constant 0 : i32
    return %c0_i32, %arg1 : i32, i32
  }
  func.func @transform_2(%arg0: i32, %arg1: i32) -> (i32, i32) {
    %c0_i32 = arith.constant 0 : i32
    %c0_i32_0 = arith.constant 0 : i32
    return %c0_i32, %arg1 : i32, i32
  }
  func.func @transform_3(%arg0: i32, %arg1: i32) -> (i32, i32) {
    %c0_i32 = arith.constant 0 : i32
    return %arg0, %arg1 : i32, i32
  }
}

module attributes {stable_mosaic.version = 11 : i64} {
  func.func @_max4_kernel(%arg0: i32, %arg1: memref<56x128xbf16, #tpu.memory_space<vmem>>, %arg2: memref<56x128xbf16, #tpu.memory_space<vmem>>, %arg3: memref<56x128xbf16, #tpu.memory_space<vmem>>, %arg4: memref<56x128xbf16, #tpu.memory_space<vmem>>, %arg5: memref<56x128xbf16, #tpu.memory_space<vmem>>) attributes {dimension_semantics = [#tpu.dimension_semantics<parallel>], iteration_bounds = array<i64: 1>, scalar_prefetch = 0 : i64, scratch_operands = 0 : i64, tpu.core_type = #tpu.core_type<tc>, window_params = [{transform_indices = @transform_0, window_bounds = array<i64: 56, 128>}, {transform_indices = @transform_1, window_bounds = array<i64: 56, 128>}, {transform_indices = @transform_2, window_bounds = array<i64: 56, 128>}, {transform_indices = @transform_3, window_bounds = array<i64: 56, 128>}, {transform_indices = @transform_4, window_bounds = array<i64: 56, 128>}]} {
    %c0 = arith.constant 0 : index
    %c0_0 = arith.constant 0 : index
    %0 = vector.load %arg1[%c0, %c0_0] : memref<56x128xbf16, #tpu.memory_space<vmem>>, vector<56x128xbf16>
    %c0_1 = arith.constant 0 : index
    %c0_2 = arith.constant 0 : index
    %1 = vector.load %arg2[%c0_1, %c0_2] : memref<56x128xbf16, #tpu.memory_space<vmem>>, vector<56x128xbf16>
    %2 = arith.maximumf %0, %1 : vector<56x128xbf16>
    %c0_3 = arith.constant 0 : index
    %c0_4 = arith.constant 0 : index
    %3 = vector.load %arg3[%c0_3, %c0_4] : memref<56x128xbf16, #tpu.memory_space<vmem>>, vector<56x128xbf16>
    %c0_5 = arith.constant 0 : index
    %c0_6 = arith.constant 0 : index
    %4 = vector.load %arg4[%c0_5, %c0_6] : memref<56x128xbf16, #tpu.memory_space<vmem>>, vector<56x128xbf16>
    %5 = arith.maximumf %3, %4 : vector<56x128xbf16>
    %6 = arith.maximumf %2, %5 : vector<56x128xbf16>
    %c0_7 = arith.constant 0 : index
    %c0_8 = arith.constant 0 : index
    %7 = vector.load %arg5[%c0_7, %c0_8] : memref<56x128xbf16, #tpu.memory_space<vmem>>, vector<56x128xbf16>
    tpu.vector_store %arg5[%c0_7, %c0_8], %6 {strides = array<i32>} : memref<56x128xbf16, #tpu.memory_space<vmem>>, vector<56x128xbf16>,
    return
  }
  func.func @transform_0(%arg0: i32) -> (i32, i32) {
    %c0_i32 = arith.constant 0 : i32
    %c0_i32_0 = arith.constant 0 : i32
    return %arg0, %c0_i32 : i32, i32
  }
  func.func @transform_1(%arg0: i32) -> (i32, i32) {
    %c0_i32 = arith.constant 0 : i32
    %c0_i32_0 = arith.constant 0 : i32
    return %arg0, %c0_i32 : i32, i32
  }
  func.func @transform_2(%arg0: i32) -> (i32, i32) {
    %c0_i32 = arith.constant 0 : i32
    %c0_i32_0 = arith.constant 0 : i32
    return %arg0, %c0_i32 : i32, i32
  }
  func.func @transform_3(%arg0: i32) -> (i32, i32) {
    %c0_i32 = arith.constant 0 : i32
    %c0_i32_0 = arith.constant 0 : i32
    return %arg0, %c0_i32 : i32, i32
  }
  func.func @transform_4(%arg0: i32) -> (i32, i32) {
    %c0_i32 = arith.constant 0 : i32
    %c0_i32_0 = arith.constant 0 : i32
    return %arg0, %c0_i32 : i32, i32
  }
}

module attributes {stable_mosaic.version = 11 : i64} {
  func.func @_gap_fc_kernel(%arg0: i32, %arg1: memref<2x25x128xbf16, #tpu.memory_space<vmem>>, %arg2: memref<128x128xf32, #tpu.memory_space<vmem>>, %arg3: memref<1x128xf32, #tpu.memory_space<vmem>>, %arg4: memref<2x128xf32, #tpu.memory_space<vmem>>) attributes {dimension_semantics = [#tpu.dimension_semantics<arbitrary>], iteration_bounds = array<i64: 1>, scalar_prefetch = 0 : i64, scratch_operands = 0 : i64, tpu.core_type = #tpu.core_type<tc>, window_params = [{pipeline_mode = #tpu.pipeline_mode<synchronous>, transform_indices = @transform_0, window_bounds = array<i64: 2, 25, 128>}, {pipeline_mode = #tpu.pipeline_mode<synchronous>, transform_indices = @transform_1, window_bounds = array<i64: 128, 128>}, {pipeline_mode = #tpu.pipeline_mode<synchronous>, transform_indices = @transform_2, window_bounds = array<i64: 1, 128>}, {pipeline_mode = #tpu.pipeline_mode<synchronous>, transform_indices = @transform_3, window_bounds = array<i64: 2, 128>}]} {
    %c0 = arith.constant 0 : index
    %c0_0 = arith.constant 0 : index
    %c0_1 = arith.constant 0 : index
    %0 = vector.load %arg1[%c0, %c0_0, %c0_1] : memref<2x25x128xbf16, #tpu.memory_space<vmem>>, vector<2x25x128xbf16>
    %1 = arith.extf %0 : vector<2x25x128xbf16> to vector<2x25x128xf32>
    %cst = arith.constant dense<0.000000e+00> : vector<2x128xf32>
    %2 = vector.multi_reduction <add>, %1, %cst [1] : vector<2x25x128xf32> to vector<2x128xf32>
    %cst_2 = arith.constant 2.500000e+01 : f32
    %3 = vector.broadcast %cst_2 : f32 to vector<2x128xf32>
    %4 = arith.divf %2, %3 : vector<2x128xf32>
    %c0_3 = arith.constant 0 : index
    %c0_4 = arith.constant 0 : index
    %5 = vector.load %arg2[%c0_3, %c0_4] : memref<128x128xf32, #tpu.memory_space<vmem>>, vector<128x128xf32>
    %cst_5 = arith.constant dense<0.000000e+00> : vector<2x128xf32>
    %6 = tpu.matmul %4, %5, %cst_5 {dimension_numbers = #tpu.dot_dimension_numbers<[1], [0], [0], [1], [0, 0, 1, 1], [], []>} : vector<2x128xf32>, vector<128x128xf32>, vector<2x128xf32> -> vector<2x128xf32>
    %c0_6 = arith.constant 0 : index
    %c0_7 = arith.constant 0 : index
    %7 = vector.load %arg3[%c0_6, %c0_7] : memref<1x128xf32, #tpu.memory_space<vmem>>, vector<1x128xf32>
    %8 = vector.broadcast %7 : vector<1x128xf32> to vector<2x128xf32>
    %9 = arith.addf %6, %8 : vector<2x128xf32>
    %c0_8 = arith.constant 0 : index
    %c0_9 = arith.constant 0 : index
    %10 = vector.load %arg4[%c0_8, %c0_9] : memref<2x128xf32, #tpu.memory_space<vmem>>, vector<2x128xf32>
    tpu.vector_store %arg4[%c0_8, %c0_9], %9 {strides = array<i32>} : memref<2x128xf32, #tpu.memory_space<vmem>>, vector<2x128xf32>,
    return
  }
  func.func @transform_0(%arg0: i32) -> (i32, i32, i32) {
    %c0_i32 = arith.constant 0 : i32
    %c0_i32_0 = arith.constant 0 : i32
    %c0_i32_1 = arith.constant 0 : i32
    %c0_i32_2 = arith.constant 0 : i32
    return %c0_i32, %c0_i32_0, %c0_i32_1 : i32, i32, i32
  }
  func.func @transform_1(%arg0: i32) -> (i32, i32) {
    %c0_i32 = arith.constant 0 : i32
    %c0_i32_0 = arith.constant 0 : i32
    %c0_i32_1 = arith.constant 0 : i32
    return %c0_i32, %c0_i32_0 : i32, i32
  }
  func.func @transform_2(%arg0: i32) -> (i32, i32) {
    %c0_i32 = arith.constant 0 : i32
    %c0_i32_0 = arith.constant 0 : i32
    %c0_i32_1 = arith.constant 0 : i32
    return %c0_i32, %c0_i32_0 : i32, i32
  }
  func.func @transform_3(%arg0: i32) -> (i32, i32) {
    %c0_i32 = arith.constant 0 : i32
    %c0_i32_0 = arith.constant 0 : i32
    %c0_i32_1 = arith.constant 0 : i32
    return %c0_i32, %c0_i32_0 : i32, i32
  }
}

</mosaic_0001>

<bundles_post_ra>
// kernel: _lambda_.6
= control target key start
LH: loop header
LB: loop body
LE: loop exit
PB: predicated region body
PF: predicated region fallthrough
CT: control target
= control target key end

     0   :  { %s2152_s12 = smov 0   ;;  %s2154_s13 = smov 0   ;;  %s2438_s0 = inlined_call_operand.vmem [shape: bf16[1536,256], index: 0, kind: input, shape index: {}]   ;;  %s2439_s1 = inlined_call_operand.vmem [shape: bf16[256,128], index: 1, kind: input, shape index: {}]   ;;  %s2440_s2 = inlined_call_operand.vmem [shape: f32[1,128], index: 2, kind: input, shape index: {}]   ;;  %s2441_s3 = inlined_call_operand.vmem [shape: bf16[1536,128], index: 3, kind: output, shape index: {}]  }
   0x1   :  { %s2156_s14 = smov 0  }
   0x2 LB: > { %s25_s15 = sadd.s32 1, %s2125_s13  ;;  %p1529_p0 = scmp.ge.s32.totalorder %s2129_s14, 1  ;;  %s2129_s14 = sphi %s2156_s14, %s13_s14   ;;  %s2125_s13 = sphi %s2154_s13, %s2443_s13   ;;  %s2121_s12 = sphi %s2152_s12, %s2442_s12  }
   0x3   : > { %p27_p1 = scmp.ge.s32.totalorder %s25_s15, 3  ;;  %p170_p2 = scmp.lt.s32.totalorder %s2129_s14, 4 }
   0x5   : > { %s2445_s15 = smov (%p27_p1, %s25_s15), 0  ;;  %p171_p3 = pnand %p1529_p0, %p170_p2 }
   0x6   : > { %v1995_v0 = vld [vmem:[%s2439_s1] sm:$0xff] (!%p171_p3)   ;;  %v2131_v1 = vmov (!%p171_p3), 0   ;;  %s1530_s18 = sshll.u32 (!%p171_p3), %s2121_s12, 6  ;;  %v1996_v2 = vld [vmem:[%s2439_s1 + $0x8] sm:$0xff] (!%p171_p3)   ;;  %v1997_v3 = vld [vmem:[%s2439_s1 + $0x10] sm:$0xff] (!%p171_p3)  }
   0x7   : > { %174 = sbr.rel (%p171_p3) target bundleno = 412 (0x19c), region = 32  ;;  %748 = vmatprep.subr.bf16.mxu0 (!%p171_p3), %v2131_v1  ;;  %1938 = vmatprep.subr.bf16.mxu1 (!%p171_p3), %v2131_v1  ;;  %p206_p4 = scmp.lt.s32.totalorder (!%p171_p3), %s1530_s18, 191  ;;  %v1998_v4 = vld [vmem:[%s2439_s1 + $0x18] sm:$0xff] (!%p171_p3)   ;;  %v1999_v5 = vld [vmem:[%s2439_s1 + $0x20] sm:$0xff] (!%p171_p3)   ;;  %v2000_v7 = vld [vmem:[%s2439_s1 + $0x28] sm:$0xff] (!%p171_p3)  }
   0x8   : > { %749 = vmatpush1.bf16.msra.mxu0 (!%p171_p3), %v1995_v0  ;;  %1954 = vmatpush1.bf16.msra.mxu1 (!%p171_p3), %v1995_v0  ;;  %v2001_v9 = vld [vmem:[%s2439_s1 + $0x30] sm:$0xff] (!%p171_p3)   ;;  %v2002_v10 = vld [vmem:[%s2439_s1 + $0x38] sm:$0xff] (!%p171_p3)   ;;  %v2003_v11 = vld [vmem:[%s2439_s1 + $0x40] sm:$0xff] (!%p171_p3)  }
   0x9   : > { %750 = vmatprep.subr.bf16.mxu0 (!%p171_p3), %v2131_v1  ;;  %1939 = vmatprep.subr.bf16.mxu1 (!%p171_p3), %v2131_v1  ;;  %v2004_v12 = vld [vmem:[%s2439_s1 + $0x48] sm:$0xff] (!%p171_p3)   ;;  %v2005_v13 = vld [vmem:[%s2439_s1 + $0x50] sm:$0xff] (!%p171_p3)   ;;  %v2006_v14 = vld [vmem:[%s2439_s1 + $0x58] sm:$0xff] (!%p171_p3)  }
   0xa   : > { %v2007_v15 = vld [vmem:[%s2439_s1 + $0x60] sm:$0xff] (!%p171_p3)   ;;  %v2008_v16 = vld [vmem:[%s2439_s1 + $0x68] sm:$0xff] (!%p171_p3)   ;;  %v2009_v17 = vld [vmem:[%s2439_s1 + $0x70] sm:$0xff] (!%p171_p3)  }
   0xb   : > { %v2010_v18 = vld [vmem:[%s2439_s1 + $0x78] sm:$0xff] (!%p171_p3)  }
   0xc   : > { %751 = vmatpush1.bf16.msra.mxu0 (!%p171_p3), %v1996_v2  ;;  %1955 = vmatpush1.bf16.msra.mxu1 (!%p171_p3), %v1996_v2 }
   0xd   : > { %752 = vmatprep.subr.bf16.mxu0 (!%p171_p3), %v2131_v1  ;;  %1940 = vmatprep.subr.bf16.mxu1 (!%p171_p3), %v2131_v1 }
   0xe   : > { %s2447_s18 = smov (!%p206_p4, %s1530_s18), 191 }
   0xf   : > { %s1682_s25 = sshll.u32 %s2447_s18, 3  ;;  %s1534_s6 = sshll.u32 %s2447_s18, 2 }
  0x10   : > { %753 = vmatpush1.bf16.msra.mxu0 %v1997_v3  ;;  %1956 = vmatpush1.bf16.msra.mxu1 %v1997_v3  ;;  %s2199_s30 = scalar_lea.vmem %s2438_s0, %s1682_s25  ;;  %s2335_s8 = scalar_lea.vmem %s2441_s3, %s1534_s6 }
  0x11   : > { %754 = vmatprep.subr.bf16.mxu0 %v2131_v1  ;;  %1941 = vmatprep.subr.bf16.mxu1 %v2131_v1  ;;  %v2013_v6 = vld [vmem:[%s2199_s30 + $0x4] ss:$8 sps:$4 sm:$0xff]   ;;  %v2011_v19 = vld [vmem:[%s2199_s30] ss:$8 sps:$4 sm:$0xff]   ;;  %v2017_v21 = vld [vmem:[%s2199_s30 + $0x14] ss:$8 sps:$4 sm:$0xff]  }
  0x12   : > { %v2016_v8 = vld [vmem:[%s2199_s30 + $0x104] ss:$8 sps:$4 sm:$0xff]   ;;  %780 = vmatprep.mubr.bf16.mxu0 %v2013_v6  ;;  %v2014_v20 = vld [vmem:[%s2199_s30 + $0x100] ss:$8 sps:$4 sm:$0xff]   ;;  %v2019_v22 = vld [vmem:[%s2199_s30 + $0x114] ss:$8 sps:$4 sm:$0xff]  }
  0x13   : > { %908 = vmatprep.mubr.bf16.mxu1 %v2016_v8  ;;  %v2021_v23 = vld [vmem:[%s2199_s30 + $0x10] ss:$8 sps:$4 sm:$0xff]   ;;  %v2023_v25 = vld [vmem:[%s2199_s30 + $0x24] ss:$8 sps:$4 sm:$0xff]   ;;  %v2027_v27 = vld [vmem:[%s2199_s30 + $0x20] ss:$8 sps:$4 sm:$0xff]  }
  0x14   : > { %755 = vmatpush1.bf16.msra.mxu0 %v1998_v4  ;;  %1957 = vmatpush1.bf16.msra.mxu1 %v1998_v4  ;;  %v2022_v24 = vld [vmem:[%s2199_s30 + $0x110] ss:$8 sps:$4 sm:$0xff]   ;;  %v2025_v26 = vld [vmem:[%s2199_s30 + $0x124] ss:$8 sps:$4 sm:$0xff]   ;;  %v2028_v28 = vld [vmem:[%s2199_s30 + $0x120] ss:$8 sps:$4 sm:$0xff]  }
  0x15   : > { %756 = vmatprep.subr.bf16.mxu0 %v2131_v1  ;;  %1942 = vmatprep.subr.bf16.mxu1 %v2131_v1  ;;  %v2029_v29 = vld [vmem:[%s2199_s30 + $0x34] ss:$8 sps:$4 sm:$0xff]   ;;  %v2033_v31 = vld [vmem:[%s2199_s30 + $0x30] ss:$8 sps:$4 sm:$0xff]   ;;  %v2035_v33 = vld [vmem:[%s2199_s30 + $0x44] ss:$8 sps:$4 sm:$0xff]  }
  0x16   : > { %v2031_v30 = vld [vmem:[%s2199_s30 + $0x134] ss:$8 sps:$4 sm:$0xff]   ;;  %v2034_v32 = vld [vmem:[%s2199_s30 + $0x130] ss:$8 sps:$4 sm:$0xff]   ;;  %v2037_v34 = vld [vmem:[%s2199_s30 + $0x144] ss:$8 sps:$4 sm:$0xff]  }
  0x17   : > { %v2039_v35 = vld [vmem:[%s2199_s30 + $0x40] ss:$8 sps:$4 sm:$0xff]   ;;  %v2041_v37 = vld [vmem:[%s2199_s30 + $0x54] ss:$8 sps:$4 sm:$0xff]   ;;  %v2045_v39 = vld [vmem:[%s2199_s30 + $0x50] ss:$8 sps:$4 sm:$0xff]  }
  0x18   : > { %757 = vmatpush1.bf16.msra.mxu0 %v1999_v5  ;;  %1958 = vmatpush1.bf16.msra.mxu1 %v1999_v5  ;;  %v2040_v36 = vld [vmem:[%s2199_s30 + $0x140] ss:$8 sps:$4 sm:$0xff]   ;;  %v2043_v38 = vld [vmem:[%s2199_s30 + $0x154] ss:$8 sps:$4 sm:$0xff]   ;;  %v2046_v40 = vld [vmem:[%s2199_s30 + $0x150] ss:$8 sps:$4 sm:$0xff]  }
  0x19   : > { %758 = vmatprep.subr.bf16.mxu0 %v2131_v1  ;;  %1943 = vmatprep.subr.bf16.mxu1 %v2131_v1  ;;  %v2047_v41 = vld [vmem:[%s2199_s30 + $0x64] ss:$8 sps:$4 sm:$0xff]   ;;  %v2051_v43 = vld [vmem:[%s2199_s30 + $0x60] ss:$8 sps:$4 sm:$0xff]   ;;  %v2053_v45 = vld [vmem:[%s2199_s30 + $0x74] ss:$8 sps:$4 sm:$0xff]  }
  0x1a   : > { %v2049_v42 = vld [vmem:[%s2199_s30 + $0x164] ss:$8 sps:$4 sm:$0xff]   ;;  %v2052_v44 = vld [vmem:[%s2199_s30 + $0x160] ss:$8 sps:$4 sm:$0xff]   ;;  %v2055_v46 = vld [vmem:[%s2199_s30 + $0x174] ss:$8 sps:$4 sm:$0xff]  }
  0x1b   : > { %v2057_v47 = vld [vmem:[%s2199_s30 + $0x70] ss:$8 sps:$4 sm:$0xff]   ;;  %v2059_v49 = vld [vmem:[%s2199_s30 + $0x84] ss:$8 sps:$4 sm:$0xff]   ;;  %v2063_v51 = vld [vmem:[%s2199_s30 + $0x80] ss:$8 sps:$4 sm:$0xff]  }
  0x1c   : > { %759 = vmatpush1.bf16.msra.mxu0 %v2000_v7  ;;  %1959 = vmatpush1.bf16.msra.mxu1 %v2000_v7  ;;  %v2058_v48 = vld [vmem:[%s2199_s30 + $0x170] ss:$8 sps:$4 sm:$0xff]   ;;  %v2061_v50 = vld [vmem:[%s2199_s30 + $0x184] ss:$8 sps:$4 sm:$0xff]   ;;  %v2064_v52 = vld [vmem:[%s2199_s30 + $0x180] ss:$8 sps:$4 sm:$0xff]  }
  0x1d   : > { %760 = vmatprep.subr.bf16.mxu0 %v2131_v1  ;;  %1944 = vmatprep.subr.bf16.mxu1 %v2131_v1  ;;  %v2065_v53 = vld [vmem:[%s2199_s30 + $0x94] ss:$8 sps:$4 sm:$0xff]   ;;  %v2069_v55 = vld [vmem:[%s2199_s30 + $0x90] ss:$8 sps:$4 sm:$0xff]   ;;  %v2071_v57 = vld [vmem:[%s2199_s30 + $0xa4] ss:$8 sps:$4 sm:$0xff]  }
  0x1e   : > { %v2067_v54 = vld [vmem:[%s2199_s30 + $0x194] ss:$8 sps:$4 sm:$0xff]   ;;  %v2070_v56 = vld [vmem:[%s2199_s30 + $0x190] ss:$8 sps:$4 sm:$0xff]   ;;  %v2073_v58 = vld [vmem:[%s2199_s30 + $0x1a4] ss:$8 sps:$4 sm:$0xff]  }
  0x1f   : > { %v2075_v59 = vld [vmem:[%s2199_s30 + $0xa0] ss:$8 sps:$4 sm:$0xff]   ;;  %v2077_v61 = vld [vmem:[%s2199_s30 + $0xb4] ss:$8 sps:$4 sm:$0xff]   ;;  %v2081_v63 = vld [vmem:[%s2199_s30 + $0xb0] ss:$8 sps:$4 sm:$0xff]  }
  0x20   : > { %761 = vmatpush1.bf16.msra.mxu0 %v2001_v9  ;;  %1960 = vmatpush1.bf16.msra.mxu1 %v2001_v9  ;;  %v2076_v60 = vld [vmem:[%s2199_s30 + $0x1a0] ss:$8 sps:$4 sm:$0xff]   ;;  %v2079_v62 = vld [vmem:[%s2199_s30 + $0x1b4] ss:$8 sps:$4 sm:$0xff]   ;;  %v2082_v0 = vld [vmem:[%s2199_s30 + $0x1b0] ss:$8 sps:$4 sm:$0xff]  }
  0x21   : > { %762 = vmatprep.subr.bf16.mxu0 %v2131_v1  ;;  %1945 = vmatprep.subr.bf16.mxu1 %v2131_v1  ;;  %v2085_v2 = vld [vmem:[%s2199_s30 + $0x1c4] ss:$8 sps:$4 sm:$0xff]   ;;  %v2087_v3 = vld [vmem:[%s2199_s30 + $0xc0] ss:$8 sps:$4 sm:$0xff]   ;;  %v2089_v5 = vld [vmem:[%s2199_s30 + $0xd4] ss:$8 sps:$4 sm:$0xff]  }
  0x22   : > { %v2088_v4 = vld [vmem:[%s2199_s30 + $0x1c0] ss:$8 sps:$4 sm:$0xff]   ;;  %v2091_v6 = vld [vmem:[%s2199_s30 + $0x1d4] ss:$8 sps:$4 sm:$0xff]   ;;  %v2093_v7 = vld [vmem:[%s2199_s30 + $0xd0] ss:$8 sps:$4 sm:$0xff]  }
  0x23   : > { %v2094_v8 = vld [vmem:[%s2199_s30 + $0x1d0] ss:$8 sps:$4 sm:$0xff]   ;;  %v2095_v9 = vld [vmem:[%s2199_s30 + $0xe4] ss:$8 sps:$4 sm:$0xff]  }
  0x24   : > { %763 = vmatpush1.bf16.msra.mxu0 %v2002_v10  ;;  %1961 = vmatpush1.bf16.msra.mxu1 %v2002_v10  ;;  %v2097_v10 = vld [vmem:[%s2199_s30 + $0x1e4] ss:$8 sps:$4 sm:$0xff]  }
  0x25   : > { %764 = vmatprep.subr.bf16.mxu0 %v2131_v1  ;;  %1946 = vmatprep.subr.bf16.mxu1 %v2131_v1 }
  0x28   : > { %765 = vmatpush1.bf16.msra.mxu0 %v2003_v11  ;;  %1962 = vmatpush1.bf16.msra.mxu1 %v2003_v11  ;;  %v2099_v11 = vld [vmem:[%s2199_s30 + $0xe0] ss:$8 sps:$4 sm:$0xff]  }
  0x29   : > { %766 = vmatprep.subr.bf16.mxu0 %v2131_v1  ;;  %1947 = vmatprep.subr.bf16.mxu1 %v2131_v1 }
  0x2c   : > { %767 = vmatpush1.bf16.msra.mxu0 %v2004_v12  ;;  %1963 = vmatpush1.bf16.msra.mxu1 %v2004_v12  ;;  %v2100_v12 = vld [vmem:[%s2199_s30 + $0x1e0] ss:$8 sps:$4 sm:$0xff]  }
  0x2d   : > { %768 = vmatprep.subr.bf16.mxu0 %v2131_v1  ;;  %1948 = vmatprep.subr.bf16.mxu1 %v2131_v1 }
  0x30   : > { %769 = vmatpush1.bf16.msra.mxu0 %v2005_v13  ;;  %1964 = vmatpush1.bf16.msra.mxu1 %v2005_v13  ;;  %v2101_v13 = vld [vmem:[%s2199_s30 + $0xf4] ss:$8 sps:$4 sm:$0xff]  }
  0x31   : > { %770 = vmatprep.subr.bf16.mxu0 %v2131_v1  ;;  %1949 = vmatprep.subr.bf16.mxu1 %v2131_v1 }
  0x34   : > { %771 = vmatpush1.bf16.msra.mxu0 %v2006_v14  ;;  %1965 = vmatpush1.bf16.msra.mxu1 %v2006_v14  ;;  %v2103_v14 = vld [vmem:[%s2199_s30 + $0x1f4] ss:$8 sps:$4 sm:$0xff]  }
  0x35   : > { %772 = vmatprep.subr.bf16.mxu0 %v2131_v1  ;;  %1950 = vmatprep.subr.bf16.mxu1 %v2131_v1 }
  0x38   : > { %773 = vmatpush1.bf16.msra.mxu0 %v2007_v15  ;;  %1966 = vmatpush1.bf16.msra.mxu1 %v2007_v15  ;;  %v2105_v15 = vld [vmem:[%s2199_s30 + $0xf0] ss:$8 sps:$4 sm:$0xff]  }
  0x39   : > { %774 = vmatprep.subr.bf16.mxu0 %v2131_v1  ;;  %1951 = vmatprep.subr.bf16.mxu1 %v2131_v1 }
  0x3c   : > { %775 = vmatpush1.bf16.msra.mxu0 %v2008_v16  ;;  %1967 = vmatpush1.bf16.msra.mxu1 %v2008_v16  ;;  %v2106_v16 = vld [vmem:[%s2199_s30 + $0x1f0] ss:$8 sps:$4 sm:$0xff]  }
  0x3d   : > { %776 = vmatprep.subr.bf16.mxu0 %v2131_v1  ;;  %1952 = vmatprep.subr.bf16.mxu1 %v2131_v1 }
  0x40   : > { %777 = vmatpush1.bf16.msra.mxu0 %v2009_v17  ;;  %1968 = vmatpush1.bf16.msra.mxu1 %v2009_v17  ;;  %v2325_v17 = vld [vmem:[%s2440_s2] ss:$0 sm:$0xff] }
  0x41   : > { %778 = vmatprep.subr.bf16.mxu0 %v2131_v1  ;;  %1953 = vmatprep.subr.bf16.mxu1 %v2131_v1  ;;  %v2083_v1 = vld [vmem:[%s2199_s30 + $0xc4] ss:$8 sps:$4 sm:$0xff]  }
  0x44   : > { %779 = vmatpush1.bf16.msra.mxu0 %v2010_v18  ;;  %1969 = vmatpush1.bf16.msra.mxu1 %v2010_v18 }
  0x47   : > { %781 = vmatmul.mubr.bf16.vlgmr.msra.gmra.mrb[0].mxu0 %v2011_v19  ;;  %909 = vmatmul.mubr.bf16.vlgmr.msra.gmra.mrb[0].mxu1 %v2014_v20 }
  0x48   : > { %788 = vmatprep.mubr.bf16.mxu0 %v2017_v21  ;;  %916 = vmatprep.mubr.bf16.mxu1 %v2019_v22 }
  0x4f   : > { %789 = vmatmul.mubr.bf16.gmra.mrb[4].mxu0 %v2021_v23  ;;  %917 = vmatmul.mubr.bf16.gmra.mrb[4].mxu1 %v2022_v24 }
  0x50   : > { %796 = vmatprep.mubr.bf16.mxu0 %v2023_v25  ;;  %924 = vmatprep.mubr.bf16.mxu1 %v2025_v26 }
  0x57   : > { %797 = vmatmul.mubr.bf16.gmra.mrb[8].mxu0 %v2027_v27  ;;  %925 = vmatmul.mubr.bf16.gmra.mrb[8].mxu1 %v2028_v28 }
  0x58   : > { %804 = vmatprep.mubr.bf16.mxu0 %v2029_v29  ;;  %932 = vmatprep.mubr.bf16.mxu1 %v2031_v30 }
  0x5f   : > { %805 = vmatmul.mubr.bf16.gmra.mrb[12].mxu0 %v2033_v31  ;;  %933 = vmatmul.mubr.bf16.gmra.mrb[12].mxu1 %v2034_v32 }
  0x60   : > { %812 = vmatprep.mubr.bf16.mxu0 %v2035_v33  ;;  %940 = vmatprep.mubr.bf16.mxu1 %v2037_v34 }
  0x67   : > { %813 = vmatmul.mubr.bf16.gmra.mrb[16].mxu0 %v2039_v35  ;;  %941 = vmatmul.mubr.bf16.gmra.mrb[16].mxu1 %v2040_v36 }
  0x68   : > { %820 = vmatprep.mubr.bf16.mxu0 %v2041_v37  ;;  %948 = vmatprep.mubr.bf16.mxu1 %v2043_v38 }
  0x6f   : > { %821 = vmatmul.mubr.bf16.gmra.mrb[20].mxu0 %v2045_v39  ;;  %949 = vmatmul.mubr.bf16.gmra.mrb[20].mxu1 %v2046_v40 }
  0x70   : > { %828 = vmatprep.mubr.bf16.mxu0 %v2047_v41  ;;  %956 = vmatprep.mubr.bf16.mxu1 %v2049_v42 }
  0x77   : > { %829 = vmatmul.mubr.bf16.gmra.mrb[24].mxu0 %v2051_v43  ;;  %957 = vmatmul.mubr.bf16.gmra.mrb[24].mxu1 %v2052_v44 }
  0x78   : > { %836 = vmatprep.mubr.bf16.mxu0 %v2053_v45  ;;  %964 = vmatprep.mubr.bf16.mxu1 %v2055_v46 }
  0x7f   : > { %837 = vmatmul.mubr.bf16.gmra.mrb[28].mxu0 %v2057_v47  ;;  %965 = vmatmul.mubr.bf16.gmra.mrb[28].mxu1 %v2058_v48 }
  0x80   : > { %844 = vmatprep.mubr.bf16.mxu0 %v2059_v49  ;;  %972 = vmatprep.mubr.bf16.mxu1 %v2061_v50 }
  0x87   : > { %845 = vmatmul.mubr.bf16.gmra.mrb[32].mxu0 %v2063_v51  ;;  %973 = vmatmul.mubr.bf16.gmra.mrb[32].mxu1 %v2064_v52 }
  0x88   : > { %852 = vmatprep.mubr.bf16.mxu0 %v2065_v53  ;;  %980 = vmatprep.mubr.bf16.mxu1 %v2067_v54 }
  0x8f   : > { %853 = vmatmul.mubr.bf16.gmra.mrb[36].mxu0 %v2069_v55  ;;  %981 = vmatmul.mubr.bf16.gmra.mrb[36].mxu1 %v2070_v56 }
  0x90   : > { %860 = vmatprep.mubr.bf16.mxu0 %v2071_v57  ;;  %988 = vmatprep.mubr.bf16.mxu1 %v2073_v58 }
  0x97   : > { %861 = vmatmul.mubr.bf16.gmra.mrb[40].mxu0 %v2075_v59  ;;  %989 = vmatmul.mubr.bf16.gmra.mrb[40].mxu1 %v2076_v60 }
  0x98   : > { %868 = vmatprep.mubr.bf16.mxu0 %v2077_v61  ;;  %996 = vmatprep.mubr.bf16.mxu1 %v2079_v62 }
  0x9f   : > { %869 = vmatmul.mubr.bf16.gmra.mrb[44].mxu0 %v2081_v63  ;;  %997 = vmatmul.mubr.bf16.gmra.mrb[44].mxu1 %v2082_v0 }
  0xa0   : > { %876 = vmatprep.mubr.bf16.mxu0 %v2083_v1  ;;  %1004 = vmatprep.mubr.bf16.mxu1 %v2085_v2 }
  0xa7   : > { %877 = vmatmul.mubr.bf16.gmra.mrb[48].mxu0 %v2087_v3  ;;  %1005 = vmatmul.mubr.bf16.gmra.mrb[48].mxu1 %v2088_v4 }
  0xa8   : > { %884 = vmatprep.mubr.bf16.mxu0 %v2089_v5  ;;  %1012 = vmatprep.mubr.bf16.mxu1 %v2091_v6 }
  0xaf   : > { %885 = vmatmul.mubr.bf16.gmra.mrb[52].mxu0 %v2093_v7  ;;  %1013 = vmatmul.mubr.bf16.gmra.mrb[52].mxu1 %v2094_v8 }
  0xb0   : > { %892 = vmatprep.mubr.bf16.mxu0 %v2095_v9  ;;  %1020 = vmatprep.mubr.bf16.mxu1 %v2097_v10 }
  0xb7   : > { %893 = vmatmul.mubr.bf16.gmra.mrb[56].mxu0 %v2099_v11  ;;  %1021 = vmatmul.mubr.bf16.gmra.mrb[56].mxu1 %v2100_v12 }
  0xb8   : > { %900 = vmatprep.mubr.bf16.mxu0 %v2101_v13  ;;  %1028 = vmatprep.mubr.bf16.mxu1 %v2103_v14 }
  0xbf   : > { %901 = vmatmul.mubr.bf16.gmra.mrb[60].mxu0 %v2105_v15  ;;  %1029 = vmatmul.mubr.bf16.gmra.mrb[60].mxu1 %v2106_v16 }
 0x11a   : > { %v782_v18 = vpop.f32.mrb[0].mxu0  ;;  %v910_v19 = vpop.f32.mrb[0].mxu1 }
 0x11b   : > { %v783_v20 = vadd.f32 %v2325_v17, %v782_v18  ;;  %v911_v21 = vadd.f32 %v2325_v17, %v910_v19  ;;  %v784_v22 = vpop.f32.mrb[1].mxu0  ;;  %v912_v23 = vpop.f32.mrb[1].mxu1 }
 0x11c   : > { %v785_v24 = vpop.f32.mrb[2].mxu0  ;;  %v913_v25 = vpop.f32.mrb[2].mxu1 }
 0x11d   : > { %v786_v26 = vadd.f32 %v2325_v17, %v785_v24  ;;  %v914_v27 = vadd.f32 %v2325_v17, %v913_v25  ;;  %v787_v28 = vpop.f32.mrb[3].mxu0  ;;  %v915_v29 = vpop.f32.mrb[3].mxu1  ;;  %v1037_v30 = vmax.f32 %v783_v20, 0.0  ;;  %v1069_v31 = vmax.f32 %v911_v21, 0.0 }
 0x11f   : > { %v1038_v32 = vmax.f32 %v786_v26, 0.0  ;;  %v1070_v33 = vmax.f32 %v914_v27, 0.0 }
 0x121   : > { %v1750_v34 = vpack.c.bf16 %v1038_v32, %v1037_v30  ;;  %v1830_v35 = vpack.c.bf16 %v1070_v33, %v1069_v31 }
 0x122   : > { %v790_v36 = vpop.f32.mrb[4].mxu0  ;;  %v918_v37 = vpop.f32.mrb[4].mxu1 }
 0x123   : > { %1751 = vst [vmem:[%s2335_s8] sm:$0xff] %v1750_v34   ;;  %1922 = vst [vmem:[%s2335_s8 + $0x80] sm:$0xff] %v1830_v35   ;;  %v791_v38 = vadd.f32 %v2325_v17, %v790_v36  ;;  %v919_v39 = vadd.f32 %v2325_v17, %v918_v37  ;;  %v792_v40 = vpop.f32.mrb[5].mxu0  ;;  %v920_v41 = vpop.f32.mrb[5].mxu1 }
 0x124   : > { %v793_v42 = vpop.f32.mrb[6].mxu0  ;;  %v921_v43 = vpop.f32.mrb[6].mxu1 }
 0x125   : > { %v794_v44 = vadd.f32 %v2325_v17, %v793_v42  ;;  %v922_v45 = vadd.f32 %v2325_v17, %v921_v43  ;;  %v795_v46 = vpop.f32.mrb[7].mxu0  ;;  %v923_v47 = vpop.f32.mrb[7].mxu1  ;;  %v1039_v48 = vmax.f32 %v791_v38, 0.0  ;;  %v1071_v49 = vmax.f32 %v919_v39, 0.0 }
 0x127   : > { %v1040_v50 = vmax.f32 %v794_v44, 0.0  ;;  %v1072_v51 = vmax.f32 %v922_v45, 0.0 }
 0x129   : > { %v1755_v52 = vpack.c.bf16 %v1040_v50, %v1039_v48  ;;  %v1835_v53 = vpack.c.bf16 %v1072_v51, %v1071_v49 }
 0x12a   : > { %v798_v54 = vpop.f32.mrb[8].mxu0  ;;  %v926_v55 = vpop.f32.mrb[8].mxu1 }
 0x12b   : > { %1907 = vst [vmem:[%s2335_s8 + $0x8] sm:$0xff] %v1755_v52   ;;  %1923 = vst [vmem:[%s2335_s8 + $0x88] sm:$0xff] %v1835_v53   ;;  %v799_v56 = vadd.f32 %v2325_v17, %v798_v54  ;;  %v927_v57 = vadd.f32 %v2325_v17, %v926_v55  ;;  %v800_v58 = vpop.f32.mrb[9].mxu0  ;;  %v928_v59 = vpop.f32.mrb[9].mxu1 }
 0x12c   : > { %v801_v60 = vpop.f32.mrb[10].mxu0  ;;  %v929_v61 = vpop.f32.mrb[10].mxu1 }
 0x12d   : > { %v802_v62 = vadd.f32 %v2325_v17, %v801_v60  ;;  %v930_v63 = vadd.f32 %v2325_v17, %v929_v61  ;;  %v803_v0 = vpop.f32.mrb[11].mxu0  ;;  %v931_v1 = vpop.f32.mrb[11].mxu1  ;;  %v1041_v2 = vmax.f32 %v799_v56, 0.0  ;;  %v1073_v3 = vmax.f32 %v927_v57, 0.0 }
 0x12f   : > { %v1042_v4 = vmax.f32 %v802_v62, 0.0  ;;  %v1074_v5 = vmax.f32 %v930_v63, 0.0 }
 0x131   : > { %v1760_v6 = vpack.c.bf16 %v1042_v4, %v1041_v2  ;;  %v1840_v7 = vpack.c.bf16 %v1074_v5, %v1073_v3 }
 0x132   : > { %v806_v8 = vpop.f32.mrb[12].mxu0  ;;  %v934_v9 = vpop.f32.mrb[12].mxu1 }
 0x133   : > { %1908 = vst [vmem:[%s2335_s8 + $0x10] sm:$0xff] %v1760_v6   ;;  %1924 = vst [vmem:[%s2335_s8 + $0x90] sm:$0xff] %v1840_v7   ;;  %v807_v10 = vadd.f32 %v2325_v17, %v806_v8  ;;  %v935_v11 = vadd.f32 %v2325_v17, %v934_v9  ;;  %v808_v12 = vpop.f32.mrb[13].mxu0  ;;  %v936_v13 = vpop.f32.mrb[13].mxu1 }
 0x134   : > { %v809_v14 = vpop.f32.mrb[14].mxu0  ;;  %v937_v15 = vpop.f32.mrb[14].mxu1 }
 0x135   : > { %v810_v16 = vadd.f32 %v2325_v17, %v809_v14  ;;  %v938_v18 = vadd.f32 %v2325_v17, %v937_v15  ;;  %v811_v19 = vpop.f32.mrb[15].mxu0  ;;  %v939_v20 = vpop.f32.mrb[15].mxu1  ;;  %v1043_v21 = vmax.f32 %v807_v10, 0.0  ;;  %v1075_v22 = vmax.f32 %v935_v11, 0.0 }
 0x137   : > { %v1044_v23 = vmax.f32 %v810_v16, 0.0  ;;  %v1076_v24 = vmax.f32 %v938_v18, 0.0 }
 0x139   : > { %v1765_v25 = vpack.c.bf16 %v1044_v23, %v1043_v21  ;;  %v1845_v26 = vpack.c.bf16 %v1076_v24, %v1075_v22 }
 0x13a   : > { %v814_v27 = vpop.f32.mrb[16].mxu0  ;;  %v942_v28 = vpop.f32.mrb[16].mxu1 }
 0x13b   : > { %1909 = vst [vmem:[%s2335_s8 + $0x18] sm:$0xff] %v1765_v25   ;;  %1925 = vst [vmem:[%s2335_s8 + $0x98] sm:$0xff] %v1845_v26   ;;  %v815_v29 = vadd.f32 %v2325_v17, %v814_v27  ;;  %v943_v30 = vadd.f32 %v2325_v17, %v942_v28  ;;  %v816_v31 = vpop.f32.mrb[17].mxu0  ;;  %v944_v32 = vpop.f32.mrb[17].mxu1 }
 0x13c   : > { %v817_v33 = vpop.f32.mrb[18].mxu0  ;;  %v945_v34 = vpop.f32.mrb[18].mxu1 }
 0x13d   : > { %v818_v35 = vadd.f32 %v2325_v17, %v817_v33  ;;  %v946_v36 = vadd.f32 %v2325_v17, %v945_v34  ;;  %v819_v37 = vpop.f32.mrb[19].mxu0  ;;  %v947_v38 = vpop.f32.mrb[19].mxu1  ;;  %v1045_v39 = vmax.f32 %v815_v29, 0.0  ;;  %v1077_v40 = vmax.f32 %v943_v30, 0.0 }
 0x13f   : > { %v1046_v41 = vmax.f32 %v818_v35, 0.0  ;;  %v1078_v42 = vmax.f32 %v946_v36, 0.0 }
 0x141   : > { %v1770_v43 = vpack.c.bf16 %v1046_v41, %v1045_v39  ;;  %v1850_v44 = vpack.c.bf16 %v1078_v42, %v1077_v40 }
 0x142   : > { %v822_v45 = vpop.f32.mrb[20].mxu0  ;;  %v950_v46 = vpop.f32.mrb[20].mxu1 }
 0x143   : > { %1910 = vst [vmem:[%s2335_s8 + $0x20] sm:$0xff] %v1770_v43   ;;  %1926 = vst [vmem:[%s2335_s8 + $0xa0] sm:$0xff] %v1850_v44   ;;  %v823_v47 = vadd.f32 %v2325_v17, %v822_v45  ;;  %v951_v48 = vadd.f32 %v2325_v17, %v950_v46  ;;  %v824_v49 = vpop.f32.mrb[21].mxu0  ;;  %v952_v50 = vpop.f32.mrb[21].mxu1 }
 0x144   : > { %v825_v51 = vpop.f32.mrb[22].mxu0  ;;  %v953_v52 = vpop.f32.mrb[22].mxu1 }
 0x145   : > { %v826_v53 = vadd.f32 %v2325_v17, %v825_v51  ;;  %v954_v54 = vadd.f32 %v2325_v17, %v953_v52  ;;  %v827_v55 = vpop.f32.mrb[23].mxu0  ;;  %v955_v56 = vpop.f32.mrb[23].mxu1  ;;  %v1047_v57 = vmax.f32 %v823_v47, 0.0  ;;  %v1079_v58 = vmax.f32 %v951_v48, 0.0 }
 0x147   : > { %v1048_v59 = vmax.f32 %v826_v53, 0.0  ;;  %v1080_v60 = vmax.f32 %v954_v54, 0.0 }
 0x149   : > { %v1775_v61 = vpack.c.bf16 %v1048_v59, %v1047_v57  ;;  %v1855_v62 = vpack.c.bf16 %v1080_v60, %v1079_v58 }
 0x14a   : > { %v830_v63 = vpop.f32.mrb[24].mxu0  ;;  %v958_v0 = vpop.f32.mrb[24].mxu1 }
 0x14b   : > { %1911 = vst [vmem:[%s2335_s8 + $0x28] sm:$0xff] %v1775_v61   ;;  %1927 = vst [vmem:[%s2335_s8 + $0xa8] sm:$0xff] %v1855_v62   ;;  %v831_v1 = vadd.f32 %v2325_v17, %v830_v63  ;;  %v959_v2 = vadd.f32 %v2325_v17, %v958_v0  ;;  %v832_v3 = vpop.f32.mrb[25].mxu0  ;;  %v960_v4 = vpop.f32.mrb[25].mxu1 }
 0x14c   : > { %v833_v5 = vpop.f32.mrb[26].mxu0  ;;  %v961_v6 = vpop.f32.mrb[26].mxu1 }
 0x14d   : > { %v834_v7 = vadd.f32 %v2325_v17, %v833_v5  ;;  %v962_v8 = vadd.f32 %v2325_v17, %v961_v6  ;;  %v835_v9 = vpop.f32.mrb[27].mxu0  ;;  %v963_v10 = vpop.f32.mrb[27].mxu1  ;;  %v1049_v11 = vmax.f32 %v831_v1, 0.0  ;;  %v1081_v12 = vmax.f32 %v959_v2, 0.0 }
 0x14f   : > { %v1050_v13 = vmax.f32 %v834_v7, 0.0  ;;  %v1082_v14 = vmax.f32 %v962_v8, 0.0 }
 0x151   : > { %v1780_v15 = vpack.c.bf16 %v1050_v13, %v1049_v11  ;;  %v1860_v16 = vpack.c.bf16 %v1082_v14, %v1081_v12 }
 0x152   : > { %v838_v18 = vpop.f32.mrb[28].mxu0  ;;  %v966_v19 = vpop.f32.mrb[28].mxu1 }
 0x153   : > { %1912 = vst [vmem:[%s2335_s8 + $0x30] sm:$0xff] %v1780_v15   ;;  %1928 = vst [vmem:[%s2335_s8 + $0xb0] sm:$0xff] %v1860_v16   ;;  %v839_v20 = vadd.f32 %v2325_v17, %v838_v18  ;;  %v967_v21 = vadd.f32 %v2325_v17, %v966_v19  ;;  %v840_v22 = vpop.f32.mrb[29].mxu0  ;;  %v968_v23 = vpop.f32.mrb[29].mxu1 }
 0x154   : > { %v841_v24 = vpop.f32.mrb[30].mxu0  ;;  %v969_v25 = vpop.f32.mrb[30].mxu1 }
 0x155   : > { %v842_v26 = vadd.f32 %v2325_v17, %v841_v24  ;;  %v970_v27 = vadd.f32 %v2325_v17, %v969_v25  ;;  %v843_v28 = vpop.f32.mrb[31].mxu0  ;;  %v971_v29 = vpop.f32.mrb[31].mxu1  ;;  %v1051_v30 = vmax.f32 %v839_v20, 0.0  ;;  %v1083_v31 = vmax.f32 %v967_v21, 0.0 }
 0x157   : > { %v1052_v32 = vmax.f32 %v842_v26, 0.0  ;;  %v1084_v33 = vmax.f32 %v970_v27, 0.0 }
 0x159   : > { %v1785_v34 = vpack.c.bf16 %v1052_v32, %v1051_v30  ;;  %v1865_v35 = vpack.c.bf16 %v1084_v33, %v1083_v31 }
 0x15a   : > { %v846_v36 = vpop.f32.mrb[32].mxu0  ;;  %v974_v37 = vpop.f32.mrb[32].mxu1 }
 0x15b   : > { %1913 = vst [vmem:[%s2335_s8 + $0x38] sm:$0xff] %v1785_v34   ;;  %1929 = vst [vmem:[%s2335_s8 + $0xb8] sm:$0xff] %v1865_v35   ;;  %v847_v38 = vadd.f32 %v2325_v17, %v846_v36  ;;  %v975_v39 = vadd.f32 %v2325_v17, %v974_v37  ;;  %v848_v40 = vpop.f32.mrb[33].mxu0  ;;  %v976_v41 = vpop.f32.mrb[33].mxu1 }
 0x15c   : > { %v849_v42 = vpop.f32.mrb[34].mxu0  ;;  %v977_v43 = vpop.f32.mrb[34].mxu1 }
 0x15d   : > { %v850_v44 = vadd.f32 %v2325_v17, %v849_v42  ;;  %v978_v45 = vadd.f32 %v2325_v17, %v977_v43  ;;  %v851_v46 = vpop.f32.mrb[35].mxu0  ;;  %v979_v47 = vpop.f32.mrb[35].mxu1  ;;  %v1053_v48 = vmax.f32 %v847_v38, 0.0  ;;  %v1085_v49 = vmax.f32 %v975_v39, 0.0 }
 0x15f   : > { %v1054_v50 = vmax.f32 %v850_v44, 0.0  ;;  %v1086_v51 = vmax.f32 %v978_v45, 0.0 }
 0x161   : > { %v1790_v52 = vpack.c.bf16 %v1054_v50, %v1053_v48  ;;  %v1870_v53 = vpack.c.bf16 %v1086_v51, %v1085_v49 }
 0x162   : > { %v854_v54 = vpop.f32.mrb[36].mxu0  ;;  %v982_v55 = vpop.f32.mrb[36].mxu1 }
 0x163   : > { %1914 = vst [vmem:[%s2335_s8 + $0x40] sm:$0xff] %v1790_v52   ;;  %1930 = vst [vmem:[%s2335_s8 + $0xc0] sm:$0xff] %v1870_v53   ;;  %v855_v56 = vadd.f32 %v2325_v17, %v854_v54  ;;  %v983_v57 = vadd.f32 %v2325_v17, %v982_v55  ;;  %v856_v58 = vpop.f32.mrb[37].mxu0  ;;  %v984_v59 = vpop.f32.mrb[37].mxu1 }
 0x164   : > { %v857_v60 = vpop.f32.mrb[38].mxu0  ;;  %v985_v61 = vpop.f32.mrb[38].mxu1 }
 0x165   : > { %v858_v62 = vadd.f32 %v2325_v17, %v857_v60  ;;  %v986_v63 = vadd.f32 %v2325_v17, %v985_v61  ;;  %v859_v0 = vpop.f32.mrb[39].mxu0  ;;  %v987_v1 = vpop.f32.mrb[39].mxu1  ;;  %v1055_v2 = vmax.f32 %v855_v56, 0.0  ;;  %v1087_v3 = vmax.f32 %v983_v57, 0.0 }
 0x167   : > { %v1056_v4 = vmax.f32 %v858_v62, 0.0  ;;  %v1088_v5 = vmax.f32 %v986_v63, 0.0 }
 0x169   : > { %v1795_v6 = vpack.c.bf16 %v1056_v4, %v1055_v2  ;;  %v1875_v7 = vpack.c.bf16 %v1088_v5, %v1087_v3 }
 0x16a   : > { %v862_v8 = vpop.f32.mrb[40].mxu0  ;;  %v990_v9 = vpop.f32.mrb[40].mxu1 }
 0x16b   : > { %1915 = vst [vmem:[%s2335_s8 + $0x48] sm:$0xff] %v1795_v6   ;;  %1931 = vst [vmem:[%s2335_s8 + $0xc8] sm:$0xff] %v1875_v7   ;;  %v863_v10 = vadd.f32 %v2325_v17, %v862_v8  ;;  %v991_v11 = vadd.f32 %v2325_v17, %v990_v9  ;;  %v864_v12 = vpop.f32.mrb[41].mxu0  ;;  %v992_v13 = vpop.f32.mrb[41].mxu1 }
 0x16c   : > { %v865_v14 = vpop.f32.mrb[42].mxu0  ;;  %v993_v15 = vpop.f32.mrb[42].mxu1 }
 0x16d   : > { %v866_v16 = vadd.f32 %v2325_v17, %v865_v14  ;;  %v994_v18 = vadd.f32 %v2325_v17, %v993_v15  ;;  %v867_v19 = vpop.f32.mrb[43].mxu0  ;;  %v995_v20 = vpop.f32.mrb[43].mxu1  ;;  %v1057_v21 = vmax.f32 %v863_v10, 0.0  ;;  %v1089_v22 = vmax.f32 %v991_v11, 0.0 }
 0x16f   : > { %v1058_v23 = vmax.f32 %v866_v16, 0.0  ;;  %v1090_v24 = vmax.f32 %v994_v18, 0.0 }
 0x171   : > { %v1800_v25 = vpack.c.bf16 %v1058_v23, %v1057_v21  ;;  %v1880_v26 = vpack.c.bf16 %v1090_v24, %v1089_v22 }
 0x172   : > { %v870_v27 = vpop.f32.mrb[44].mxu0  ;;  %v998_v28 = vpop.f32.mrb[44].mxu1 }
 0x173   : > { %1916 = vst [vmem:[%s2335_s8 + $0x50] sm:$0xff] %v1800_v25   ;;  %1932 = vst [vmem:[%s2335_s8 + $0xd0] sm:$0xff] %v1880_v26   ;;  %v871_v29 = vadd.f32 %v2325_v17, %v870_v27  ;;  %v999_v30 = vadd.f32 %v2325_v17, %v998_v28  ;;  %v872_v31 = vpop.f32.mrb[45].mxu0  ;;  %v1000_v32 = vpop.f32.mrb[45].mxu1 }
 0x174   : > { %v873_v33 = vpop.f32.mrb[46].mxu0  ;;  %v1001_v34 = vpop.f32.mrb[46].mxu1 }
 0x175   : > { %v874_v35 = vadd.f32 %v2325_v17, %v873_v33  ;;  %v1002_v36 = vadd.f32 %v2325_v17, %v1001_v34  ;;  %v875_v37 = vpop.f32.mrb[47].mxu0  ;;  %v1003_v38 = vpop.f32.mrb[47].mxu1  ;;  %v1059_v39 = vmax.f32 %v871_v29, 0.0  ;;  %v1091_v40 = vmax.f32 %v999_v30, 0.0 }
 0x177   : > { %v1060_v41 = vmax.f32 %v874_v35, 0.0  ;;  %v1092_v42 = vmax.f32 %v1002_v36, 0.0 }
 0x179   : > { %v1805_v43 = vpack.c.bf16 %v1060_v41, %v1059_v39  ;;  %v1885_v44 = vpack.c.bf16 %v1092_v42, %v1091_v40 }
 0x17a   : > { %v878_v45 = vpop.f32.mrb[48].mxu0  ;;  %v1006_v46 = vpop.f32.mrb[48].mxu1 }
 0x17b   : > { %1917 = vst [vmem:[%s2335_s8 + $0x58] sm:$0xff] %v1805_v43   ;;  %1933 = vst [vmem:[%s2335_s8 + $0xd8] sm:$0xff] %v1885_v44   ;;  %v879_v47 = vadd.f32 %v2325_v17, %v878_v45  ;;  %v1007_v48 = vadd.f32 %v2325_v17, %v1006_v46  ;;  %v880_v49 = vpop.f32.mrb[49].mxu0  ;;  %v1008_v50 = vpop.f32.mrb[49].mxu1 }
 0x17c   : > { %v881_v51 = vpop.f32.mrb[50].mxu0  ;;  %v1009_v52 = vpop.f32.mrb[50].mxu1 }
 0x17d   : > { %v882_v53 = vadd.f32 %v2325_v17, %v881_v51  ;;  %v1010_v54 = vadd.f32 %v2325_v17, %v1009_v52  ;;  %v883_v55 = vpop.f32.mrb[51].mxu0  ;;  %v1011_v56 = vpop.f32.mrb[51].mxu1  ;;  %v1061_v57 = vmax.f32 %v879_v47, 0.0  ;;  %v1093_v58 = vmax.f32 %v1007_v48, 0.0 }
 0x17f   : > { %v1062_v59 = vmax.f32 %v882_v53, 0.0  ;;  %v1094_v60 = vmax.f32 %v1010_v54, 0.0 }
 0x181   : > { %v1810_v61 = vpack.c.bf16 %v1062_v59, %v1061_v57  ;;  %v1890_v62 = vpack.c.bf16 %v1094_v60, %v1093_v58 }
 0x182   : > { %v886_v63 = vpop.f32.mrb[52].mxu0  ;;  %v1014_v0 = vpop.f32.mrb[52].mxu1 }
 0x183   : > { %1918 = vst [vmem:[%s2335_s8 + $0x60] sm:$0xff] %v1810_v61   ;;  %1934 = vst [vmem:[%s2335_s8 + $0xe0] sm:$0xff] %v1890_v62   ;;  %v887_v1 = vadd.f32 %v2325_v17, %v886_v63  ;;  %v1015_v2 = vadd.f32 %v2325_v17, %v1014_v0  ;;  %v888_v3 = vpop.f32.mrb[53].mxu0  ;;  %v1016_v4 = vpop.f32.mrb[53].mxu1 }
 0x184   : > { %v889_v5 = vpop.f32.mrb[54].mxu0  ;;  %v1017_v6 = vpop.f32.mrb[54].mxu1 }
 0x185   : > { %v890_v7 = vadd.f32 %v2325_v17, %v889_v5  ;;  %v1018_v8 = vadd.f32 %v2325_v17, %v1017_v6  ;;  %v891_v9 = vpop.f32.mrb[55].mxu0  ;;  %v1019_v10 = vpop.f32.mrb[55].mxu1  ;;  %v1063_v11 = vmax.f32 %v887_v1, 0.0  ;;  %v1095_v12 = vmax.f32 %v1015_v2, 0.0 }
 0x187   : > { %v1064_v13 = vmax.f32 %v890_v7, 0.0  ;;  %v1096_v14 = vmax.f32 %v1018_v8, 0.0 }
 0x189   : > { %v1815_v15 = vpack.c.bf16 %v1064_v13, %v1063_v11  ;;  %v1895_v16 = vpack.c.bf16 %v1096_v14, %v1095_v12 }
 0x18a   : > { %v894_v18 = vpop.f32.mrb[56].mxu0  ;;  %v1022_v19 = vpop.f32.mrb[56].mxu1 }
 0x18b   : > { %1919 = vst [vmem:[%s2335_s8 + $0x68] sm:$0xff] %v1815_v15   ;;  %1935 = vst [vmem:[%s2335_s8 + $0xe8] sm:$0xff] %v1895_v16   ;;  %v895_v20 = vadd.f32 %v2325_v17, %v894_v18  ;;  %v1023_v21 = vadd.f32 %v2325_v17, %v1022_v19  ;;  %v896_v22 = vpop.f32.mrb[57].mxu0  ;;  %v1024_v23 = vpop.f32.mrb[57].mxu1 }
 0x18c   : > { %v897_v24 = vpop.f32.mrb[58].mxu0  ;;  %v1025_v25 = vpop.f32.mrb[58].mxu1 }
 0x18d   : > { %v898_v26 = vadd.f32 %v2325_v17, %v897_v24  ;;  %v1026_v27 = vadd.f32 %v2325_v17, %v1025_v25  ;;  %v899_v28 = vpop.f32.mrb[59].mxu0  ;;  %v1027_v29 = vpop.f32.mrb[59].mxu1  ;;  %v1065_v30 = vmax.f32 %v895_v20, 0.0  ;;  %v1097_v31 = vmax.f32 %v1023_v21, 0.0 }
 0x18f   : > { %v1066_v32 = vmax.f32 %v898_v26, 0.0  ;;  %v1098_v33 = vmax.f32 %v1026_v27, 0.0 }
 0x191   : > { %v1820_v34 = vpack.c.bf16 %v1066_v32, %v1065_v30  ;;  %v1900_v35 = vpack.c.bf16 %v1098_v33, %v1097_v31 }
 0x192   : > { %v902_v36 = vpop.f32.mrb[60].mxu0  ;;  %v1030_v37 = vpop.f32.mrb[60].mxu1 }
 0x193   : > { %1920 = vst [vmem:[%s2335_s8 + $0x70] sm:$0xff] %v1820_v34   ;;  %1936 = vst [vmem:[%s2335_s8 + $0xf0] sm:$0xff] %v1900_v35   ;;  %v903_v38 = vadd.f32 %v2325_v17, %v902_v36  ;;  %v1031_v39 = vadd.f32 %v2325_v17, %v1030_v37  ;;  %v904_v40 = vpop.f32.mrb[61].mxu0  ;;  %v1032_v41 = vpop.f32.mrb[61].mxu1 }
 0x194   : > { %v905_v42 = vpop.f32.mrb[62].mxu0  ;;  %v1033_v43 = vpop.f32.mrb[62].mxu1 }
 0x195   : > { %v906_v44 = vadd.f32 %v2325_v17, %v905_v42  ;;  %v1034_v45 = vadd.f32 %v2325_v17, %v1033_v43  ;;  %v907_v46 = vpop.f32.mrb[63].mxu0  ;;  %v1035_v47 = vpop.f32.mrb[63].mxu1  ;;  %v1067_v48 = vmax.f32 %v903_v38, 0.0  ;;  %v1099_v49 = vmax.f32 %v1031_v39, 0.0 }
 0x197   : > { %v1068_v50 = vmax.f32 %v906_v44, 0.0  ;;  %v1100_v51 = vmax.f32 %v1034_v45, 0.0 }
 0x199   : > { %v1825_v52 = vpack.c.bf16 %v1068_v50, %v1067_v48  ;;  %v1905_v53 = vpack.c.bf16 %v1100_v51, %v1099_v49 }
 0x19b   : > { %1921 = vst [vmem:[%s2335_s8 + $0x78] sm:$0xff] %v1825_v52   ;;  %1937 = vst [vmem:[%s2335_s8 + $0xf8] sm:$0xff] %v1905_v53  }
 0x19c PF: > { %s13_s14 = sadd.s32 1, %s2129_s14   ;;  %s2442_s12 = smov %s2125_s13 }
 0x19d   : > { %p10_p5 = scmp.ge.s32.totalorder %s13_s14, 5   ;;  %s2443_s13 = smov %s2445_s15 }
 0x19f   :  { %12 = sbr.rel (!%p10_p5) target bundleno = 2 (0x2), region = 68 }

// kernel: _lambda_.7
= control target key start
LH: loop header
LB: loop body
LE: loop exit
PB: predicated region body
PF: predicated region fallthrough
CT: control target
= control target key end

     0   :  { %s2960_s12 = smov 0   ;;  %s2962_s13 = smov 0   ;;  %s3428_s0 = inlined_call_operand.vmem [shape: bf16[1536,384], index: 0, kind: input, shape index: {}]   ;;  %s3429_s1 = inlined_call_operand.vmem [shape: bf16[384,128], index: 1, kind: input, shape index: {}]   ;;  %s3430_s2 = inlined_call_operand.vmem [shape: f32[1,128], index: 2, kind: input, shape index: {}]   ;;  %s3431_s3 = inlined_call_operand.vmem [shape: bf16[1536,128], index: 3, kind: output, shape index: {}]  }
   0x1   :  { %s2964_s14 = smov 0  }
   0x2 LB: > { %s25_s15 = sadd.s32 1, %s2933_s13  ;;  %p2138_p0 = scmp.ge.s32.totalorder %s2937_s14, 1  ;;  %s2937_s14 = sphi %s2964_s14, %s13_s14   ;;  %s2933_s13 = sphi %s2962_s13, %s3433_s13   ;;  %s2929_s12 = sphi %s2960_s12, %s3432_s12  }
   0x3   : > { %p27_p1 = scmp.ge.s32.totalorder %s25_s15, 3  ;;  %p170_p2 = scmp.lt.s32.totalorder %s2937_s14, 4 }
   0x5   : > { %s3435_s15 = smov (%p27_p1, %s25_s15), 0  ;;  %p171_p3 = pnand %p2138_p0, %p170_p2 }
   0x6   : > { %v2763_v0 = vld [vmem:[%s3429_s1] sm:$0xff] (!%p171_p3)   ;;  %v2939_v1 = vmov (!%p171_p3), 0   ;;  %s2139_s18 = sshll.u32 (!%p171_p3), %s2929_s12, 6  ;;  %v2764_v2 = vld [vmem:[%s3429_s1 + $0x8] sm:$0xff] (!%p171_p3)   ;;  %v2765_v3 = vld [vmem:[%s3429_s1 + $0x10] sm:$0xff] (!%p171_p3)  }
   0x7   : > { %174 = sbr.rel (%p171_p3) target bundleno = 478 (0x1de), region = 32  ;;  %1068 = vmatprep.subr.bf16.mxu0 (!%p171_p3), %v2939_v1  ;;  %2705 = vmatprep.subr.bf16.mxu1 (!%p171_p3), %v2939_v1  ;;  %p206_p4 = scmp.lt.s32.totalorder (!%p171_p3), %s2139_s18, 191  ;;  %v2766_v4 = vld [vmem:[%s3429_s1 + $0x18] sm:$0xff] (!%p171_p3)   ;;  %v2767_v5 = vld [vmem:[%s3429_s1 + $0x20] sm:$0xff] (!%p171_p3)   ;;  %v2768_v7 = vld [vmem:[%s3429_s1 + $0x28] sm:$0xff] (!%p171_p3)  }
   0x8   : > { %1069 = vmatpush1.bf16.msra.mxu0 (!%p171_p3), %v2763_v0  ;;  %2721 = vmatpush1.bf16.msra.mxu1 (!%p171_p3), %v2763_v0  ;;  %v2769_v9 = vld [vmem:[%s3429_s1 + $0x30] sm:$0xff] (!%p171_p3)   ;;  %v2770_v10 = vld [vmem:[%s3429_s1 + $0x38] sm:$0xff] (!%p171_p3)   ;;  %v2771_v11 = vld [vmem:[%s3429_s1 + $0x40] sm:$0xff] (!%p171_p3)  }
   0x9   : > { %1070 = vmatprep.subr.bf16.mxu0 (!%p171_p3), %v2939_v1  ;;  %2706 = vmatprep.subr.bf16.mxu1 (!%p171_p3), %v2939_v1  ;;  %v2772_v12 = vld [vmem:[%s3429_s1 + $0x48] sm:$0xff] (!%p171_p3)   ;;  %v2773_v13 = vld [vmem:[%s3429_s1 + $0x50] sm:$0xff] (!%p171_p3)   ;;  %v2774_v14 = vld [vmem:[%s3429_s1 + $0x58] sm:$0xff] (!%p171_p3)  }
   0xa   : > { %v2775_v15 = vld [vmem:[%s3429_s1 + $0x60] sm:$0xff] (!%p171_p3)   ;;  %v2776_v16 = vld [vmem:[%s3429_s1 + $0x68] sm:$0xff] (!%p171_p3)   ;;  %v2777_v17 = vld [vmem:[%s3429_s1 + $0x70] sm:$0xff] (!%p171_p3)  }
   0xb   : > { %v2778_v18 = vld [vmem:[%s3429_s1 + $0x78] sm:$0xff] (!%p171_p3)   ;;  %v2785_v19 = vld [vmem:[%s3429_s1 + $0x80] sm:$0xff] (!%p171_p3)   ;;  %v2792_v24 = vld [vmem:[%s3429_s1 + $0x88] sm:$0xff] (!%p171_p3)  }
   0xc   : > { %1071 = vmatpush1.bf16.msra.mxu0 (!%p171_p3), %v2764_v2  ;;  %2722 = vmatpush1.bf16.msra.mxu1 (!%p171_p3), %v2764_v2  ;;  %v2799_v25 = vld [vmem:[%s3429_s1 + $0x90] sm:$0xff] (!%p171_p3)   ;;  %v2806_v30 = vld [vmem:[%s3429_s1 + $0x98] sm:$0xff] (!%p171_p3)   ;;  %v2813_v32 = vld [vmem:[%s3429_s1 + $0xa0] sm:$0xff] (!%p171_p3)  }
   0xd   : > { %1072 = vmatprep.subr.bf16.mxu0 (!%p171_p3), %v2939_v1  ;;  %2707 = vmatprep.subr.bf16.mxu1 (!%p171_p3), %v2939_v1  ;;  %v2820_v36 = vld [vmem:[%s3429_s1 + $0xa8] sm:$0xff] (!%p171_p3)   ;;  %v2827_v41 = vld [vmem:[%s3429_s1 + $0xb0] sm:$0xff] (!%p171_p3)   ;;  %v2834_v42 = vld [vmem:[%s3429_s1 + $0xb8] sm:$0xff] (!%p171_p3)  }
   0xe   : > { %s3437_s18 = smov (!%p206_p4, %s2139_s18), 191 }
   0xf   : > { %s2737_s25 = smul.u32 12, %s3437_s18 }
  0x10   : > { %1073 = vmatpush1.bf16.msra.mxu0 %v2765_v3  ;;  %2723 = vmatpush1.bf16.msra.mxu1 %v2765_v3 }
  0x11   : > { %1074 = vmatprep.subr.bf16.mxu0 %v2939_v1  ;;  %2708 = vmatprep.subr.bf16.mxu1 %v2939_v1  ;;  %s3007_s30 = scalar_lea.vmem %s3428_s0, %s2737_s25  ;;  %s2142_s25 = sshll.u32 %s3437_s18, 2 }
  0x12   : > { %v2781_v6 = vld [vmem:[%s3007_s30 + $0x4] ss:$12 sps:$4 sm:$0xff]   ;;  %v2779_v20 = vld [vmem:[%s3007_s30] ss:$12 sps:$4 sm:$0xff]   ;;  %v2786_v22 = vld [vmem:[%s3007_s30 + $0x1c] ss:$12 sps:$4 sm:$0xff]   ;;  %s3265_s28 = scalar_lea.vmem %s3431_s3, %s2142_s25 }
  0x13   : > { %v2784_v8 = vld [vmem:[%s3007_s30 + $0x244] ss:$12 sps:$4 sm:$0xff]   ;;  %1100 = vmatprep.mubr.bf16.mxu0 %v2781_v6  ;;  %v2782_v21 = vld [vmem:[%s3007_s30 + $0x240] ss:$12 sps:$4 sm:$0xff]   ;;  %v2788_v23 = vld [vmem:[%s3007_s30 + $0x25c] ss:$12 sps:$4 sm:$0xff]  }
  0x14   : > { %1075 = vmatpush1.bf16.msra.mxu0 %v2766_v4  ;;  %2724 = vmatpush1.bf16.msra.mxu1 %v2766_v4  ;;  %v2790_v26 = vld [vmem:[%s3007_s30 + $0x18] ss:$12 sps:$4 sm:$0xff]   ;;  %v2793_v28 = vld [vmem:[%s3007_s30 + $0x34] ss:$12 sps:$4 sm:$0xff]   ;;  %v2797_v31 = vld [vmem:[%s3007_s30 + $0x30] ss:$12 sps:$4 sm:$0xff]  }
  0x15   : > { %1076 = vmatprep.subr.bf16.mxu0 %v2939_v1  ;;  %2709 = vmatprep.subr.bf16.mxu1 %v2939_v1  ;;  %v2791_v27 = vld [vmem:[%s3007_s30 + $0x258] ss:$12 sps:$4 sm:$0xff]   ;;  %v2795_v29 = vld [vmem:[%s3007_s30 + $0x274] ss:$12 sps:$4 sm:$0xff]   ;;  %v2798_v33 = vld [vmem:[%s3007_s30 + $0x270] ss:$12 sps:$4 sm:$0xff]  }
  0x16   : > { %1292 = vmatprep.mubr.bf16.mxu1 %v2784_v8  ;;  %v2800_v34 = vld [vmem:[%s3007_s30 + $0x4c] ss:$12 sps:$4 sm:$0xff]   ;;  %v2804_v37 = vld [vmem:[%s3007_s30 + $0x48] ss:$12 sps:$4 sm:$0xff]   ;;  %v2807_v39 = vld [vmem:[%s3007_s30 + $0x64] ss:$12 sps:$4 sm:$0xff]  }
  0x17   : > { %v2802_v35 = vld [vmem:[%s3007_s30 + $0x28c] ss:$12 sps:$4 sm:$0xff]   ;;  %v2805_v38 = vld [vmem:[%s3007_s30 + $0x288] ss:$12 sps:$4 sm:$0xff]   ;;  %v2809_v40 = vld [vmem:[%s3007_s30 + $0x2a4] ss:$12 sps:$4 sm:$0xff]  }
  0x18   : > { %1077 = vmatpush1.bf16.msra.mxu0 %v2767_v5  ;;  %2725 = vmatpush1.bf16.msra.mxu1 %v2767_v5  ;;  %v2811_v43 = vld [vmem:[%s3007_s30 + $0x60] ss:$12 sps:$4 sm:$0xff]   ;;  %v2814_v45 = vld [vmem:[%s3007_s30 + $0x7c] ss:$12 sps:$4 sm:$0xff]   ;;  %v2818_v47 = vld [vmem:[%s3007_s30 + $0x78] ss:$12 sps:$4 sm:$0xff]  }
  0x19   : > { %1078 = vmatprep.subr.bf16.mxu0 %v2939_v1  ;;  %2710 = vmatprep.subr.bf16.mxu1 %v2939_v1  ;;  %v2812_v44 = vld [vmem:[%s3007_s30 + $0x2a0] ss:$12 sps:$4 sm:$0xff]   ;;  %v2816_v46 = vld [vmem:[%s3007_s30 + $0x2bc] ss:$12 sps:$4 sm:$0xff]   ;;  %v2819_v48 = vld [vmem:[%s3007_s30 + $0x2b8] ss:$12 sps:$4 sm:$0xff]  }
  0x1a   : > { %v2821_v49 = vld [vmem:[%s3007_s30 + $0x94] ss:$12 sps:$4 sm:$0xff]   ;;  %v2825_v51 = vld [vmem:[%s3007_s30 + $0x90] ss:$12 sps:$4 sm:$0xff]   ;;  %v2828_v53 = vld [vmem:[%s3007_s30 + $0xac] ss:$12 sps:$4 sm:$0xff]  }
  0x1b   : > { %v2823_v50 = vld [vmem:[%s3007_s30 + $0x2d4] ss:$12 sps:$4 sm:$0xff]   ;;  %v2826_v52 = vld [vmem:[%s3007_s30 + $0x2d0] ss:$12 sps:$4 sm:$0xff]   ;;  %v2830_v54 = vld [vmem:[%s3007_s30 + $0x2ec] ss:$12 sps:$4 sm:$0xff]  }
  0x1c   : > { %1079 = vmatpush1.bf16.msra.mxu0 %v2768_v7  ;;  %2726 = vmatpush1.bf16.msra.mxu1 %v2768_v7  ;;  %v2832_v55 = vld [vmem:[%s3007_s30 + $0xa8] ss:$12 sps:$4 sm:$0xff]   ;;  %v2835_v57 = vld [vmem:[%s3007_s30 + $0xc4] ss:$12 sps:$4 sm:$0xff]   ;;  %v2838_v59 = vld [vmem:[%s3007_s30 + $0xc0] ss:$12 sps:$4 sm:$0xff]  }
  0x1d   : > { %1080 = vmatprep.subr.bf16.mxu0 %v2939_v1  ;;  %2711 = vmatprep.subr.bf16.mxu1 %v2939_v1  ;;  %v2833_v56 = vld [vmem:[%s3007_s30 + $0x2e8] ss:$12 sps:$4 sm:$0xff]   ;;  %v2839_v60 = vld [vmem:[%s3007_s30 + $0x20] ss:$12 sps:$4 sm:$0xff]   ;;  %v2842_v62 = vld [vmem:[%s3007_s30 + $0x38] ss:$12 sps:$4 sm:$0xff]  }
  0x1e   : > { %v2837_v58 = vld [vmem:[%s3007_s30 + $0x8] ss:$12 sps:$4 sm:$0xff]   ;;  %v2843_v63 = vld [vmem:[%s3007_s30 + $0xd8] ss:$12 sps:$4 sm:$0xff]   ;;  %v2844_v0 = vld [vmem:[%s3007_s30 + $0x50] ss:$12 sps:$4 sm:$0xff]  }
  0x1f   : > { %v2840_v61 = vld [vmem:[%s3007_s30 + $0xdc] ss:$12 sps:$4 sm:$0xff]   ;;  %v2849_v4 = vld [vmem:[%s3007_s30 + $0x80] ss:$12 sps:$4 sm:$0xff]   ;;  %v2852_v6 = vld [vmem:[%s3007_s30 + $0x98] ss:$12 sps:$4 sm:$0xff]  }
  0x20   : > { %1081 = vmatpush1.bf16.msra.mxu0 %v2769_v9  ;;  %2727 = vmatpush1.bf16.msra.mxu1 %v2769_v9  ;;  %v2847_v2 = vld [vmem:[%s3007_s30 + $0x68] ss:$12 sps:$4 sm:$0xff]   ;;  %v2848_v3 = vld [vmem:[%s3007_s30 + $0xf0] ss:$12 sps:$4 sm:$0xff]   ;;  %v2850_v5 = vld [vmem:[%s3007_s30 + $0x10c] ss:$12 sps:$4 sm:$0xff]  }
  0x21   : > { %1082 = vmatprep.subr.bf16.mxu0 %v2939_v1  ;;  %2712 = vmatprep.subr.bf16.mxu1 %v2939_v1  ;;  %v2853_v7 = vld [vmem:[%s3007_s30 + $0x108] ss:$12 sps:$4 sm:$0xff]   ;;  %v2854_v8 = vld [vmem:[%s3007_s30 + $0xb0] ss:$12 sps:$4 sm:$0xff]  }
  0x22   : > { %v2855_v9 = vld [vmem:[%s3007_s30 + $0x124] ss:$12 sps:$4 sm:$0xff]  }
  0x24   : > { %1083 = vmatpush1.bf16.msra.mxu0 %v2770_v10  ;;  %2728 = vmatpush1.bf16.msra.mxu1 %v2770_v10  ;;  %v2857_v10 = vld [vmem:[%s3007_s30 + $0xc8] ss:$12 sps:$4 sm:$0xff]  }
  0x25   : > { %1084 = vmatprep.subr.bf16.mxu0 %v2939_v1  ;;  %2713 = vmatprep.subr.bf16.mxu1 %v2939_v1 }
  0x28   : > { %1085 = vmatpush1.bf16.msra.mxu0 %v2771_v11  ;;  %2729 = vmatpush1.bf16.msra.mxu1 %v2771_v11  ;;  %v2858_v11 = vld [vmem:[%s3007_s30 + $0x120] ss:$12 sps:$4 sm:$0xff]  }
  0x29   : > { %1086 = vmatprep.subr.bf16.mxu0 %v2939_v1  ;;  %2714 = vmatprep.subr.bf16.mxu1 %v2939_v1 }
  0x2c   : > { %1087 = vmatpush1.bf16.msra.mxu0 %v2772_v12  ;;  %2730 = vmatpush1.bf16.msra.mxu1 %v2772_v12  ;;  %v2859_v12 = vld [vmem:[%s3007_s30 + $0xe0] ss:$12 sps:$4 sm:$0xff]  }
  0x2d   : > { %1088 = vmatprep.subr.bf16.mxu0 %v2939_v1  ;;  %2715 = vmatprep.subr.bf16.mxu1 %v2939_v1 }
  0x30   : > { %1089 = vmatpush1.bf16.msra.mxu0 %v2773_v13  ;;  %2731 = vmatpush1.bf16.msra.mxu1 %v2773_v13  ;;  %v2860_v13 = vld [vmem:[%s3007_s30 + $0x13c] ss:$12 sps:$4 sm:$0xff]  }
  0x31   : > { %1090 = vmatprep.subr.bf16.mxu0 %v2939_v1  ;;  %2716 = vmatprep.subr.bf16.mxu1 %v2939_v1 }
  0x34   : > { %1091 = vmatpush1.bf16.msra.mxu0 %v2774_v14  ;;  %2732 = vmatpush1.bf16.msra.mxu1 %v2774_v14  ;;  %v2862_v14 = vld [vmem:[%s3007_s30 + $0xf8] ss:$12 sps:$4 sm:$0xff]  }
  0x35   : > { %1092 = vmatprep.subr.bf16.mxu0 %v2939_v1  ;;  %2717 = vmatprep.subr.bf16.mxu1 %v2939_v1 }
  0x38   : > { %1093 = vmatpush1.bf16.msra.mxu0 %v2775_v15  ;;  %2733 = vmatpush1.bf16.msra.mxu1 %v2775_v15  ;;  %v2863_v15 = vld [vmem:[%s3007_s30 + $0x138] ss:$12 sps:$4 sm:$0xff]  }
  0x39   : > { %1094 = vmatprep.subr.bf16.mxu0 %v2939_v1  ;;  %2718 = vmatprep.subr.bf16.mxu1 %v2939_v1 }
  0x3c   : > { %1095 = vmatpush1.bf16.msra.mxu0 %v2776_v16  ;;  %2734 = vmatpush1.bf16.msra.mxu1 %v2776_v16  ;;  %v2864_v16 = vld [vmem:[%s3007_s30 + $0x110] ss:$12 sps:$4 sm:$0xff]  }
  0x3d   : > { %1096 = vmatprep.subr.bf16.mxu0 %v2939_v1  ;;  %2719 = vmatprep.subr.bf16.mxu1 %v2939_v1 }
  0x40   : > { %1097 = vmatpush1.bf16.msra.mxu0 %v2777_v17  ;;  %2735 = vmatpush1.bf16.msra.mxu1 %v2777_v17  ;;  %v2865_v17 = vld [vmem:[%s3007_s30 + $0x154] ss:$12 sps:$4 sm:$0xff]  }
  0x41   : > { %1098 = vmatprep.subr.bf16.mxu0 %v2939_v1  ;;  %2720 = vmatprep.subr.bf16.mxu1 %v2939_v1  ;;  %v2845_v1 = vld [vmem:[%s3007_s30 + $0xf4] ss:$12 sps:$4 sm:$0xff]  }
  0x44   : > { %1099 = vmatpush1.bf16.msra.mxu0 %v2778_v18  ;;  %2736 = vmatpush1.bf16.msra.mxu1 %v2778_v18  ;;  %v2867_v18 = vld [vmem:[%s3007_s30 + $0x128] ss:$12 sps:$4 sm:$0xff]  }
  0x45   : > { %2625 = vmatprep.subr.bf16.mxu1 %v2785_v19 }
  0x47   : > { %1101 = vmatmul.mubr.bf16.vlgmr.msra.gmra.mrb[0].mxu0 %v2779_v20  ;;  %1293 = vmatmul.mubr.bf16.vlgmr.msra.gmra.mrb[0].mxu1 %v2782_v21  ;;  %v2869_v20 = vld [vmem:[%s3007_s30 + $0x140] ss:$12 sps:$4 sm:$0xff]  }
  0x48   : > { %2626 = vmatpush3.bf16.msra.mxu1 %v2785_v19  ;;  %1108 = vmatprep.mubr.bf16.mxu0 %v2786_v22  ;;  %v2868_v19 = vld [vmem:[%s3007_s30 + $0x150] ss:$12 sps:$4 sm:$0xff]   ;;  %v2870_v21 = vld [vmem:[%s3007_s30 + $0x16c] ss:$12 sps:$4 sm:$0xff]  }
  0x49   : > { %1300 = vmatprep.mubr.bf16.mxu1 %v2788_v23  ;;  %2627 = vmatprep.subr.bf16.mxu1 %v2792_v24  ;;  %v2872_v22 = vld [vmem:[%s3007_s30 + $0x158] ss:$12 sps:$4 sm:$0xff]   ;;  %v2873_v23 = vld [vmem:[%s3007_s30 + $0x168] ss:$12 sps:$4 sm:$0xff]  }
  0x4c   : > { %2628 = vmatpush3.bf16.msra.mxu1 %v2792_v24  ;;  %v2874_v24 = vld [vmem:[%s3007_s30 + $0x170] ss:$12 sps:$4 sm:$0xff]  }
  0x4d   : > { %2629 = vmatprep.subr.bf16.mxu1 %v2799_v25 }
  0x4f   : > { %1109 = vmatmul.mubr.bf16.gmra.mrb[4].mxu0 %v2790_v26  ;;  %1301 = vmatmul.mubr.bf16.gmra.mrb[4].mxu1 %v2791_v27  ;;  %v2877_v26 = vld [vmem:[%s3007_s30 + $0x188] ss:$12 sps:$4 sm:$0xff]   ;;  %v2878_v27 = vld [vmem:[%s3007_s30 + $0x180] ss:$12 sps:$4 sm:$0xff]  }
  0x50   : > { %1116 = vmatprep.mubr.bf16.mxu0 %v2793_v28  ;;  %1308 = vmatprep.mubr.bf16.mxu1 %v2795_v29  ;;  %v2879_v28 = vld [vmem:[%s3007_s30 + $0x1a0] ss:$12 sps:$4 sm:$0xff]   ;;  %v2880_v29 = vld [vmem:[%s3007_s30 + $0x19c] ss:$12 sps:$4 sm:$0xff]  }
  0x51   : > { %2630 = vmatpush3.bf16.msra.mxu1 %v2799_v25  ;;  %v2875_v25 = vld [vmem:[%s3007_s30 + $0x184] ss:$12 sps:$4 sm:$0xff]  }
  0x52   : > { %2631 = vmatprep.subr.bf16.mxu1 %v2806_v30 }
  0x55   : > { %2632 = vmatpush3.bf16.msra.mxu1 %v2806_v30  ;;  %v2882_v30 = vld [vmem:[%s3007_s30 + $0x1b8] ss:$12 sps:$4 sm:$0xff]  }
  0x56   : > { %2633 = vmatprep.subr.bf16.mxu1 %v2813_v32 }
  0x57   : > { %1117 = vmatmul.mubr.bf16.gmra.mrb[8].mxu0 %v2797_v31  ;;  %1309 = vmatmul.mubr.bf16.gmra.mrb[8].mxu1 %v2798_v33  ;;  %v2883_v31 = vld [vmem:[%s3007_s30 + $0x198] ss:$12 sps:$4 sm:$0xff]   ;;  %v2885_v33 = vld [vmem:[%s3007_s30 + $0x1b4] ss:$12 sps:$4 sm:$0xff]  }
  0x58   : > { %1124 = vmatprep.mubr.bf16.mxu0 %v2800_v34  ;;  %1316 = vmatprep.mubr.bf16.mxu1 %v2802_v35  ;;  %v2887_v34 = vld [vmem:[%s3007_s30 + $0x1e8] ss:$12 sps:$4 sm:$0xff]   ;;  %v2888_v35 = vld [vmem:[%s3007_s30 + $0x1b0] ss:$12 sps:$4 sm:$0xff]  }
  0x59   : > { %2634 = vmatpush3.bf16.msra.mxu1 %v2813_v32  ;;  %v2884_v32 = vld [vmem:[%s3007_s30 + $0x1d0] ss:$12 sps:$4 sm:$0xff]  }
  0x5a   : > { %2635 = vmatprep.subr.bf16.mxu1 %v2820_v36 }
  0x5d   : > { %2636 = vmatpush3.bf16.msra.mxu1 %v2820_v36  ;;  %v2889_v36 = vld [vmem:[%s3007_s30 + $0x200] ss:$12 sps:$4 sm:$0xff]  }
  0x5e   : > { %2637 = vmatprep.subr.bf16.mxu1 %v2827_v41 }
  0x5f   : > { %1125 = vmatmul.mubr.bf16.gmra.mrb[12].mxu0 %v2804_v37  ;;  %1317 = vmatmul.mubr.bf16.gmra.mrb[12].mxu1 %v2805_v38  ;;  %v2890_v37 = vld [vmem:[%s3007_s30 + $0x1cc] ss:$12 sps:$4 sm:$0xff]  }
  0x60   : > { %1132 = vmatprep.mubr.bf16.mxu0 %v2807_v39  ;;  %1324 = vmatprep.mubr.bf16.mxu1 %v2809_v40  ;;  %v2892_v38 = vld [vmem:[%s3007_s30 + $0x218] ss:$12 sps:$4 sm:$0xff]   ;;  %v2893_v39 = vld [vmem:[%s3007_s30 + $0x1c8] ss:$12 sps:$4 sm:$0xff]   ;;  %v2894_v40 = vld [vmem:[%s3007_s30 + $0x230] ss:$12 sps:$4 sm:$0xff]  }
  0x61   : > { %2638 = vmatpush3.bf16.msra.mxu1 %v2827_v41  ;;  %v2895_v41 = vld [vmem:[%s3007_s30 + $0x1e4] ss:$12 sps:$4 sm:$0xff]  }
  0x62   : > { %2639 = vmatprep.subr.bf16.mxu1 %v2834_v42 }
  0x65   : > { %2640 = vmatpush3.bf16.msra.mxu1 %v2834_v42  ;;  %v2897_v42 = vld [vmem:[%s3007_s30 + $0x248] ss:$12 sps:$4 sm:$0xff]  }
  0x67   : > { %1133 = vmatmul.mubr.bf16.gmra.mrb[16].mxu0 %v2811_v43  ;;  %1325 = vmatmul.mubr.bf16.gmra.mrb[16].mxu1 %v2812_v44  ;;  %v2898_v43 = vld [vmem:[%s3007_s30 + $0x1e0] ss:$12 sps:$4 sm:$0xff]  }
  0x68   : > { %1140 = vmatprep.mubr.bf16.mxu0 %v2814_v45  ;;  %1332 = vmatprep.mubr.bf16.mxu1 %v2816_v46  ;;  %v2899_v44 = vld [vmem:[%s3007_s30 + $0x260] ss:$12 sps:$4 sm:$0xff]   ;;  %v2900_v45 = vld [vmem:[%s3007_s30 + $0x1fc] ss:$12 sps:$4 sm:$0xff]   ;;  %v2902_v46 = vld [vmem:[%s3007_s30 + $0x278] ss:$12 sps:$4 sm:$0xff]  }
  0x6f   : > { %1141 = vmatmul.mubr.bf16.gmra.mrb[20].mxu0 %v2818_v47  ;;  %1333 = vmatmul.mubr.bf16.gmra.mrb[20].mxu1 %v2819_v48  ;;  %v2903_v47 = vld [vmem:[%s3007_s30 + $0x1f8] ss:$12 sps:$4 sm:$0xff]   ;;  %v2904_v48 = vld [vmem:[%s3007_s30 + $0x290] ss:$12 sps:$4 sm:$0xff]  }
  0x70   : > { %1148 = vmatprep.mubr.bf16.mxu0 %v2821_v49  ;;  %1340 = vmatprep.mubr.bf16.mxu1 %v2823_v50  ;;  %v2905_v49 = vld [vmem:[%s3007_s30 + $0x214] ss:$12 sps:$4 sm:$0xff]  }
  0x71   : > { %v2907_v50 = vld [vmem:[%s3007_s30 + $0x2a8] ss:$12 sps:$4 sm:$0xff]  }
  0x77   : > { %1149 = vmatmul.mubr.bf16.gmra.mrb[24].mxu0 %v2825_v51  ;;  %1341 = vmatmul.mubr.bf16.gmra.mrb[24].mxu1 %v2826_v52  ;;  %v2908_v51 = vld [vmem:[%s3007_s30 + $0x210] ss:$12 sps:$4 sm:$0xff]   ;;  %v2909_v52 = vld [vmem:[%s3007_s30 + $0x2c0] ss:$12 sps:$4 sm:$0xff]  }
  0x78   : > { %1156 = vmatprep.mubr.bf16.mxu0 %v2828_v53  ;;  %1348 = vmatprep.mubr.bf16.mxu1 %v2830_v54  ;;  %v2910_v53 = vld [vmem:[%s3007_s30 + $0x22c] ss:$12 sps:$4 sm:$0xff]  }
  0x79   : > { %v2912_v54 = vld [vmem:[%s3007_s30 + $0x2d8] ss:$12 sps:$4 sm:$0xff]  }
  0x7f   : > { %1157 = vmatmul.mubr.bf16.gmra.mrb[28].mxu0 %v2832_v55  ;;  %1349 = vmatmul.mubr.bf16.gmra.mrb[28].mxu1 %v2833_v56  ;;  %v2913_v55 = vld [vmem:[%s3007_s30 + $0x228] ss:$12 sps:$4 sm:$0xff]   ;;  %v2914_v56 = vld [vmem:[%s3007_s30 + $0x2f0] ss:$12 sps:$4 sm:$0xff]  }
  0x80   : > { %1164 = vmatprep.mubr.bf16.mxu0 %v2835_v57  ;;  %2641 = vmatprep.mubr.bf16.mxu1 %v2837_v58 }
  0x87   : > { %1165 = vmatmul.mubr.bf16.gmra.mrb[32].mxu0 %v2838_v59  ;;  %2642 = vmatmul.mubr.bf16.vlgmr.msra.gmra.mrb[32].mxu1 %v2839_v60 }
  0x88   : > { %1172 = vmatprep.mubr.bf16.mxu0 %v2840_v61  ;;  %2645 = vmatprep.mubr.bf16.mxu1 %v2842_v62 }
  0x8f   : > { %1173 = vmatmul.mubr.bf16.gmra.mrb[36].mxu0 %v2843_v63  ;;  %2646 = vmatmul.mubr.bf16.gmra.mrb[36].mxu1 %v2844_v0 }
  0x90   : > { %1180 = vmatprep.mubr.bf16.mxu0 %v2845_v1  ;;  %2649 = vmatprep.mubr.bf16.mxu1 %v2847_v2 }
  0x97   : > { %1181 = vmatmul.mubr.bf16.gmra.mrb[40].mxu0 %v2848_v3  ;;  %2650 = vmatmul.mubr.bf16.gmra.mrb[40].mxu1 %v2849_v4 }
  0x98   : > { %1188 = vmatprep.mubr.bf16.mxu0 %v2850_v5  ;;  %2653 = vmatprep.mubr.bf16.mxu1 %v2852_v6 }
  0x9f   : > { %1189 = vmatmul.mubr.bf16.gmra.mrb[44].mxu0 %v2853_v7  ;;  %2654 = vmatmul.mubr.bf16.gmra.mrb[44].mxu1 %v2854_v8 }
  0xa0   : > { %1196 = vmatprep.mubr.bf16.mxu0 %v2855_v9  ;;  %2657 = vmatprep.mubr.bf16.mxu1 %v2857_v10 }
  0xa7   : > { %1197 = vmatmul.mubr.bf16.gmra.mrb[48].mxu0 %v2858_v11  ;;  %2658 = vmatmul.mubr.bf16.gmra.mrb[48].mxu1 %v2859_v12 }
  0xa8   : > { %1204 = vmatprep.mubr.bf16.mxu0 %v2860_v13  ;;  %2661 = vmatprep.mubr.bf16.mxu1 %v2862_v14 }
  0xaf   : > { %1205 = vmatmul.mubr.bf16.gmra.mrb[52].mxu0 %v2863_v15  ;;  %2662 = vmatmul.mubr.bf16.gmra.mrb[52].mxu1 %v2864_v16 }
  0xb0   : > { %1212 = vmatprep.mubr.bf16.mxu0 %v2865_v17  ;;  %2665 = vmatprep.mubr.bf16.mxu1 %v2867_v18 }
  0xb7   : > { %1213 = vmatmul.mubr.bf16.gmra.mrb[56].mxu0 %v2868_v19  ;;  %2666 = vmatmul.mubr.bf16.gmra.mrb[56].mxu1 %v2869_v20 }
  0xb8   : > { %1220 = vmatprep.mubr.bf16.mxu0 %v2870_v21  ;;  %2669 = vmatprep.mubr.bf16.mxu1 %v2872_v22 }
  0xbf   : > { %1221 = vmatmul.mubr.bf16.gmra.mrb[60].mxu0 %v2873_v23  ;;  %2670 = vmatmul.mubr.bf16.gmra.mrb[60].mxu1 %v2874_v24 }
  0xc0   : > { %1228 = vmatprep.mubr.bf16.mxu0 %v2875_v25  ;;  %2673 = vmatprep.mubr.bf16.mxu1 %v2877_v26 }
  0xc7   : > { %1229 = vmatmul.mubr.bf16.gmra.mrb[64].mxu0 %v2878_v27  ;;  %2674 = vmatmul.mubr.bf16.gmra.mrb[64].mxu1 %v2879_v28 }
  0xc8   : > { %1236 = vmatprep.mubr.bf16.mxu0 %v2880_v29  ;;  %2677 = vmatprep.mubr.bf16.mxu1 %v2882_v30 }
  0xcf   : > { %1237 = vmatmul.mubr.bf16.gmra.mrb[68].mxu0 %v2883_v31  ;;  %2678 = vmatmul.mubr.bf16.gmra.mrb[68].mxu1 %v2884_v32 }
  0xd0   : > { %1244 = vmatprep.mubr.bf16.mxu0 %v2885_v33  ;;  %2681 = vmatprep.mubr.bf16.mxu1 %v2887_v34 }
  0xd7   : > { %1245 = vmatmul.mubr.bf16.gmra.mrb[72].mxu0 %v2888_v35  ;;  %2682 = vmatmul.mubr.bf16.gmra.mrb[72].mxu1 %v2889_v36 }
  0xd8   : > { %1252 = vmatprep.mubr.bf16.mxu0 %v2890_v37  ;;  %2685 = vmatprep.mubr.bf16.mxu1 %v2892_v38 }
  0xdf   : > { %1253 = vmatmul.mubr.bf16.gmra.mrb[76].mxu0 %v2893_v39  ;;  %2686 = vmatmul.mubr.bf16.gmra.mrb[76].mxu1 %v2894_v40 }
  0xe0   : > { %1260 = vmatprep.mubr.bf16.mxu0 %v2895_v41  ;;  %2689 = vmatprep.mubr.bf16.mxu1 %v2897_v42 }
  0xe7   : > { %1261 = vmatmul.mubr.bf16.gmra.mrb[80].mxu0 %v2898_v43  ;;  %2690 = vmatmul.mubr.bf16.gmra.mrb[80].mxu1 %v2899_v44 }
  0xe8   : > { %1268 = vmatprep.mubr.bf16.mxu0 %v2900_v45  ;;  %2693 = vmatprep.mubr.bf16.mxu1 %v2902_v46 }
  0xef   : > { %1269 = vmatmul.mubr.bf16.gmra.mrb[84].mxu0 %v2903_v47  ;;  %2694 = vmatmul.mubr.bf16.gmra.mrb[84].mxu1 %v2904_v48 }
  0xf0   : > { %1276 = vmatprep.mubr.bf16.mxu0 %v2905_v49  ;;  %2697 = vmatprep.mubr.bf16.mxu1 %v2907_v50 }
  0xf7   : > { %1277 = vmatmul.mubr.bf16.gmra.mrb[88].mxu0 %v2908_v51  ;;  %2698 = vmatmul.mubr.bf16.gmra.mrb[88].mxu1 %v2909_v52 }
  0xf8   : > { %1284 = vmatprep.mubr.bf16.mxu0 %v2910_v53  ;;  %2701 = vmatprep.mubr.bf16.mxu1 %v2912_v54 }
  0xff   : > { %1285 = vmatmul.mubr.bf16.gmra.mrb[92].mxu0 %v2913_v55  ;;  %2702 = vmatmul.mubr.bf16.gmra.mrb[92].mxu1 %v2914_v56 }
 0x11a   : > { %v3186_v57 = vpop.f32.mrb[0].mxu0  ;;  %v3188_v58 = vpop.f32.mrb[0].mxu1 }
 0x11b   : > { %v1104_v59 = vpop.f32.mrb[1].mxu0  ;;  %v1296_v60 = vpop.f32.mrb[1].mxu1 }
 0x11c   : > { %v3190_v61 = vpop.f32.mrb[2].mxu0  ;;  %v3192_v62 = vpop.f32.mrb[2].mxu1  ;;  %v3249_v59 = vld [vmem:[%s3430_s2] ss:$0 sm:$0xff] }
 0x11d   : > { %v1107_v63 = vpop.f32.mrb[3].mxu0  ;;  %v1299_v0 = vpop.f32.mrb[3].mxu1 }
 0x11e   : > { %v1103_v63 = vadd.f32 %v3249_v59, %v3186_v57 }
 0x122   : > { %v1110_v1 = vpop.f32.mrb[4].mxu0  ;;  %v3194_v2 = vpop.f32.mrb[4].mxu1 }
 0x123   : > { %v1112_v3 = vpop.f32.mrb[5].mxu0  ;;  %v1304_v4 = vpop.f32.mrb[5].mxu1  ;;  %v1111_v60 = vadd.f32 %v3249_v59, %v1110_v1 }
 0x124   : > { %v1113_v5 = vpop.f32.mrb[6].mxu0  ;;  %v3196_v6 = vpop.f32.mrb[6].mxu1 }
 0x125   : > { %v1115_v7 = vpop.f32.mrb[7].mxu0  ;;  %v1307_v8 = vpop.f32.mrb[7].mxu1  ;;  %v1114_v4 = vadd.f32 %v3249_v59, %v1113_v5 }
 0x12a   : > { %v3198_v9 = vpop.f32.mrb[8].mxu0  ;;  %v3200_v10 = vpop.f32.mrb[8].mxu1 }
 0x12b   : > { %v1120_v11 = vpop.f32.mrb[9].mxu0  ;;  %v1312_v12 = vpop.f32.mrb[9].mxu1 }
 0x12c   : > { %v3202_v13 = vpop.f32.mrb[10].mxu0  ;;  %v3204_v14 = vpop.f32.mrb[10].mxu1  ;;  %v1106_v12 = vadd.f32 %v3249_v59, %v3190_v61 }
 0x12d   : > { %v1123_v15 = vpop.f32.mrb[11].mxu0  ;;  %v1315_v16 = vpop.f32.mrb[11].mxu1 }
 0x132   : > { %v3206_v17 = vpop.f32.mrb[12].mxu0  ;;  %v3208_v18 = vpop.f32.mrb[12].mxu1 }
 0x133   : > { %v1128_v19 = vpop.f32.mrb[13].mxu0  ;;  %v1320_v20 = vpop.f32.mrb[13].mxu1  ;;  %v1127_v5 = vadd.f32 %v3249_v59, %v3206_v17 }
 0x134   : > { %v3210_v21 = vpop.f32.mrb[14].mxu0  ;;  %v3212_v22 = vpop.f32.mrb[14].mxu1 }
 0x135   : > { %v1131_v23 = vpop.f32.mrb[15].mxu0  ;;  %v1323_v24 = vpop.f32.mrb[15].mxu1 }
 0x13a   : > { %v3214_v25 = vpop.f32.mrb[16].mxu0  ;;  %v3216_v26 = vpop.f32.mrb[16].mxu1 }
 0x13b   : > { %v1136_v27 = vpop.f32.mrb[17].mxu0  ;;  %v1328_v28 = vpop.f32.mrb[17].mxu1 }
 0x13c   : > { %v3218_v29 = vpop.f32.mrb[18].mxu0  ;;  %v3220_v30 = vpop.f32.mrb[18].mxu1 }
 0x13d   : > { %v1139_v31 = vpop.f32.mrb[19].mxu0  ;;  %v1331_v32 = vpop.f32.mrb[19].mxu1 }
 0x13e   : > { %v1119_v32 = vadd.f32 %v3249_v59, %v3198_v9 }
 0x142   : > { %v3222_v33 = vpop.f32.mrb[20].mxu0  ;;  %v3224_v34 = vpop.f32.mrb[20].mxu1 }
 0x143   : > { %v1144_v35 = vpop.f32.mrb[21].mxu0  ;;  %v1336_v36 = vpop.f32.mrb[21].mxu1 }
 0x144   : > { %v3226_v37 = vpop.f32.mrb[22].mxu0  ;;  %v3228_v38 = vpop.f32.mrb[22].mxu1 }
 0x145   : > { %v1147_v39 = vpop.f32.mrb[23].mxu0  ;;  %v1339_v40 = vpop.f32.mrb[23].mxu1 }
 0x146   : > { %v1130_v40 = vadd.f32 %v3249_v59, %v3210_v21 }
 0x14a   : > { %v3230_v41 = vpop.f32.mrb[24].mxu0  ;;  %v3232_v42 = vpop.f32.mrb[24].mxu1 }
 0x14b   : > { %v1152_v43 = vpop.f32.mrb[25].mxu0  ;;  %v1344_v44 = vpop.f32.mrb[25].mxu1 }
 0x14c   : > { %v3234_v45 = vpop.f32.mrb[26].mxu0  ;;  %v3236_v46 = vpop.f32.mrb[26].mxu1 }
 0x14d   : > { %v1155_v47 = vpop.f32.mrb[27].mxu0  ;;  %v1347_v48 = vpop.f32.mrb[27].mxu1 }
 0x14e   : > { %v1122_v48 = vadd.f32 %v3249_v59, %v3202_v13  ;;  %v1135_v13 = vadd.f32 %v3249_v59, %v3214_v25 }
 0x152   : > { %v3238_v49 = vpop.f32.mrb[28].mxu0  ;;  %v3240_v50 = vpop.f32.mrb[28].mxu1 }
 0x153   : > { %v1160_v51 = vpop.f32.mrb[29].mxu0  ;;  %v1352_v52 = vpop.f32.mrb[29].mxu1 }
 0x154   : > { %v3242_v53 = vpop.f32.mrb[30].mxu0  ;;  %v3244_v54 = vpop.f32.mrb[30].mxu1 }
 0x155   : > { %v1163_v55 = vpop.f32.mrb[31].mxu0  ;;  %v1355_v56 = vpop.f32.mrb[31].mxu1 }
 0x15a   : > { %v3254_v0 = vpop.f32.mrb[32].mxu0  ;;  %v2643_v3 = vpop.f32.mrb[32].mxu1 }
 0x15b   : > { %v1400_v7 = vadd.f32 %v2643_v3, %v1111_v60  ;;  %v1168_v8 = vpop.f32.mrb[33].mxu0  ;;  %v1391_v11 = vpop.f32.mrb[33].mxu1 }
 0x15c   : > { %v1392_v15 = vadd.f32 %v1391_v11, %v1103_v63  ;;  %v3259_v16 = vpop.f32.mrb[34].mxu0  ;;  %v2644_v19 = vpop.f32.mrb[34].mxu1 }
 0x15d   : > { %v1403_v1 = vadd.f32 %v2644_v19, %v1114_v4  ;;  %v1171_v20 = vpop.f32.mrb[35].mxu0  ;;  %v1394_v23 = vpop.f32.mrb[35].mxu1  ;;  %v1648_v24 = vmax.f32 %v1400_v7, 0.0  ;;  %v1143_v7 = vadd.f32 %v3249_v59, %v3222_v33  ;;  %v1146_v19 = vadd.f32 %v3249_v59, %v3226_v37 }
 0x15e   : > { %v1395_v57 = vadd.f32 %v1394_v23, %v1106_v12  ;;  %v1646_v28 = vmax.f32 %v1392_v15, 0.0 }
 0x15f   : > { %v1649_v27 = vmax.f32 %v1403_v1, 0.0 }
 0x160   : > { %v1647_v61 = vmax.f32 %v1395_v57, 0.0  ;;  %v1138_v57 = vadd.f32 %v3249_v59, %v3218_v29  ;;  %v1151_v29 = vadd.f32 %v3249_v59, %v3230_v41 }
 0x161   : > { %v2402_v31 = vpack.c.bf16 %v1649_v27, %v1648_v24 }
 0x162   : > { %v2397_v35 = vpack.c.bf16 %v1647_v61, %v1646_v28  ;;  %v3271_v36 = vpop.f32.mrb[36].mxu0  ;;  %v2647_v39 = vpop.f32.mrb[36].mxu1 }
 0x163   : > { %2554 = vst [vmem:[%s3265_s28 + $0x8] sm:$0xff] %v2402_v31   ;;  %v1416_v43 = vadd.f32 %v2647_v39, %v1127_v5  ;;  %v1176_v44 = vpop.f32.mrb[37].mxu0  ;;  %v1407_v47 = vpop.f32.mrb[37].mxu1  ;;  %v1159_v39 = vadd.f32 %v3249_v59, %v3238_v49 }
 0x164   : > { %2398 = vst [vmem:[%s3265_s28] sm:$0xff] %v2397_v35   ;;  %v1408_v17 = vadd.f32 %v1407_v47, %v1119_v32  ;;  %v3279_v51 = vpop.f32.mrb[38].mxu0  ;;  %v2648_v52 = vpop.f32.mrb[38].mxu1 }
 0x165   : > { %v1419_v9 = vadd.f32 %v2648_v52, %v1130_v40  ;;  %v1179_v55 = vpop.f32.mrb[39].mxu0  ;;  %v1410_v56 = vpop.f32.mrb[39].mxu1  ;;  %v1652_v63 = vmax.f32 %v1416_v43, 0.0 }
 0x166   : > { %v1411_v60 = vadd.f32 %v1410_v56, %v1122_v48  ;;  %v1650_v3 = vmax.f32 %v1408_v17, 0.0  ;;  %v1162_v48 = vadd.f32 %v3249_v59, %v3242_v53  ;;  %v1154_v55 = vadd.f32 %v3249_v59, %v3234_v45 }
 0x167   : > { %v1653_v21 = vmax.f32 %v1419_v9, 0.0  ;;  %v1167_v45 = vadd.f32 %v3249_v59, %v3254_v0 }
 0x168   : > { %v1651_v4 = vmax.f32 %v1411_v60, 0.0 }
 0x169   : > { %v2412_v8 = vpack.c.bf16 %v1653_v21, %v1652_v63 }
 0x16a   : > { %v2407_v11 = vpack.c.bf16 %v1651_v4, %v1650_v3  ;;  %v3285_v12 = vpop.f32.mrb[40].mxu0  ;;  %v2651_v15 = vpop.f32.mrb[40].mxu1 }
 0x16b   : > { %2556 = vst [vmem:[%s3265_s28 + $0x18] sm:$0xff] %v2412_v8   ;;  %v1432_v1 = vadd.f32 %v2651_v15, %v1143_v7  ;;  %v1184_v20 = vpop.f32.mrb[41].mxu0  ;;  %v1423_v23 = vpop.f32.mrb[41].mxu1 }
 0x16c   : > { %2555 = vst [vmem:[%s3265_s28 + $0x10] sm:$0xff] %v2407_v11   ;;  %v1424_v33 = vadd.f32 %v1423_v23, %v1135_v13  ;;  %v3293_v24 = vpop.f32.mrb[42].mxu0  ;;  %v2652_v27 = vpop.f32.mrb[42].mxu1  ;;  %v1175_v13 = vadd.f32 %v3249_v59, %v3271_v36  ;;  %v1178_v20 = vadd.f32 %v3249_v59, %v3279_v51 }
 0x16d   : > { %v1435_v25 = vadd.f32 %v2652_v27, %v1146_v19  ;;  %v1187_v28 = vpop.f32.mrb[43].mxu0  ;;  %v1426_v61 = vpop.f32.mrb[43].mxu1  ;;  %v1656_v31 = vmax.f32 %v1432_v1, 0.0  ;;  %v1170_v27 = vadd.f32 %v3249_v59, %v3259_v16  ;;  %v1183_v16 = vadd.f32 %v3249_v59, %v3285_v12 }
 0x16e   : > { %v1427_v5 = vadd.f32 %v1426_v61, %v1138_v57  ;;  %v1654_v32 = vmax.f32 %v1424_v33, 0.0 }
 0x16f   : > { %v1657_v37 = vmax.f32 %v1435_v25, 0.0 }
 0x170   : > { %v1655_v35 = vmax.f32 %v1427_v5, 0.0 }
 0x171   : > { %v2422_v40 = vpack.c.bf16 %v1657_v37, %v1656_v31 }
 0x172   : > { %v2417_v43 = vpack.c.bf16 %v1655_v35, %v1654_v32  ;;  %v1190_v44 = vpop.f32.mrb[44].mxu0  ;;  %v2655_v47 = vpop.f32.mrb[44].mxu1 }
 0x173   : > { %2558 = vst [vmem:[%s3265_s28 + $0x28] sm:$0xff] %v2422_v40   ;;  %v1448_v17 = vadd.f32 %v2655_v47, %v1159_v39  ;;  %v1192_v52 = vpop.f32.mrb[45].mxu0  ;;  %v1439_v9 = vpop.f32.mrb[45].mxu1  ;;  %v1191_v39 = vadd.f32 %v3249_v59, %v1190_v44 }
 0x174   : > { %2557 = vst [vmem:[%s3265_s28 + $0x20] sm:$0xff] %v2417_v43   ;;  %v1440_v56 = vadd.f32 %v1439_v9, %v1151_v29  ;;  %v1193_v49 = vpop.f32.mrb[46].mxu0  ;;  %v2656_v60 = vpop.f32.mrb[46].mxu1 }
 0x175   : > { %v1451_v63 = vadd.f32 %v2656_v60, %v1162_v48  ;;  %v1195_v41 = vpop.f32.mrb[47].mxu0  ;;  %v1442_v21 = vpop.f32.mrb[47].mxu1  ;;  %v1660_v4 = vmax.f32 %v1448_v17, 0.0  ;;  %v1194_v48 = vadd.f32 %v3249_v59, %v1193_v49 }
 0x176   : > { %v1443_v3 = vadd.f32 %v1442_v21, %v1154_v55  ;;  %v1658_v53 = vmax.f32 %v1440_v56, 0.0  ;;  %v1186_v55 = vadd.f32 %v3249_v59, %v3293_v24 }
 0x177   : > { %v1661_v7 = vmax.f32 %v1451_v63, 0.0 }
 0x178   : > { %v1659_v8 = vmax.f32 %v1443_v3, 0.0 }
 0x179   : > { %v2432_v11 = vpack.c.bf16 %v1661_v7, %v1660_v4 }
 0x17a   : > { %v2427_v15 = vpack.c.bf16 %v1659_v8, %v1658_v53  ;;  %v1198_v19 = vpop.f32.mrb[48].mxu0  ;;  %v2659_v1 = vpop.f32.mrb[48].mxu1 }
 0x17b   : > { %2560 = vst [vmem:[%s3265_s28 + $0x38] sm:$0xff] %v2432_v11   ;;  %v1464_v23 = vadd.f32 %v2659_v1, %v1175_v13  ;;  %v1200_v57 = vpop.f32.mrb[49].mxu0  ;;  %v1455_v33 = vpop.f32.mrb[49].mxu1  ;;  %v1199_v13 = vadd.f32 %v3249_v59, %v1198_v19 }
 0x17c   : > { %2559 = vst [vmem:[%s3265_s28 + $0x30] sm:$0xff] %v2427_v15   ;;  %v1456_v25 = vadd.f32 %v1455_v33, %v1167_v45  ;;  %v1201_v36 = vpop.f32.mrb[50].mxu0  ;;  %v2660_v28 = vpop.f32.mrb[50].mxu1 }
 0x17d   : > { %v1467_v61 = vadd.f32 %v2660_v28, %v1178_v20  ;;  %v1203_v0 = vpop.f32.mrb[51].mxu0  ;;  %v1458_v5 = vpop.f32.mrb[51].mxu1  ;;  %v1664_v37 = vmax.f32 %v1464_v23, 0.0  ;;  %v1202_v57 = vadd.f32 %v3249_v59, %v1201_v36 }
 0x17e   : > { %v1459_v31 = vadd.f32 %v1458_v5, %v1170_v27  ;;  %v1662_v51 = vmax.f32 %v1456_v25, 0.0 }
 0x17f   : > { %v1665_v32 = vmax.f32 %v1467_v61, 0.0 }
 0x180   : > { %v1663_v35 = vmax.f32 %v1459_v31, 0.0 }
 0x181   : > { %v2442_v40 = vpack.c.bf16 %v1665_v32, %v1664_v37 }
 0x182   : > { %v2437_v29 = vpack.c.bf16 %v1663_v35, %v1662_v51  ;;  %v1206_v43 = vpop.f32.mrb[52].mxu0  ;;  %v2663_v47 = vpop.f32.mrb[52].mxu1 }
 0x183   : > { %2562 = vst [vmem:[%s3265_s28 + $0x48] sm:$0xff] %v2442_v40   ;;  %v1480_v17 = vadd.f32 %v2663_v47, %v1191_v39  ;;  %v1208_v52 = vpop.f32.mrb[53].mxu0  ;;  %v1471_v9 = vpop.f32.mrb[53].mxu1  ;;  %v1207_v53 = vadd.f32 %v3249_v59, %v1206_v43 }
 0x184   : > { %2561 = vst [vmem:[%s3265_s28 + $0x40] sm:$0xff] %v2437_v29   ;;  %v1472_v56 = vadd.f32 %v1471_v9, %v1183_v16  ;;  %v1209_v60 = vpop.f32.mrb[54].mxu0  ;;  %v2664_v44 = vpop.f32.mrb[54].mxu1 }
 0x185   : > { %v1483_v63 = vadd.f32 %v2664_v44, %v1194_v48  ;;  %v1211_v41 = vpop.f32.mrb[55].mxu0  ;;  %v1474_v12 = vpop.f32.mrb[55].mxu1  ;;  %v1668_v3 = vmax.f32 %v1480_v17, 0.0  ;;  %v1210_v15 = vadd.f32 %v3249_v59, %v1209_v60 }
 0x186   : > { %v1475_v21 = vadd.f32 %v1474_v12, %v1186_v55  ;;  %v1666_v49 = vmax.f32 %v1472_v56, 0.0 }
 0x187   : > { %v1669_v4 = vmax.f32 %v1483_v63, 0.0 }
 0x188   : > { %v1667_v7 = vmax.f32 %v1475_v21, 0.0 }
 0x189   : > { %v2452_v8 = vpack.c.bf16 %v1669_v4, %v1668_v3 }
 0x18a   : > { %v2447_v24 = vpack.c.bf16 %v1667_v7, %v1666_v49  ;;  %v1214_v11 = vpop.f32.mrb[56].mxu0  ;;  %v2667_v45 = vpop.f32.mrb[56].mxu1 }
 0x18b   : > { %2564 = vst [vmem:[%s3265_s28 + $0x58] sm:$0xff] %v2452_v8   ;;  %v1496_v1 = vadd.f32 %v2667_v45, %v1207_v53  ;;  %v1216_v20 = vpop.f32.mrb[57].mxu0  ;;  %v1487_v23 = vpop.f32.mrb[57].mxu1  ;;  %v1215_v35 = vadd.f32 %v3249_v59, %v1214_v11 }
 0x18c   : > { %2563 = vst [vmem:[%s3265_s28 + $0x50] sm:$0xff] %v2447_v24   ;;  %v1488_v33 = vadd.f32 %v1487_v23, %v1199_v13  ;;  %v1217_v27 = vpop.f32.mrb[58].mxu0  ;;  %v2668_v25 = vpop.f32.mrb[58].mxu1 }
 0x18d   : > { %v1499_v28 = vadd.f32 %v2668_v25, %v1210_v15  ;;  %v1219_v61 = vpop.f32.mrb[59].mxu0  ;;  %v1490_v0 = vpop.f32.mrb[59].mxu1  ;;  %v1672_v5 = vmax.f32 %v1496_v1, 0.0  ;;  %v1218_v47 = vadd.f32 %v3249_v59, %v1217_v27 }
 0x18e   : > { %v1491_v19 = vadd.f32 %v1490_v0, %v1202_v57  ;;  %v1670_v37 = vmax.f32 %v1488_v33, 0.0 }
 0x18f   : > { %v1673_v31 = vmax.f32 %v1499_v28, 0.0 }
 0x190   : > { %v1671_v32 = vmax.f32 %v1491_v19, 0.0 }
 0x191   : > { %v2462_v51 = vpack.c.bf16 %v1673_v31, %v1672_v5 }
 0x192   : > { %v2457_v39 = vpack.c.bf16 %v1671_v32, %v1670_v37  ;;  %v1222_v40 = vpop.f32.mrb[60].mxu0  ;;  %v2671_v36 = vpop.f32.mrb[60].mxu1 }
 0x193   : > { %2566 = vst [vmem:[%s3265_s28 + $0x68] sm:$0xff] %v2462_v51   ;;  %v1223_v16 = vadd.f32 %v3249_v59, %v1222_v40  ;;  %v1224_v29 = vpop.f32.mrb[61].mxu0  ;;  %v1503_v43 = vpop.f32.mrb[61].mxu1 }
 0x194   : > { %2565 = vst [vmem:[%s3265_s28 + $0x60] sm:$0xff] %v2457_v39   ;;  %v1504_v48 = vadd.f32 %v1503_v43, %v1215_v35  ;;  %v1225_v17 = vpop.f32.mrb[62].mxu0  ;;  %v2672_v52 = vpop.f32.mrb[62].mxu1 }
 0x195   : > { %v1512_v9 = vadd.f32 %v2671_v36, %v1223_v16  ;;  %v1226_v55 = vadd.f32 %v3249_v59, %v1225_v17  ;;  %v1227_v56 = vpop.f32.mrb[63].mxu0  ;;  %v1506_v60 = vpop.f32.mrb[63].mxu1 }
 0x196   : > { %v1507_v44 = vadd.f32 %v1506_v60, %v1218_v47  ;;  %v1674_v41 = vmax.f32 %v1504_v48, 0.0 }
 0x197   : > { %v1515_v63 = vadd.f32 %v2672_v52, %v1226_v55  ;;  %v1676_v21 = vmax.f32 %v1512_v9, 0.0 }
 0x198   : > { %v1675_v12 = vmax.f32 %v1507_v44, 0.0 }
 0x199   : > { %v1677_v3 = vmax.f32 %v1515_v63, 0.0 }
 0x19a   : > { %v2467_v4 = vpack.c.bf16 %v1675_v12, %v1674_v41  ;;  %v1230_v49 = vpop.f32.mrb[64].mxu0  ;;  %v2675_v7 = vpop.f32.mrb[64].mxu1 }
 0x19b   : > { %v2472_v53 = vpack.c.bf16 %v1677_v3, %v1676_v21  ;;  %v1231_v8 = vadd.f32 %v3249_v59, %v1230_v49  ;;  %v1232_v13 = vpop.f32.mrb[65].mxu0  ;;  %v1519_v24 = vpop.f32.mrb[65].mxu1 }
 0x19c   : > { %2567 = vst [vmem:[%s3265_s28 + $0x70] sm:$0xff] %v2467_v4   ;;  %v1233_v11 = vpop.f32.mrb[66].mxu0  ;;  %v2676_v45 = vpop.f32.mrb[66].mxu1 }
 0x19d   : > { %2568 = vst [vmem:[%s3265_s28 + $0x78] sm:$0xff] %v2472_v53   ;;  %v1520_v15 = vadd.f32 %v1519_v24, %v1231_v8  ;;  %v1234_v1 = vadd.f32 %v3249_v59, %v1233_v11  ;;  %v1235_v20 = vpop.f32.mrb[67].mxu0  ;;  %v1522_v23 = vpop.f32.mrb[67].mxu1 }
 0x19f   : > { %v1523_v57 = vadd.f32 %v1522_v23, %v1234_v1  ;;  %v1678_v33 = vmax.f32 %v1520_v15, 0.0  ;;  %v1303_v23 = vadd.f32 %v3249_v59, %v3194_v2  ;;  %v1298_v2 = vadd.f32 %v3249_v59, %v3192_v62 }
 0x1a0   : > { %v1319_v62 = vadd.f32 %v3249_v59, %v3208_v18 }
 0x1a1   : > { %v1679_v27 = vmax.f32 %v1523_v57, 0.0 }
 0x1a2   : > { %v1238_v25 = vpop.f32.mrb[68].mxu0  ;;  %v2679_v28 = vpop.f32.mrb[68].mxu1 }
 0x1a3   : > { %v2477_v61 = vpack.c.bf16 %v1679_v27, %v1678_v33  ;;  %v1239_v0 = vadd.f32 %v3249_v59, %v1238_v25  ;;  %v1240_v19 = vpop.f32.mrb[69].mxu0  ;;  %v1535_v5 = vpop.f32.mrb[69].mxu1  ;;  %v1295_v27 = vadd.f32 %v3249_v59, %v3188_v58 }
 0x1a4   : > { %v1241_v31 = vpop.f32.mrb[70].mxu0  ;;  %v2680_v37 = vpop.f32.mrb[70].mxu1 }
 0x1a5   : > { %2569 = vst [vmem:[%s3265_s28 + $0x80] sm:$0xff] %v2477_v61   ;;  %v1528_v32 = vadd.f32 %v2675_v7, %v1239_v0  ;;  %v1242_v51 = vadd.f32 %v3249_v59, %v1241_v31  ;;  %v1243_v35 = vpop.f32.mrb[71].mxu0  ;;  %v1538_v39 = vpop.f32.mrb[71].mxu1 }
 0x1a7   : > { %v1531_v40 = vadd.f32 %v2676_v45, %v1242_v51  ;;  %v1680_v36 = vmax.f32 %v1528_v32, 0.0 }
 0x1a9   : > { %v1681_v16 = vmax.f32 %v1531_v40, 0.0 }
 0x1aa   : > { %v1246_v29 = vpop.f32.mrb[72].mxu0  ;;  %v3342_v43 = vpop.f32.mrb[72].mxu1 }
 0x1ab   : > { %v2482_v47 = vpack.c.bf16 %v1681_v16, %v1680_v36  ;;  %v1247_v48 = vadd.f32 %v3249_v59, %v1246_v29  ;;  %v1248_v17 = vpop.f32.mrb[73].mxu0  ;;  %v1551_v52 = vpop.f32.mrb[73].mxu1 }
 0x1ac   : > { %v1249_v9 = vpop.f32.mrb[74].mxu0  ;;  %v3345_v55 = vpop.f32.mrb[74].mxu1 }
 0x1ad   : > { %2570 = vst [vmem:[%s3265_s28 + $0x88] sm:$0xff] %v2482_v47   ;;  %v1536_v56 = vadd.f32 %v1535_v5, %v1247_v48  ;;  %v1250_v60 = vadd.f32 %v3249_v59, %v1249_v9  ;;  %v1251_v44 = vpop.f32.mrb[75].mxu0  ;;  %v1554_v63 = vpop.f32.mrb[75].mxu1 }
 0x1af   : > { %v1539_v41 = vadd.f32 %v1538_v39, %v1250_v60  ;;  %v1682_v12 = vmax.f32 %v1536_v56, 0.0 }
 0x1b1   : > { %v1683_v21 = vmax.f32 %v1539_v41, 0.0 }
 0x1b2   : > { %v1254_v3 = vpop.f32.mrb[76].mxu0  ;;  %v3349_v4 = vpop.f32.mrb[76].mxu1 }
 0x1b3   : > { %v2487_v49 = vpack.c.bf16 %v1683_v21, %v1682_v12  ;;  %v1255_v7 = vadd.f32 %v3249_v59, %v1254_v3  ;;  %v1256_v53 = vpop.f32.mrb[77].mxu0  ;;  %v3352_v8 = vpop.f32.mrb[77].mxu1 }
 0x1b4   : > { %v1257_v13 = vpop.f32.mrb[78].mxu0  ;;  %v3354_v24 = vpop.f32.mrb[78].mxu1 }
 0x1b5   : > { %2571 = vst [vmem:[%s3265_s28 + $0x90] sm:$0xff] %v2487_v49   ;;  %v1544_v11 = vadd.f32 %v2679_v28, %v1255_v7  ;;  %v1258_v45 = vadd.f32 %v3249_v59, %v1257_v13  ;;  %v1259_v15 = vpop.f32.mrb[79].mxu0  ;;  %v3358_v1 = vpop.f32.mrb[79].mxu1  ;;  %v1306_v28 = vadd.f32 %v3249_v59, %v3196_v6  ;;  %v1314_v13 = vadd.f32 %v3249_v59, %v3204_v14 }
 0x1b7   : > { %v1547_v20 = vadd.f32 %v2680_v37, %v1258_v45  ;;  %v1684_v57 = vmax.f32 %v1544_v11, 0.0 }
 0x1b9   : > { %v1685_v33 = vmax.f32 %v1547_v20, 0.0 }
 0x1ba   : > { %v1262_v25 = vpop.f32.mrb[80].mxu0  ;;  %v2691_v61 = vpop.f32.mrb[80].mxu1 }
 0x1bb   : > { %v2492_v0 = vpack.c.bf16 %v1685_v33, %v1684_v57  ;;  %v1263_v19 = vadd.f32 %v3249_v59, %v1262_v25  ;;  %v1592_v5 = vadd.f32 %v2691_v61, %v1303_v23  ;;  %v1264_v31 = vpop.f32.mrb[81].mxu0  ;;  %v1583_v37 = vpop.f32.mrb[81].mxu1 }
 0x1bc   : > { %v1584_v32 = vadd.f32 %v1583_v37, %v1295_v27  ;;  %v1265_v51 = vpop.f32.mrb[82].mxu0  ;;  %v2692_v35 = vpop.f32.mrb[82].mxu1  ;;  %v1327_v31 = vadd.f32 %v3249_v59, %v3216_v26 }
 0x1bd   : > { %2572 = vst [vmem:[%s3265_s28 + $0x98] sm:$0xff] %v2492_v0   ;;  %v1552_v39 = vadd.f32 %v1551_v52, %v1263_v19  ;;  %v1266_v58 = vadd.f32 %v3249_v59, %v1265_v51  ;;  %v1595_v40 = vadd.f32 %v2692_v35, %v1306_v28  ;;  %v1267_v36 = vpop.f32.mrb[83].mxu0  ;;  %v1586_v16 = vpop.f32.mrb[83].mxu1  ;;  %v1696_v29 = vmax.f32 %v1592_v5, 0.0 }
 0x1be   : > { %v1587_v6 = vadd.f32 %v1586_v16, %v1298_v2  ;;  %v1694_v17 = vmax.f32 %v1584_v32, 0.0  ;;  %v1311_v52 = vadd.f32 %v3249_v59, %v3200_v10  ;;  %v1335_v0 = vadd.f32 %v3249_v59, %v3224_v34 }
 0x1bf   : > { %v1555_v47 = vadd.f32 %v1554_v63, %v1266_v58  ;;  %v1697_v48 = vmax.f32 %v1595_v40, 0.0  ;;  %v1686_v56 = vmax.f32 %v1552_v39, 0.0  ;;  %v1322_v63 = vadd.f32 %v3249_v59, %v3212_v22 }
 0x1c0   : > { %v1695_v9 = vmax.f32 %v1587_v6, 0.0  ;;  %v1330_v40 = vadd.f32 %v3249_v59, %v3220_v30 }
 0x1c1   : > { %v1687_v60 = vmax.f32 %v1555_v47, 0.0  ;;  %v2522_v44 = vpack.c.bf16 %v1697_v48, %v1696_v29 }
 0x1c2   : > { %v2517_v41 = vpack.c.bf16 %v1695_v9, %v1694_v17  ;;  %v1270_v12 = vpop.f32.mrb[84].mxu0  ;;  %v2695_v21 = vpop.f32.mrb[84].mxu1 }
 0x1c3   : > { %v2497_v3 = vpack.c.bf16 %v1687_v60, %v1686_v56  ;;  %2578 = vst [vmem:[%s3265_s28 + $0xc8] sm:$0xff] %v2522_v44   ;;  %v1271_v49 = vadd.f32 %v3249_v59, %v1270_v12  ;;  %v1608_v7 = vadd.f32 %v2695_v21, %v1319_v62  ;;  %v1272_v18 = vpop.f32.mrb[85].mxu0  ;;  %v1599_v53 = vpop.f32.mrb[85].mxu1  ;;  %v1351_v44 = vadd.f32 %v3249_v59, %v3240_v50 }
 0x1c4   : > { %2577 = vst [vmem:[%s3265_s28 + $0xc0] sm:$0xff] %v2517_v41   ;;  %v1600_v11 = vadd.f32 %v1599_v53, %v1311_v52  ;;  %v1273_v10 = vpop.f32.mrb[86].mxu0  ;;  %v2696_v45 = vpop.f32.mrb[86].mxu1  ;;  %v1343_v12 = vadd.f32 %v3249_v59, %v3232_v42 }
 0x1c5   : > { %2573 = vst [vmem:[%s3265_s28 + $0xa0] sm:$0xff] %v2497_v3   ;;  %v1560_v15 = vadd.f32 %v3342_v43, %v1271_v49  ;;  %v1274_v20 = vadd.f32 %v3249_v59, %v1273_v10  ;;  %v1611_v22 = vadd.f32 %v2696_v45, %v1322_v63  ;;  %v1275_v23 = vpop.f32.mrb[87].mxu0  ;;  %v1602_v57 = vpop.f32.mrb[87].mxu1  ;;  %v1700_v27 = vmax.f32 %v1608_v7, 0.0 }
 0x1c6   : > { %v1603_v33 = vadd.f32 %v1602_v57, %v1314_v13  ;;  %v1698_v28 = vmax.f32 %v1600_v11, 0.0  ;;  %v1346_v13 = vadd.f32 %v3249_v59, %v3236_v46 }
 0x1c7   : > { %v1563_v25 = vadd.f32 %v3345_v55, %v1274_v20  ;;  %v1701_v61 = vmax.f32 %v1611_v22, 0.0  ;;  %v1688_v19 = vmax.f32 %v1560_v15, 0.0  ;;  %v1338_v55 = vadd.f32 %v3249_v59, %v3228_v38 }
 0x1c8   : > { %v1699_v14 = vmax.f32 %v1603_v33, 0.0 }
 0x1c9   : > { %v1689_v5 = vmax.f32 %v1563_v25, 0.0  ;;  %v2532_v43 = vpack.c.bf16 %v1701_v61, %v1700_v27 }
 0x1ca   : > { %v2527_v37 = vpack.c.bf16 %v1699_v14, %v1698_v28  ;;  %v1278_v2 = vpop.f32.mrb[88].mxu0  ;;  %v2699_v32 = vpop.f32.mrb[88].mxu1 }
 0x1cb   : > { %v2502_v51 = vpack.c.bf16 %v1689_v5, %v1688_v19  ;;  %2580 = vst [vmem:[%s3265_s28 + $0xd8] sm:$0xff] %v2532_v43   ;;  %v1279_v35 = vadd.f32 %v3249_v59, %v1278_v2  ;;  %v1624_v39 = vadd.f32 %v2699_v32, %v1335_v0  ;;  %v1280_v34 = vpop.f32.mrb[89].mxu0  ;;  %v1615_v58 = vpop.f32.mrb[89].mxu1 }
 0x1cc   : > { %2579 = vst [vmem:[%s3265_s28 + $0xd0] sm:$0xff] %v2527_v37   ;;  %v1616_v36 = vadd.f32 %v1615_v58, %v1327_v31  ;;  %v1281_v26 = vpop.f32.mrb[90].mxu0  ;;  %v2700_v16 = vpop.f32.mrb[90].mxu1 }
 0x1cd   : > { %2574 = vst [vmem:[%s3265_s28 + $0xa8] sm:$0xff] %v2502_v51   ;;  %v1568_v6 = vadd.f32 %v3352_v8, %v1279_v35  ;;  %v1282_v29 = vadd.f32 %v3249_v59, %v1281_v26  ;;  %v1627_v38 = vadd.f32 %v2700_v16, %v1338_v55  ;;  %v1283_v47 = vpop.f32.mrb[91].mxu0  ;;  %v1618_v48 = vpop.f32.mrb[91].mxu1  ;;  %v1704_v9 = vmax.f32 %v1624_v39, 0.0 }
 0x1ce   : > { %v1619_v17 = vadd.f32 %v1618_v48, %v1330_v40  ;;  %v1702_v60 = vmax.f32 %v1616_v36, 0.0 }
 0x1cf   : > { %v1571_v62 = vadd.f32 %v3358_v1, %v1282_v29  ;;  %v1705_v56 = vmax.f32 %v1627_v38, 0.0  ;;  %v1690_v52 = vmax.f32 %v1568_v6, 0.0  ;;  %v1354_v1 = vadd.f32 %v3249_v59, %v3244_v54 }
 0x1d0   : > { %v1703_v30 = vmax.f32 %v1619_v17, 0.0 }
 0x1d1   : > { %v1691_v41 = vmax.f32 %v1571_v62, 0.0  ;;  %v2542_v8 = vpack.c.bf16 %v1705_v56, %v1704_v9 }
 0x1d2   : > { %v2537_v21 = vpack.c.bf16 %v1703_v30, %v1702_v60  ;;  %v1286_v63 = vpop.f32.mrb[92].mxu0  ;;  %v2703_v3 = vpop.f32.mrb[92].mxu1 }
 0x1d3   : > { %v2507_v49 = vpack.c.bf16 %v1691_v41, %v1690_v52  ;;  %2582 = vst [vmem:[%s3265_s28 + $0xe8] sm:$0xff] %v2542_v8   ;;  %v1287_v7 = vadd.f32 %v3249_v59, %v1286_v63  ;;  %v1640_v18 = vadd.f32 %v2703_v3, %v1351_v44  ;;  %v1288_v50 = vpop.f32.mrb[93].mxu0  ;;  %v1631_v53 = vpop.f32.mrb[93].mxu1 }
 0x1d4   : > { %2581 = vst [vmem:[%s3265_s28 + $0xe0] sm:$0xff] %v2537_v21   ;;  %v1632_v11 = vadd.f32 %v1631_v53, %v1343_v12  ;;  %v1289_v42 = vpop.f32.mrb[94].mxu0  ;;  %v2704_v10 = vpop.f32.mrb[94].mxu1 }
 0x1d5   : > { %2575 = vst [vmem:[%s3265_s28 + $0xb0] sm:$0xff] %v2507_v49   ;;  %v1576_v45 = vadd.f32 %v3349_v4, %v1287_v7  ;;  %v1290_v54 = vadd.f32 %v3249_v59, %v1289_v42  ;;  %v1643_v15 = vadd.f32 %v2704_v10, %v1354_v1  ;;  %v1291_v20 = vpop.f32.mrb[95].mxu0  ;;  %v1634_v22 = vpop.f32.mrb[95].mxu1  ;;  %v1708_v57 = vmax.f32 %v1640_v18, 0.0 }
 0x1d6   : > { %v1635_v23 = vadd.f32 %v1634_v22, %v1346_v13  ;;  %v1706_v27 = vmax.f32 %v1632_v11, 0.0 }
 0x1d7   : > { %v1579_v33 = vadd.f32 %v3354_v24, %v1290_v54  ;;  %v1709_v46 = vmax.f32 %v1643_v15, 0.0  ;;  %v1692_v61 = vmax.f32 %v1576_v45, 0.0 }
 0x1d8   : > { %v1707_v25 = vmax.f32 %v1635_v23, 0.0 }
 0x1d9   : > { %v1693_v28 = vmax.f32 %v1579_v33, 0.0  ;;  %v2552_v14 = vpack.c.bf16 %v1709_v46, %v1708_v57 }
 0x1da   : > { %v2547_v0 = vpack.c.bf16 %v1707_v25, %v1706_v27 }
 0x1db   : > { %v2512_v4 = vpack.c.bf16 %v1693_v28, %v1692_v61  ;;  %2584 = vst [vmem:[%s3265_s28 + $0xf8] sm:$0xff] %v2552_v14  }
 0x1dc   : > { %2583 = vst [vmem:[%s3265_s28 + $0xf0] sm:$0xff] %v2547_v0  }
 0x1dd   : > { %2576 = vst [vmem:[%s3265_s28 + $0xb8] sm:$0xff] %v2512_v4  }
 0x1de PF: > { %s13_s14 = sadd.s32 1, %s2937_s14   ;;  %s3432_s12 = smov %s2933_s13 }
 0x1df   : > { %p10_p5 = scmp.ge.s32.totalorder %s13_s14, 5   ;;  %s3433_s13 = smov %s3435_s15 }
 0x1e1   :  { %12 = sbr.rel (!%p10_p5) target bundleno = 2 (0x2), region = 68 }

// kernel: _lambda_.8
= control target key start
LH: loop header
LB: loop body
LE: loop exit
PB: predicated region body
PF: predicated region fallthrough
CT: control target
= control target key end

     0   :  { %vm269_vm0 = vcmask 519168   ;;  %s911_s0 = inlined_call_operand.vmem [shape: bf16[288,64], index: 0, kind: input, shape index: {}]   ;;  %s912_s1 = inlined_call_operand.vmem [shape: bf16[288,64], index: 1, kind: input, shape index: {}]   ;;  %s913_s2 = inlined_call_operand.vmem [shape: bf16[288,64], index: 2, kind: input, shape index: {}]   ;;  %s914_s3 = inlined_call_operand.vmem [shape: bf16[288,64], index: 3, kind: input, shape index: {}]   ;;  %s915_s4 = inlined_call_operand.vmem [shape: bf16[288,64], index: 4, kind: output, shape index: {}]  }
   0x1   :  { %v17_v0 = vld [vmem:[%s911_s0] sm:$0xf]  ;;  %v18_v5 = vld [vmem:[%s911_s0 + $0x4] sm:$0xf]  ;;  %v19_v11 = vld [vmem:[%s911_s0 + $0x8] sm:$0xf] }
   0x2   :  { %v53_v1 = vld [vmem:[%s912_s1] sm:$0xf]  ;;  %v54_v6 = vld [vmem:[%s912_s1 + $0x4] sm:$0xf]  ;;  %v55_v13 = vld [vmem:[%s912_s1 + $0x8] sm:$0xf] }
   0x3   :  { %v125_v2 = vld [vmem:[%s913_s2] sm:$0xf]  ;;  %v89_v3 = vmax.bf16 %v53_v1, %v17_v0  ;;  %v90_v8 = vmax.bf16 %v54_v6, %v18_v5  ;;  %v126_v9 = vld [vmem:[%s913_s2 + $0x4] sm:$0xf]  ;;  %v127_v14 = vld [vmem:[%s913_s2 + $0x8] sm:$0xf]  ;;  %v91_v17 = vmax.bf16 %v55_v13, %v19_v11 }
   0x4   :  { %v161_v4 = vld [vmem:[%s914_s3] sm:$0xf]  ;;  %v162_v10 = vld [vmem:[%s914_s3 + $0x4] sm:$0xf]  ;;  %v163_v15 = vld [vmem:[%s914_s3 + $0x8] sm:$0xf] }
   0x5   :  { %v197_v7 = vmax.bf16 %v161_v4, %v125_v2  ;;  %v198_v12 = vmax.bf16 %v162_v10, %v126_v9  ;;  %v199_v18 = vmax.bf16 %v163_v15, %v127_v14  ;;  %v20_v19 = vld [vmem:[%s911_s0 + $0xc] sm:$0xf]  ;;  %v21_v25 = vld [vmem:[%s911_s0 + $0x10] sm:$0xf]  ;;  %v22_v32 = vld [vmem:[%s911_s0 + $0x14] sm:$0xf] }
   0x6   :  { %v56_v20 = vld [vmem:[%s912_s1 + $0xc] sm:$0xf]  ;;  %v57_v26 = vld [vmem:[%s912_s1 + $0x10] sm:$0xf]  ;;  %v58_v34 = vld [vmem:[%s912_s1 + $0x14] sm:$0xf] }
   0x7   :  { %v233_v16 = vmax.bf16 %v197_v7, %v89_v3  ;;  %v128_v21 = vld [vmem:[%s913_s2 + $0xc] sm:$0xf]  ;;  %v234_v22 = vmax.bf16 %v198_v12, %v90_v8  ;;  %v92_v23 = vmax.bf16 %v56_v20, %v20_v19  ;;  %v235_v27 = vmax.bf16 %v199_v18, %v91_v17  ;;  %v129_v30 = vld [vmem:[%s913_s2 + $0x10] sm:$0xf]  ;;  %v130_v35 = vld [vmem:[%s913_s2 + $0x14] sm:$0xf] }
   0x8   :  { %v164_v24 = vld [vmem:[%s914_s3 + $0xc] sm:$0xf]  ;;  %v93_v29 = vmax.bf16 %v57_v26, %v21_v25  ;;  %v165_v31 = vld [vmem:[%s914_s3 + $0x10] sm:$0xf]  ;;  %v166_v36 = vld [vmem:[%s914_s3 + $0x14] sm:$0xf]  ;;  %v94_v38 = vmax.bf16 %v58_v34, %v22_v32 }
   0x9   :  { %270 = vst.msk [vmem:[%s915_s4] sm:$0xf] %vm269_vm0, %v233_v16  ;;  %v200_v28 = vmax.bf16 %v164_v24, %v128_v21  ;;  %271 = vst.msk [vmem:[%s915_s4 + $0x4] sm:$0xf] %vm269_vm0, %v234_v22  ;;  %v201_v33 = vmax.bf16 %v165_v31, %v129_v30  ;;  %v202_v39 = vmax.bf16 %v166_v36, %v130_v35  ;;  %v23_v40 = vld [vmem:[%s911_s0 + $0x18] sm:$0xf] }
   0xa   :  { %272 = vst.msk [vmem:[%s915_s4 + $0x8] sm:$0xf] %vm269_vm0, %v235_v27  ;;  %v59_v41 = vld [vmem:[%s912_s1 + $0x18] sm:$0xf]  ;;  %v24_v46 = vld [vmem:[%s911_s0 + $0x1c] sm:$0xf] }
   0xb   :  { %v236_v37 = vmax.bf16 %v200_v28, %v92_v23  ;;  %v131_v42 = vld [vmem:[%s913_s2 + $0x18] sm:$0xf]  ;;  %v237_v43 = vmax.bf16 %v201_v33, %v93_v29  ;;  %v95_v44 = vmax.bf16 %v59_v41, %v23_v40  ;;  %v60_v47 = vld [vmem:[%s912_s1 + $0x1c] sm:$0xf]  ;;  %v238_v48 = vmax.bf16 %v202_v39, %v94_v38  ;;  %v25_v53 = vld [vmem:[%s911_s0 + $0x20] sm:$0xf] }
   0xc   :  { %v167_v45 = vld [vmem:[%s914_s3 + $0x18] sm:$0xf]  ;;  %v96_v50 = vmax.bf16 %v60_v47, %v24_v46  ;;  %v132_v51 = vld [vmem:[%s913_s2 + $0x1c] sm:$0xf]  ;;  %v61_v55 = vld [vmem:[%s912_s1 + $0x20] sm:$0xf] }
   0xd   :  { %273 = vst.msk [vmem:[%s915_s4 + $0xc] sm:$0xf] %vm269_vm0, %v236_v37  ;;  %v203_v49 = vmax.bf16 %v167_v45, %v131_v42  ;;  %v168_v52 = vld [vmem:[%s914_s3 + $0x1c] sm:$0xf]  ;;  %274 = vst.msk [vmem:[%s915_s4 + $0x10] sm:$0xf] %vm269_vm0, %v237_v43  ;;  %v97_v59 = vmax.bf16 %v61_v55, %v25_v53 }
   0xe   :  { %v204_v54 = vmax.bf16 %v168_v52, %v132_v51  ;;  %v133_v56 = vld [vmem:[%s913_s2 + $0x20] sm:$0xf]  ;;  %275 = vst.msk [vmem:[%s915_s4 + $0x14] sm:$0xf] %vm269_vm0, %v238_v48  ;;  %v26_v61 = vld [vmem:[%s911_s0 + $0x24] sm:$0xf] }
   0xf   :  { %v169_v57 = vld [vmem:[%s914_s3 + $0x20] sm:$0xf]  ;;  %v239_v58 = vmax.bf16 %v203_v49, %v95_v44  ;;  %v62_v62 = vld [vmem:[%s912_s1 + $0x24] sm:$0xf]  ;;  %v27_v3 = vld [vmem:[%s911_s0 + $0x28] sm:$0xf] }
  0x10   :  { %v205_v60 = vmax.bf16 %v169_v57, %v133_v56  ;;  %v134_v63 = vld [vmem:[%s913_s2 + $0x24] sm:$0xf]  ;;  %v240_v0 = vmax.bf16 %v204_v54, %v96_v50  ;;  %v98_v1 = vmax.bf16 %v62_v62, %v26_v61  ;;  %v63_v4 = vld [vmem:[%s912_s1 + $0x28] sm:$0xf]  ;;  %v28_v10 = vld [vmem:[%s911_s0 + $0x2c] sm:$0xf] }
  0x11   :  { %v170_v2 = vld [vmem:[%s914_s3 + $0x24] sm:$0xf]  ;;  %276 = vst.msk [vmem:[%s915_s4 + $0x18] sm:$0xf] %vm269_vm0, %v239_v58  ;;  %v99_v7 = vmax.bf16 %v63_v4, %v27_v3  ;;  %v135_v8 = vld [vmem:[%s913_s2 + $0x28] sm:$0xf] }
  0x12   :  { %v241_v5 = vmax.bf16 %v205_v60, %v97_v59  ;;  %v206_v6 = vmax.bf16 %v170_v2, %v134_v63  ;;  %v171_v9 = vld [vmem:[%s914_s3 + $0x28] sm:$0xf]  ;;  %277 = vst.msk [vmem:[%s915_s4 + $0x1c] sm:$0xf] %vm269_vm0, %v240_v0  ;;  %v64_v12 = vld [vmem:[%s912_s1 + $0x2c] sm:$0xf] }
  0x13   :  { %v207_v11 = vmax.bf16 %v171_v9, %v135_v8  ;;  %v136_v13 = vld [vmem:[%s913_s2 + $0x2c] sm:$0xf]  ;;  %v100_v16 = vmax.bf16 %v64_v12, %v28_v10  ;;  %v29_v18 = vld [vmem:[%s911_s0 + $0x30] sm:$0xf]  ;;  %v30_v24 = vld [vmem:[%s911_s0 + $0x34] sm:$0xf] }
  0x14   :  { %v172_v14 = vld [vmem:[%s914_s3 + $0x2c] sm:$0xf]  ;;  %278 = vst.msk [vmem:[%s915_s4 + $0x20] sm:$0xf] %vm269_vm0, %v241_v5  ;;  %v242_v15 = vmax.bf16 %v206_v6, %v98_v1  ;;  %v65_v19 = vld [vmem:[%s912_s1 + $0x30] sm:$0xf] }
  0x15   :  { %v208_v17 = vmax.bf16 %v172_v14, %v136_v13  ;;  %v137_v20 = vld [vmem:[%s913_s2 + $0x30] sm:$0xf]  ;;  %v243_v21 = vmax.bf16 %v207_v11, %v99_v7  ;;  %v101_v22 = vmax.bf16 %v65_v19, %v29_v18  ;;  %v66_v25 = vld [vmem:[%s912_s1 + $0x34] sm:$0xf]  ;;  %v31_v31 = vld [vmem:[%s911_s0 + $0x38] sm:$0xf] }
  0x16   :  { %v173_v23 = vld [vmem:[%s914_s3 + $0x30] sm:$0xf]  ;;  %279 = vst.msk [vmem:[%s915_s4 + $0x24] sm:$0xf] %vm269_vm0, %v242_v15  ;;  %v102_v28 = vmax.bf16 %v66_v25, %v30_v24  ;;  %v138_v29 = vld [vmem:[%s913_s2 + $0x34] sm:$0xf] }
  0x17   :  { %v244_v26 = vmax.bf16 %v208_v17, %v100_v16  ;;  %v209_v27 = vmax.bf16 %v173_v23, %v137_v20  ;;  %v174_v30 = vld [vmem:[%s914_s3 + $0x34] sm:$0xf]  ;;  %280 = vst.msk [vmem:[%s915_s4 + $0x28] sm:$0xf] %vm269_vm0, %v243_v21  ;;  %v67_v33 = vld [vmem:[%s912_s1 + $0x38] sm:$0xf] }
  0x18   :  { %v210_v32 = vmax.bf16 %v174_v30, %v138_v29  ;;  %v139_v34 = vld [vmem:[%s913_s2 + $0x38] sm:$0xf]  ;;  %v103_v37 = vmax.bf16 %v67_v33, %v31_v31  ;;  %v32_v39 = vld [vmem:[%s911_s0 + $0x3c] sm:$0xf]  ;;  %v33_v45 = vld [vmem:[%s911_s0 + $0x40] sm:$0xf] }
  0x19   :  { %v175_v35 = vld [vmem:[%s914_s3 + $0x38] sm:$0xf]  ;;  %281 = vst.msk [vmem:[%s915_s4 + $0x2c] sm:$0xf] %vm269_vm0, %v244_v26  ;;  %v245_v36 = vmax.bf16 %v209_v27, %v101_v22  ;;  %v68_v40 = vld [vmem:[%s912_s1 + $0x3c] sm:$0xf] }
  0x1a   :  { %v211_v38 = vmax.bf16 %v175_v35, %v139_v34  ;;  %v140_v41 = vld [vmem:[%s913_s2 + $0x3c] sm:$0xf]  ;;  %v246_v42 = vmax.bf16 %v210_v32, %v102_v28  ;;  %v104_v43 = vmax.bf16 %v68_v40, %v32_v39  ;;  %v69_v46 = vld [vmem:[%s912_s1 + $0x40] sm:$0xf]  ;;  %v34_v52 = vld [vmem:[%s911_s0 + $0x44] sm:$0xf] }
  0x1b   :  { %v176_v44 = vld [vmem:[%s914_s3 + $0x3c] sm:$0xf]  ;;  %282 = vst.msk [vmem:[%s915_s4 + $0x30] sm:$0xf] %vm269_vm0, %v245_v36  ;;  %v105_v49 = vmax.bf16 %v69_v46, %v33_v45  ;;  %v141_v50 = vld [vmem:[%s913_s2 + $0x40] sm:$0xf] }
  0x1c   :  { %v247_v47 = vmax.bf16 %v211_v38, %v103_v37  ;;  %v212_v48 = vmax.bf16 %v176_v44, %v140_v41  ;;  %v177_v51 = vld [vmem:[%s914_s3 + $0x40] sm:$0xf]  ;;  %283 = vst.msk [vmem:[%s915_s4 + $0x34] sm:$0xf] %vm269_vm0, %v246_v42  ;;  %v70_v54 = vld [vmem:[%s912_s1 + $0x44] sm:$0xf] }
  0x1d   :  { %v213_v53 = vmax.bf16 %v177_v51, %v141_v50  ;;  %v142_v55 = vld [vmem:[%s913_s2 + $0x44] sm:$0xf]  ;;  %v106_v58 = vmax.bf16 %v70_v54, %v34_v52  ;;  %v35_v60 = vld [vmem:[%s911_s0 + $0x48] sm:$0xf]  ;;  %v36_v2 = vld [vmem:[%s911_s0 + $0x4c] sm:$0xf] }
  0x1e   :  { %v178_v56 = vld [vmem:[%s914_s3 + $0x44] sm:$0xf]  ;;  %284 = vst.msk [vmem:[%s915_s4 + $0x38] sm:$0xf] %vm269_vm0, %v247_v47  ;;  %v248_v57 = vmax.bf16 %v212_v48, %v104_v43  ;;  %v71_v61 = vld [vmem:[%s912_s1 + $0x48] sm:$0xf] }
  0x1f   :  { %v214_v59 = vmax.bf16 %v178_v56, %v142_v55  ;;  %v143_v62 = vld [vmem:[%s913_s2 + $0x48] sm:$0xf]  ;;  %v249_v63 = vmax.bf16 %v213_v53, %v105_v49  ;;  %v107_v0 = vmax.bf16 %v71_v61, %v35_v60  ;;  %v72_v3 = vld [vmem:[%s912_s1 + $0x4c] sm:$0xf]  ;;  %v37_v9 = vld [vmem:[%s911_s0 + $0x50] sm:$0xf] }
  0x20   :  { %v179_v1 = vld [vmem:[%s914_s3 + $0x48] sm:$0xf]  ;;  %285 = vst.msk [vmem:[%s915_s4 + $0x3c] sm:$0xf] %vm269_vm0, %v248_v57  ;;  %v108_v6 = vmax.bf16 %v72_v3, %v36_v2  ;;  %v144_v7 = vld [vmem:[%s913_s2 + $0x4c] sm:$0xf] }
  0x21   :  { %v250_v4 = vmax.bf16 %v214_v59, %v106_v58  ;;  %v215_v5 = vmax.bf16 %v179_v1, %v143_v62  ;;  %v180_v8 = vld [vmem:[%s914_s3 + $0x4c] sm:$0xf]  ;;  %286 = vst.msk [vmem:[%s915_s4 + $0x40] sm:$0xf] %vm269_vm0, %v249_v63  ;;  %v73_v11 = vld [vmem:[%s912_s1 + $0x50] sm:$0xf] }
  0x22   :  { %v216_v10 = vmax.bf16 %v180_v8, %v144_v7  ;;  %v145_v12 = vld [vmem:[%s913_s2 + $0x50] sm:$0xf]  ;;  %v109_v15 = vmax.bf16 %v73_v11, %v37_v9  ;;  %v38_v17 = vld [vmem:[%s911_s0 + $0x54] sm:$0xf]  ;;  %v39_v23 = vld [vmem:[%s911_s0 + $0x58] sm:$0xf] }
  0x23   :  { %v181_v13 = vld [vmem:[%s914_s3 + $0x50] sm:$0xf]  ;;  %287 = vst.msk [vmem:[%s915_s4 + $0x44] sm:$0xf] %vm269_vm0, %v250_v4  ;;  %v251_v14 = vmax.bf16 %v215_v5, %v107_v0  ;;  %v74_v18 = vld [vmem:[%s912_s1 + $0x54] sm:$0xf] }
  0x24   :  { %v217_v16 = vmax.bf16 %v181_v13, %v145_v12  ;;  %v146_v19 = vld [vmem:[%s913_s2 + $0x54] sm:$0xf]  ;;  %v252_v20 = vmax.bf16 %v216_v10, %v108_v6  ;;  %v110_v21 = vmax.bf16 %v74_v18, %v38_v17  ;;  %v75_v24 = vld [vmem:[%s912_s1 + $0x58] sm:$0xf]  ;;  %v40_v30 = vld [vmem:[%s911_s0 + $0x5c] sm:$0xf] }
  0x25   :  { %v182_v22 = vld [vmem:[%s914_s3 + $0x54] sm:$0xf]  ;;  %288 = vst.msk [vmem:[%s915_s4 + $0x48] sm:$0xf] %vm269_vm0, %v251_v14  ;;  %v111_v27 = vmax.bf16 %v75_v24, %v39_v23  ;;  %v147_v28 = vld [vmem:[%s913_s2 + $0x58] sm:$0xf] }
  0x26   :  { %v253_v25 = vmax.bf16 %v217_v16, %v109_v15  ;;  %v218_v26 = vmax.bf16 %v182_v22, %v146_v19  ;;  %v183_v29 = vld [vmem:[%s914_s3 + $0x58] sm:$0xf]  ;;  %289 = vst.msk [vmem:[%s915_s4 + $0x4c] sm:$0xf] %vm269_vm0, %v252_v20  ;;  %v76_v32 = vld [vmem:[%s912_s1 + $0x5c] sm:$0xf] }
  0x27   :  { %v219_v31 = vmax.bf16 %v183_v29, %v147_v28  ;;  %v148_v33 = vld [vmem:[%s913_s2 + $0x5c] sm:$0xf]  ;;  %v112_v36 = vmax.bf16 %v76_v32, %v40_v30  ;;  %v41_v38 = vld [vmem:[%s911_s0 + $0x60] sm:$0xf]  ;;  %v42_v44 = vld [vmem:[%s911_s0 + $0x64] sm:$0xf] }
  0x28   :  { %v184_v34 = vld [vmem:[%s914_s3 + $0x5c] sm:$0xf]  ;;  %290 = vst.msk [vmem:[%s915_s4 + $0x50] sm:$0xf] %vm269_vm0, %v253_v25  ;;  %v254_v35 = vmax.bf16 %v218_v26, %v110_v21  ;;  %v77_v39 = vld [vmem:[%s912_s1 + $0x60] sm:$0xf] }
  0x29   :  { %v220_v37 = vmax.bf16 %v184_v34, %v148_v33  ;;  %v149_v40 = vld [vmem:[%s913_s2 + $0x60] sm:$0xf]  ;;  %v255_v41 = vmax.bf16 %v219_v31, %v111_v27  ;;  %v113_v42 = vmax.bf16 %v77_v39, %v41_v38  ;;  %v78_v45 = vld [vmem:[%s912_s1 + $0x64] sm:$0xf]  ;;  %v43_v51 = vld [vmem:[%s911_s0 + $0x68] sm:$0xf] }
  0x2a   :  { %v185_v43 = vld [vmem:[%s914_s3 + $0x60] sm:$0xf]  ;;  %291 = vst.msk [vmem:[%s915_s4 + $0x54] sm:$0xf] %vm269_vm0, %v254_v35  ;;  %v114_v48 = vmax.bf16 %v78_v45, %v42_v44  ;;  %v150_v49 = vld [vmem:[%s913_s2 + $0x64] sm:$0xf] }
  0x2b   :  { %v256_v46 = vmax.bf16 %v220_v37, %v112_v36  ;;  %v221_v47 = vmax.bf16 %v185_v43, %v149_v40  ;;  %v186_v50 = vld [vmem:[%s914_s3 + $0x64] sm:$0xf]  ;;  %292 = vst.msk [vmem:[%s915_s4 + $0x58] sm:$0xf] %vm269_vm0, %v255_v41  ;;  %v79_v53 = vld [vmem:[%s912_s1 + $0x68] sm:$0xf] }
  0x2c   :  { %v222_v52 = vmax.bf16 %v186_v50, %v150_v49  ;;  %v151_v54 = vld [vmem:[%s913_s2 + $0x68] sm:$0xf]  ;;  %v115_v57 = vmax.bf16 %v79_v53, %v43_v51  ;;  %v44_v59 = vld [vmem:[%s911_s0 + $0x6c] sm:$0xf]  ;;  %v45_v1 = vld [vmem:[%s911_s0 + $0x70] sm:$0xf] }
  0x2d   :  { %v187_v55 = vld [vmem:[%s914_s3 + $0x68] sm:$0xf]  ;;  %293 = vst.msk [vmem:[%s915_s4 + $0x5c] sm:$0xf] %vm269_vm0, %v256_v46  ;;  %v257_v56 = vmax.bf16 %v221_v47, %v113_v42  ;;  %v80_v60 = vld [vmem:[%s912_s1 + $0x6c] sm:$0xf] }
  0x2e   :  { %v223_v58 = vmax.bf16 %v187_v55, %v151_v54  ;;  %v152_v61 = vld [vmem:[%s913_s2 + $0x6c] sm:$0xf]  ;;  %v258_v62 = vmax.bf16 %v222_v52, %v114_v48  ;;  %v116_v63 = vmax.bf16 %v80_v60, %v44_v59  ;;  %v81_v2 = vld [vmem:[%s912_s1 + $0x70] sm:$0xf]  ;;  %v46_v8 = vld [vmem:[%s911_s0 + $0x74] sm:$0xf] }
  0x2f   :  { %v188_v0 = vld [vmem:[%s914_s3 + $0x6c] sm:$0xf]  ;;  %294 = vst.msk [vmem:[%s915_s4 + $0x60] sm:$0xf] %vm269_vm0, %v257_v56  ;;  %v117_v5 = vmax.bf16 %v81_v2, %v45_v1  ;;  %v153_v6 = vld [vmem:[%s913_s2 + $0x70] sm:$0xf] }
  0x30   :  { %v259_v3 = vmax.bf16 %v223_v58, %v115_v57  ;;  %v224_v4 = vmax.bf16 %v188_v0, %v152_v61  ;;  %v189_v7 = vld [vmem:[%s914_s3 + $0x70] sm:$0xf]  ;;  %295 = vst.msk [vmem:[%s915_s4 + $0x64] sm:$0xf] %vm269_vm0, %v258_v62  ;;  %v82_v10 = vld [vmem:[%s912_s1 + $0x74] sm:$0xf] }
  0x31   :  { %v225_v9 = vmax.bf16 %v189_v7, %v153_v6  ;;  %v154_v11 = vld [vmem:[%s913_s2 + $0x74] sm:$0xf]  ;;  %v118_v14 = vmax.bf16 %v82_v10, %v46_v8  ;;  %v47_v16 = vld [vmem:[%s911_s0 + $0x78] sm:$0xf]  ;;  %v48_v22 = vld [vmem:[%s911_s0 + $0x7c] sm:$0xf] }
  0x32   :  { %v190_v12 = vld [vmem:[%s914_s3 + $0x74] sm:$0xf]  ;;  %296 = vst.msk [vmem:[%s915_s4 + $0x68] sm:$0xf] %vm269_vm0, %v259_v3  ;;  %v260_v13 = vmax.bf16 %v224_v4, %v116_v63  ;;  %v83_v17 = vld [vmem:[%s912_s1 + $0x78] sm:$0xf] }
  0x33   :  { %v226_v15 = vmax.bf16 %v190_v12, %v154_v11  ;;  %v155_v18 = vld [vmem:[%s913_s2 + $0x78] sm:$0xf]  ;;  %v261_v19 = vmax.bf16 %v225_v9, %v117_v5  ;;  %v119_v20 = vmax.bf16 %v83_v17, %v47_v16  ;;  %v84_v23 = vld [vmem:[%s912_s1 + $0x7c] sm:$0xf]  ;;  %v49_v29 = vld [vmem:[%s911_s0 + $0x80] sm:$0xf] }
  0x34   :  { %v191_v21 = vld [vmem:[%s914_s3 + $0x78] sm:$0xf]  ;;  %297 = vst.msk [vmem:[%s915_s4 + $0x6c] sm:$0xf] %vm269_vm0, %v260_v13  ;;  %v120_v26 = vmax.bf16 %v84_v23, %v48_v22  ;;  %v156_v27 = vld [vmem:[%s913_s2 + $0x7c] sm:$0xf] }
  0x35   :  { %v262_v24 = vmax.bf16 %v226_v15, %v118_v14  ;;  %v227_v25 = vmax.bf16 %v191_v21, %v155_v18  ;;  %v192_v28 = vld [vmem:[%s914_s3 + $0x7c] sm:$0xf]  ;;  %298 = vst.msk [vmem:[%s915_s4 + $0x70] sm:$0xf] %vm269_vm0, %v261_v19  ;;  %v85_v31 = vld [vmem:[%s912_s1 + $0x80] sm:$0xf] }
  0x36   :  { %v228_v30 = vmax.bf16 %v192_v28, %v156_v27  ;;  %v157_v32 = vld [vmem:[%s913_s2 + $0x80] sm:$0xf]  ;;  %v121_v35 = vmax.bf16 %v85_v31, %v49_v29  ;;  %v50_v37 = vld [vmem:[%s911_s0 + $0x84] sm:$0xf]  ;;  %v51_v43 = vld [vmem:[%s911_s0 + $0x88] sm:$0xf] }
  0x37   :  { %v193_v33 = vld [vmem:[%s914_s3 + $0x80] sm:$0xf]  ;;  %299 = vst.msk [vmem:[%s915_s4 + $0x74] sm:$0xf] %vm269_vm0, %v262_v24  ;;  %v263_v34 = vmax.bf16 %v227_v25, %v119_v20  ;;  %v86_v38 = vld [vmem:[%s912_s1 + $0x84] sm:$0xf] }
  0x38   :  { %v229_v36 = vmax.bf16 %v193_v33, %v157_v32  ;;  %v158_v39 = vld [vmem:[%s913_s2 + $0x84] sm:$0xf]  ;;  %v264_v40 = vmax.bf16 %v228_v30, %v120_v26  ;;  %v122_v41 = vmax.bf16 %v86_v38, %v50_v37  ;;  %v87_v44 = vld [vmem:[%s912_s1 + $0x88] sm:$0xf]  ;;  %v52_v50 = vld [vmem:[%s911_s0 + $0x8c] sm:$0xf] }
  0x39   :  { %v194_v42 = vld [vmem:[%s914_s3 + $0x84] sm:$0xf]  ;;  %300 = vst.msk [vmem:[%s915_s4 + $0x78] sm:$0xf] %vm269_vm0, %v263_v34  ;;  %v123_v47 = vmax.bf16 %v87_v44, %v51_v43  ;;  %v159_v48 = vld [vmem:[%s913_s2 + $0x88] sm:$0xf] }
  0x3a   :  { %v265_v45 = vmax.bf16 %v229_v36, %v121_v35  ;;  %v230_v46 = vmax.bf16 %v194_v42, %v158_v39  ;;  %v195_v49 = vld [vmem:[%s914_s3 + $0x88] sm:$0xf]  ;;  %301 = vst.msk [vmem:[%s915_s4 + $0x7c] sm:$0xf] %vm269_vm0, %v264_v40  ;;  %v88_v52 = vld [vmem:[%s912_s1 + $0x8c] sm:$0xf] }
  0x3b   :  { %v231_v51 = vmax.bf16 %v195_v49, %v159_v48  ;;  %v160_v53 = vld [vmem:[%s913_s2 + $0x8c] sm:$0xf]  ;;  %v124_v56 = vmax.bf16 %v88_v52, %v52_v50 }
  0x3c   :  { %v196_v54 = vld [vmem:[%s914_s3 + $0x8c] sm:$0xf]  ;;  %302 = vst.msk [vmem:[%s915_s4 + $0x80] sm:$0xf] %vm269_vm0, %v265_v45  ;;  %v266_v55 = vmax.bf16 %v230_v46, %v122_v41 }
  0x3d   :  { %v232_v57 = vmax.bf16 %v196_v54, %v160_v53  ;;  %v267_v58 = vmax.bf16 %v231_v51, %v123_v47 }
  0x3e   :  { %303 = vst.msk [vmem:[%s915_s4 + $0x84] sm:$0xf] %vm269_vm0, %v266_v55 }
  0x3f   :  { %v268_v59 = vmax.bf16 %v232_v57, %v124_v56  ;;  %304 = vst.msk [vmem:[%s915_s4 + $0x88] sm:$0xf] %vm269_vm0, %v267_v58 }
  0x41   :  { %305 = vst.msk [vmem:[%s915_s4 + $0x8c] sm:$0xf] %vm269_vm0, %v268_v59 }

// kernel: _lambda_.9
= control target key start
LH: loop header
LB: loop body
LE: loop exit
PB: predicated region body
PF: predicated region fallthrough
CT: control target
= control target key end

     0   :  { %s2853_s1 = inlined_call_operand.vmem [shape: bf16[640,128], index: 1, kind: input, shape index: {}]   ;;  %s2854_s0 = inlined_call_operand.vmem [shape: bf16[256,640], index: 0, kind: input, shape index: {}]   ;;  %s2855_s2 = inlined_call_operand.vmem [shape: f32[1,128], index: 2, kind: input, shape index: {}]   ;;  %s2856_s3 = inlined_call_operand.vmem [shape: bf16[256,128], index: 3, kind: output, shape index: {}]  }
   0x1   :  { %v2125_v0 = vld [vmem:[%s2853_s1 + $0x40] sm:$0xff]   ;;  %v2127_v2 = vld [vmem:[%s2853_s1 + $0x48] sm:$0xff]   ;;  %v2129_v4 = vld [vmem:[%s2853_s1 + $0x50] sm:$0xff]  }
   0x2   :  { %v2126_v1 = vld [vmem:[%s2853_s1] sm:$0xff]   ;;  %1813 = vmatprep.subr.bf16.mxu0 %v2125_v0  ;;  %2109 = vmatprep.subr.bf16.mxu1 %v2125_v0  ;;  %v2128_v3 = vld [vmem:[%s2853_s1 + $0x8] sm:$0xff]   ;;  %v2130_v5 = vld [vmem:[%s2853_s1 + $0x10] sm:$0xff]  }
   0x3   :  { %1814 = vmatpush3.bf16.msra.mxu0 %v2126_v1  ;;  %2117 = vmatpush3.bf16.msra.mxu1 %v2126_v1  ;;  %v2131_v6 = vld [vmem:[%s2853_s1 + $0x58] sm:$0xff]   ;;  %v2133_v8 = vld [vmem:[%s2853_s1 + $0x60] sm:$0xff]   ;;  %v2135_v10 = vld [vmem:[%s2853_s1 + $0x68] sm:$0xff]  }
   0x4   :  { %1815 = vmatprep.subr.bf16.mxu0 %v2127_v2  ;;  %2110 = vmatprep.subr.bf16.mxu1 %v2127_v2  ;;  %v2132_v7 = vld [vmem:[%s2853_s1 + $0x18] sm:$0xff]   ;;  %v2134_v9 = vld [vmem:[%s2853_s1 + $0x20] sm:$0xff]   ;;  %v2136_v13 = vld [vmem:[%s2853_s1 + $0x28] sm:$0xff]  }
   0x5   :  { %v2143_v11 = vld [vmem:[%s2854_s0 + $0x4] ss:$20 sps:$4 sm:$0xff]   ;;  %v2137_v14 = vld [vmem:[%s2853_s1 + $0x70] sm:$0xff]   ;;  %v2149_v23 = vld [vmem:[%s2853_s1 + $0xc8] sm:$0xff]  }
   0x6   :  { %v2146_v12 = vld [vmem:[%s2854_s0 + $0x1e4] ss:$20 sps:$4 sm:$0xff]   ;;  %886 = vmatprep.mubr.bf16.mxu0 %v2143_v11  ;;  %v2138_v15 = vld [vmem:[%s2853_s1 + $0x30] sm:$0xff]   ;;  %v2152_v24 = vld [vmem:[%s2854_s0 + $0x2c] ss:$20 sps:$4 sm:$0xff]  }
   0x7   :  { %1816 = vmatpush3.bf16.msra.mxu0 %v2128_v3  ;;  %2118 = vmatpush3.bf16.msra.mxu1 %v2128_v3  ;;  %v2139_v16 = vld [vmem:[%s2853_s1 + $0x78] sm:$0xff]   ;;  %v2147_v18 = vld [vmem:[%s2853_s1 + $0xc0] sm:$0xff]   ;;  %v2169_v26 = vld [vmem:[%s2853_s1 + $0x108] sm:$0xff]  }
   0x8   :  { %1817 = vmatprep.subr.bf16.mxu0 %v2129_v4  ;;  %2111 = vmatprep.subr.bf16.mxu1 %v2129_v4  ;;  %v2140_v17 = vld [vmem:[%s2853_s1 + $0x38] sm:$0xff]   ;;  %v2150_v19 = vld [vmem:[%s2853_s1 + $0x100] sm:$0xff]   ;;  %v2151_v27 = vld [vmem:[%s2853_s1 + $0x88] sm:$0xff]  }
   0x9   :  { %982 = vmatprep.mubr.bf16.mxu1 %v2146_v12  ;;  %v2141_v20 = vld [vmem:[%s2854_s0] ss:$20 sps:$4 sm:$0xff]   ;;  %v2156_v28 = vld [vmem:[%s2854_s0 + $0x28] ss:$20 sps:$4 sm:$0xff]   ;;  %v2166_v37 = vld [vmem:[%s2854_s0 + $0x50] ss:$20 sps:$4 sm:$0xff]  }
   0xa   :  { %v2144_v21 = vld [vmem:[%s2854_s0 + $0x1e0] ss:$20 sps:$4 sm:$0xff]   ;;  %v2157_v30 = vld [vmem:[%s2854_s0 + $0x208] ss:$20 sps:$4 sm:$0xff]   ;;  %v2167_v39 = vld [vmem:[%s2854_s0 + $0x230] ss:$20 sps:$4 sm:$0xff]  }
   0xb   :  { %1818 = vmatpush3.bf16.msra.mxu0 %v2130_v5  ;;  %2119 = vmatpush3.bf16.msra.mxu1 %v2130_v5  ;;  %v2148_v22 = vld [vmem:[%s2853_s1 + $0x80] sm:$0xff]   ;;  %v2158_v29 = vld [vmem:[%s2853_s1 + $0xd0] sm:$0xff]   ;;  %v2160_v33 = vld [vmem:[%s2853_s1 + $0xd8] sm:$0xff]  }
   0xc   :  { %1819 = vmatprep.subr.bf16.mxu0 %v2131_v6  ;;  %2112 = vmatprep.subr.bf16.mxu1 %v2131_v6  ;;  %v2154_v25 = vld [vmem:[%s2854_s0 + $0x20c] ss:$20 sps:$4 sm:$0xff]   ;;  %v2159_v31 = vld [vmem:[%s2853_s1 + $0x90] sm:$0xff]   ;;  %v2161_v35 = vld [vmem:[%s2853_s1 + $0x98] sm:$0xff]  }
   0xd   :  { %v2162_v32 = vld [vmem:[%s2854_s0 + $0x54] ss:$20 sps:$4 sm:$0xff]   ;;  %v2168_v36 = vld [vmem:[%s2853_s1 + $0xe0] sm:$0xff]   ;;  %v2173_v42 = vld [vmem:[%s2854_s0 + $0x7c] ss:$20 sps:$4 sm:$0xff]  }
   0xe   :  { %v2164_v34 = vld [vmem:[%s2854_s0 + $0x234] ss:$20 sps:$4 sm:$0xff]   ;;  %v2170_v40 = vld [vmem:[%s2853_s1 + $0xa0] sm:$0xff]   ;;  %v2175_v43 = vld [vmem:[%s2854_s0 + $0x25c] ss:$20 sps:$4 sm:$0xff]  }
   0xf   :  { %1820 = vmatpush3.bf16.msra.mxu0 %v2132_v7  ;;  %2120 = vmatpush3.bf16.msra.mxu1 %v2132_v7  ;;  %v2182_v38 = vld [vmem:[%s2853_s1 + $0x110] sm:$0xff]   ;;  %v2171_v41 = vld [vmem:[%s2853_s1 + $0xe8] sm:$0xff]   ;;  %v2196_v45 = vld [vmem:[%s2853_s1 + $0x118] sm:$0xff]  }
  0x10   :  { %1821 = vmatprep.subr.bf16.mxu0 %v2133_v8  ;;  %2113 = vmatprep.subr.bf16.mxu1 %v2133_v8  ;;  %v2172_v44 = vld [vmem:[%s2853_s1 + $0xa8] sm:$0xff]   ;;  %v2179_v48 = vld [vmem:[%s2853_s1 + $0xf0] sm:$0xff]   ;;  %v2181_v50 = vld [vmem:[%s2853_s1 + $0xf8] sm:$0xff]  }
  0x11   :  { %v2177_v46 = vld [vmem:[%s2854_s0 + $0x78] ss:$20 sps:$4 sm:$0xff]   ;;  %v2180_v49 = vld [vmem:[%s2853_s1 + $0xb0] sm:$0xff]   ;;  %v2203_v52 = vld [vmem:[%s2853_s1 + $0x120] sm:$0xff]  }
  0x12   :  { %v2178_v47 = vld [vmem:[%s2854_s0 + $0x258] ss:$20 sps:$4 sm:$0xff]   ;;  %v2186_v55 = vld [vmem:[%s2854_s0 + $0x8] ss:$20 sps:$4 sm:$0xff]   ;;  %v2189_v56 = vld [vmem:[%s2854_s0 + $0xa0] ss:$20 sps:$4 sm:$0xff]  }
  0x13   :  { %1822 = vmatpush3.bf16.msra.mxu0 %v2134_v9  ;;  %2121 = vmatpush3.bf16.msra.mxu1 %v2134_v9  ;;  %v2184_v51 = vld [vmem:[%s2854_s0 + $0xa4] ss:$20 sps:$4 sm:$0xff]   ;;  %v2188_v53 = vld [vmem:[%s2854_s0 + $0xc] ss:$20 sps:$4 sm:$0xff]   ;;  %v2192_v59 = vld [vmem:[%s2854_s0 + $0x34] ss:$20 sps:$4 sm:$0xff]  }
  0x14   :  { %1823 = vmatprep.subr.bf16.mxu0 %v2135_v10  ;;  %2114 = vmatprep.subr.bf16.mxu1 %v2135_v10  ;;  %v2183_v54 = vld [vmem:[%s2853_s1 + $0xb8] sm:$0xff]   ;;  %v2216_v57 = vld [vmem:[%s2853_s1 + $0x128] sm:$0xff]   ;;  %v2223_v60 = vld [vmem:[%s2853_s1 + $0x130] sm:$0xff]  }
  0x15   :  { %v2190_v58 = vld [vmem:[%s2854_s0 + $0xcc] ss:$20 sps:$4 sm:$0xff]   ;;  %v2194_v61 = vld [vmem:[%s2854_s0 + $0xc8] ss:$20 sps:$4 sm:$0xff]   ;;  %v2195_v62 = vld [vmem:[%s2854_s0 + $0x30] ss:$20 sps:$4 sm:$0xff]  }
  0x16   :  { %v2197_v63 = vld [vmem:[%s2854_s0 + $0xf4] ss:$20 sps:$4 sm:$0xff]   ;;  %v2199_v0 = vld [vmem:[%s2854_s0 + $0x5c] ss:$20 sps:$4 sm:$0xff]   ;;  %v2202_v3 = vld [vmem:[%s2854_s0 + $0x58] ss:$20 sps:$4 sm:$0xff]  }
  0x17   :  { %1824 = vmatpush3.bf16.msra.mxu0 %v2136_v13  ;;  %2122 = vmatpush3.bf16.msra.mxu1 %v2136_v13  ;;  %v2236_v1 = vld [vmem:[%s2853_s1 + $0x138] sm:$0xff]   ;;  %v2201_v2 = vld [vmem:[%s2854_s0 + $0xf0] ss:$20 sps:$4 sm:$0xff]   ;;  %v2209_v7 = vld [vmem:[%s2854_s0 + $0x80] ss:$20 sps:$4 sm:$0xff]  }
  0x18   :  { %1825 = vmatprep.subr.bf16.mxu0 %v2137_v14  ;;  %2115 = vmatprep.subr.bf16.mxu1 %v2137_v14  ;;  %v2204_v4 = vld [vmem:[%s2854_s0 + $0x11c] ss:$20 sps:$4 sm:$0xff]   ;;  %v2206_v5 = vld [vmem:[%s2854_s0 + $0x84] ss:$20 sps:$4 sm:$0xff]   ;;  %v2212_v9 = vld [vmem:[%s2854_s0 + $0xac] ss:$20 sps:$4 sm:$0xff]  }
  0x19   :  { %v2208_v6 = vld [vmem:[%s2854_s0 + $0x118] ss:$20 sps:$4 sm:$0xff]   ;;  %v2214_v10 = vld [vmem:[%s2854_s0 + $0x140] ss:$20 sps:$4 sm:$0xff]   ;;  %v2215_v11 = vld [vmem:[%s2854_s0 + $0xa8] ss:$20 sps:$4 sm:$0xff]  }
  0x1a   :  { %v2210_v8 = vld [vmem:[%s2854_s0 + $0x144] ss:$20 sps:$4 sm:$0xff]   ;;  %v2217_v12 = vld [vmem:[%s2854_s0 + $0x16c] ss:$20 sps:$4 sm:$0xff]   ;;  %v2219_v13 = vld [vmem:[%s2854_s0 + $0xd4] ss:$20 sps:$4 sm:$0xff]  }
  0x1b   :  { %1826 = vmatpush3.bf16.msra.mxu0 %v2138_v15  ;;  %2123 = vmatpush3.bf16.msra.mxu1 %v2138_v15  ;;  %v2221_v14 = vld [vmem:[%s2854_s0 + $0x168] ss:$20 sps:$4 sm:$0xff]   ;;  %v2222_v15 = vld [vmem:[%s2854_s0 + $0xd0] ss:$20 sps:$4 sm:$0xff]  }
  0x1c   :  { %1827 = vmatprep.subr.bf16.mxu0 %v2139_v16  ;;  %2116 = vmatprep.subr.bf16.mxu1 %v2139_v16  ;;  %v2224_v16 = vld [vmem:[%s2854_s0 + $0x194] ss:$20 sps:$4 sm:$0xff]  }
  0x1f   :  { %1828 = vmatpush3.bf16.msra.mxu0 %v2140_v17  ;;  %2124 = vmatpush3.bf16.msra.mxu1 %v2140_v17  ;;  %v2226_v17 = vld [vmem:[%s2854_s0 + $0xfc] ss:$20 sps:$4 sm:$0xff]  }
  0x20   :  { %1925 = vmatprep.subr.bf16.mxu1 %v2147_v18  ;;  %2061 = vmatprep.subr.bf16.mxu0 %v2150_v19  ;;  %v2228_v18 = vld [vmem:[%s2854_s0 + $0x190] ss:$20 sps:$4 sm:$0xff]  }
  0x22   :  { %887 = vmatmul.mubr.bf16.vlgmr.msra.gmra.mrb[0].mxu0 %v2141_v20  ;;  %983 = vmatmul.mubr.bf16.vlgmr.msra.gmra.mrb[0].mxu1 %v2144_v21  ;;  %v2230_v20 = vld [vmem:[%s2854_s0 + $0x1bc] ss:$20 sps:$4 sm:$0xff]   ;;  %v2232_v21 = vld [vmem:[%s2854_s0 + $0x124] ss:$20 sps:$4 sm:$0xff]  }
  0x23   :  { %1926 = vmatpush3.bf16.msra.mxu1 %v2148_v22  ;;  %2062 = vmatpush3.bf16.msra.mxu0 %v2150_v19  ;;  %v2229_v19 = vld [vmem:[%s2854_s0 + $0xf8] ss:$20 sps:$4 sm:$0xff]  }
  0x24   :  { %1927 = vmatprep.subr.bf16.mxu1 %v2149_v23  ;;  %894 = vmatprep.mubr.bf16.mxu0 %v2152_v24  ;;  %v2234_v22 = vld [vmem:[%s2854_s0 + $0x1b8] ss:$20 sps:$4 sm:$0xff]   ;;  %v2235_v23 = vld [vmem:[%s2854_s0 + $0x120] ss:$20 sps:$4 sm:$0xff]  }
  0x25   :  { %990 = vmatprep.mubr.bf16.mxu1 %v2154_v25  ;;  %2063 = vmatprep.subr.bf16.mxu0 %v2169_v26  ;;  %v2237_v24 = vld [vmem:[%s2854_s0 + $0x14c] ss:$20 sps:$4 sm:$0xff]   ;;  %v2239_v25 = vld [vmem:[%s2854_s0 + $0x10] ss:$20 sps:$4 sm:$0xff]  }
  0x27   :  { %1928 = vmatpush3.bf16.msra.mxu1 %v2151_v27  ;;  %2064 = vmatpush3.bf16.msra.mxu0 %v2169_v26  ;;  %v2240_v26 = vld [vmem:[%s2854_s0 + $0x148] ss:$20 sps:$4 sm:$0xff]   ;;  %v2241_v27 = vld [vmem:[%s2854_s0 + $0x38] ss:$20 sps:$4 sm:$0xff]  }
  0x28   :  { %1929 = vmatprep.subr.bf16.mxu1 %v2158_v29  ;;  %2065 = vmatprep.subr.bf16.mxu0 %v2182_v38  ;;  %v2244_v29 = vld [vmem:[%s2854_s0 + $0x60] ss:$20 sps:$4 sm:$0xff]  }
  0x2a   :  { %895 = vmatmul.mubr.bf16.gmra.mrb[4].mxu0 %v2156_v28  ;;  %991 = vmatmul.mubr.bf16.gmra.mrb[4].mxu1 %v2157_v30  ;;  %v2242_v28 = vld [vmem:[%s2854_s0 + $0x174] ss:$20 sps:$4 sm:$0xff]   ;;  %v2245_v30 = vld [vmem:[%s2854_s0 + $0x170] ss:$20 sps:$4 sm:$0xff]  }
  0x2b   :  { %1930 = vmatpush3.bf16.msra.mxu1 %v2159_v31  ;;  %902 = vmatprep.mubr.bf16.mxu0 %v2162_v32  ;;  %v2246_v31 = vld [vmem:[%s2854_s0 + $0x88] ss:$20 sps:$4 sm:$0xff]  }
  0x2c   :  { %1931 = vmatprep.subr.bf16.mxu1 %v2160_v33  ;;  %998 = vmatprep.mubr.bf16.mxu1 %v2164_v34  ;;  %v2247_v32 = vld [vmem:[%s2854_s0 + $0x19c] ss:$20 sps:$4 sm:$0xff]   ;;  %v2250_v34 = vld [vmem:[%s2854_s0 + $0x198] ss:$20 sps:$4 sm:$0xff]  }
  0x2d   :  { %2066 = vmatpush3.bf16.msra.mxu0 %v2182_v38  ;;  %v2249_v33 = vld [vmem:[%s2854_s0 + $0xb0] ss:$20 sps:$4 sm:$0xff]   ;;  %v2255_v38 = vld [vmem:[%s2854_s0 + $0x1c0] ss:$20 sps:$4 sm:$0xff]  }
  0x2e   :  { %2067 = vmatprep.subr.bf16.mxu0 %v2196_v45 }
  0x2f   :  { %1932 = vmatpush3.bf16.msra.mxu1 %v2161_v35  ;;  %v2251_v35 = vld [vmem:[%s2854_s0 + $0xd8] ss:$20 sps:$4 sm:$0xff]  }
  0x30   :  { %1933 = vmatprep.subr.bf16.mxu1 %v2168_v36  ;;  %v2252_v36 = vld [vmem:[%s2854_s0 + $0x1c4] ss:$20 sps:$4 sm:$0xff]  }
  0x31   :  { %2068 = vmatpush3.bf16.msra.mxu0 %v2196_v45  ;;  %v2264_v45 = vld [vmem:[%s2854_s0 + $0x1a0] ss:$20 sps:$4 sm:$0xff]  }
  0x32   :  { %903 = vmatmul.mubr.bf16.gmra.mrb[8].mxu0 %v2166_v37  ;;  %999 = vmatmul.mubr.bf16.gmra.mrb[8].mxu1 %v2167_v39  ;;  %v2254_v37 = vld [vmem:[%s2854_s0 + $0x100] ss:$20 sps:$4 sm:$0xff]   ;;  %v2256_v39 = vld [vmem:[%s2854_s0 + $0x128] ss:$20 sps:$4 sm:$0xff]  }
  0x33   :  { %1934 = vmatpush3.bf16.msra.mxu1 %v2170_v40  ;;  %910 = vmatprep.mubr.bf16.mxu0 %v2173_v42  ;;  %v2257_v40 = vld [vmem:[%s2854_s0 + $0x1ec] ss:$20 sps:$4 sm:$0xff]   ;;  %v2260_v42 = vld [vmem:[%s2854_s0 + $0x1e8] ss:$20 sps:$4 sm:$0xff]  }
  0x34   :  { %1935 = vmatprep.subr.bf16.mxu1 %v2171_v41  ;;  %1006 = vmatprep.mubr.bf16.mxu1 %v2175_v43  ;;  %v2259_v41 = vld [vmem:[%s2854_s0 + $0x150] ss:$20 sps:$4 sm:$0xff]   ;;  %v2261_v43 = vld [vmem:[%s2854_s0 + $0x178] ss:$20 sps:$4 sm:$0xff]  }
  0x35   :  { %2069 = vmatprep.subr.bf16.mxu0 %v2203_v52 }
  0x36   :  { %2070 = vmatpush3.bf16.msra.mxu0 %v2203_v52  ;;  %v2272_v52 = vld [vmem:[%s2854_s0 + $0x264] ss:$20 sps:$4 sm:$0xff]  }
  0x37   :  { %1936 = vmatpush3.bf16.msra.mxu1 %v2172_v44  ;;  %2071 = vmatprep.subr.bf16.mxu0 %v2216_v57  ;;  %v2262_v44 = vld [vmem:[%s2854_s0 + $0x214] ss:$20 sps:$4 sm:$0xff]  }
  0x38   :  { %1937 = vmatprep.subr.bf16.mxu1 %v2179_v48  ;;  %v2267_v48 = vld [vmem:[%s2854_s0 + $0x23c] ss:$20 sps:$4 sm:$0xff]  }
  0x3a   :  { %911 = vmatmul.mubr.bf16.gmra.mrb[12].mxu0 %v2177_v46  ;;  %1007 = vmatmul.mubr.bf16.gmra.mrb[12].mxu1 %v2178_v47  ;;  %v2265_v46 = vld [vmem:[%s2854_s0 + $0x210] ss:$20 sps:$4 sm:$0xff]   ;;  %v2266_v47 = vld [vmem:[%s2854_s0 + $0x1c8] ss:$20 sps:$4 sm:$0xff]  }
  0x3b   :  { %1938 = vmatpush3.bf16.msra.mxu1 %v2180_v49  ;;  %918 = vmatprep.mubr.bf16.mxu0 %v2184_v51  ;;  %v2269_v49 = vld [vmem:[%s2854_s0 + $0x1f0] ss:$20 sps:$4 sm:$0xff]   ;;  %v2271_v51 = vld [vmem:[%s2854_s0 + $0x218] ss:$20 sps:$4 sm:$0xff]  }
  0x3c   :  { %1939 = vmatprep.subr.bf16.mxu1 %v2181_v50  ;;  %1047 = vmatprep.mubr.bf16.mxu1 %v2188_v53  ;;  %v2270_v50 = vld [vmem:[%s2854_s0 + $0x238] ss:$20 sps:$4 sm:$0xff]   ;;  %v2274_v53 = vld [vmem:[%s2854_s0 + $0x240] ss:$20 sps:$4 sm:$0xff]  }
  0x3d   :  { %2072 = vmatpush3.bf16.msra.mxu0 %v2216_v57 }
  0x3e   :  { %2073 = vmatprep.subr.bf16.mxu0 %v2223_v60 }
  0x3f   :  { %1940 = vmatpush3.bf16.msra.mxu1 %v2183_v54  ;;  %v2275_v54 = vld [vmem:[%s2854_s0 + $0x260] ss:$20 sps:$4 sm:$0xff]  }
  0x41   :  { %2074 = vmatpush3.bf16.msra.mxu0 %v2223_v60 }
  0x42   :  { %919 = vmatmul.mubr.bf16.gmra.mrb[16].mxu0 %v2189_v56  ;;  %1048 = vmatmul.mubr.bf16.vlgmr.msra.gmra.mrb[16].mxu1 %v2186_v55  ;;  %v2276_v55 = vld [vmem:[%s2854_s0 + $0x268] ss:$20 sps:$4 sm:$0xff]  }
  0x43   :  { %926 = vmatprep.mubr.bf16.mxu0 %v2190_v58  ;;  %1055 = vmatprep.mubr.bf16.mxu1 %v2192_v59 }
  0x44   :  { %2075 = vmatprep.subr.bf16.mxu0 %v2236_v1 }
  0x45   :  { %2076 = vmatpush3.bf16.msra.mxu0 %v2236_v1 }
  0x4a   :  { %927 = vmatmul.mubr.bf16.gmra.mrb[20].mxu0 %v2194_v61  ;;  %1056 = vmatmul.mubr.bf16.gmra.mrb[20].mxu1 %v2195_v62 }
  0x4b   :  { %934 = vmatprep.mubr.bf16.mxu0 %v2197_v63  ;;  %1063 = vmatprep.mubr.bf16.mxu1 %v2199_v0 }
  0x52   :  { %935 = vmatmul.mubr.bf16.gmra.mrb[24].mxu0 %v2201_v2  ;;  %1064 = vmatmul.mubr.bf16.gmra.mrb[24].mxu1 %v2202_v3 }
  0x53   :  { %942 = vmatprep.mubr.bf16.mxu0 %v2204_v4  ;;  %1071 = vmatprep.mubr.bf16.mxu1 %v2206_v5 }
  0x5a   :  { %943 = vmatmul.mubr.bf16.gmra.mrb[28].mxu0 %v2208_v6  ;;  %1072 = vmatmul.mubr.bf16.gmra.mrb[28].mxu1 %v2209_v7 }
  0x5b   :  { %950 = vmatprep.mubr.bf16.mxu0 %v2210_v8  ;;  %1079 = vmatprep.mubr.bf16.mxu1 %v2212_v9 }
  0x62   :  { %951 = vmatmul.mubr.bf16.gmra.mrb[32].mxu0 %v2214_v10  ;;  %1080 = vmatmul.mubr.bf16.gmra.mrb[32].mxu1 %v2215_v11 }
  0x63   :  { %958 = vmatprep.mubr.bf16.mxu0 %v2217_v12  ;;  %1087 = vmatprep.mubr.bf16.mxu1 %v2219_v13 }
  0x6a   :  { %959 = vmatmul.mubr.bf16.gmra.mrb[36].mxu0 %v2221_v14  ;;  %1088 = vmatmul.mubr.bf16.gmra.mrb[36].mxu1 %v2222_v15 }
  0x6b   :  { %966 = vmatprep.mubr.bf16.mxu0 %v2224_v16  ;;  %1095 = vmatprep.mubr.bf16.mxu1 %v2226_v17 }
  0x72   :  { %967 = vmatmul.mubr.bf16.gmra.mrb[40].mxu0 %v2228_v18  ;;  %1096 = vmatmul.mubr.bf16.gmra.mrb[40].mxu1 %v2229_v19 }
  0x73   :  { %974 = vmatprep.mubr.bf16.mxu0 %v2230_v20  ;;  %1103 = vmatprep.mubr.bf16.mxu1 %v2232_v21 }
  0x7a   :  { %975 = vmatmul.mubr.bf16.gmra.mrb[44].mxu0 %v2234_v22  ;;  %1104 = vmatmul.mubr.bf16.gmra.mrb[44].mxu1 %v2235_v23 }
  0x7b   :  { %1111 = vmatprep.mubr.bf16.mxu1 %v2237_v24  ;;  %2077 = vmatprep.mubr.bf16.mxu0 %v2239_v25 }
  0x82   :  { %1112 = vmatmul.mubr.bf16.gmra.mrb[48].mxu1 %v2240_v26  ;;  %2078 = vmatmul.mubr.bf16.vlgmr.msra.gmra.mrb[48].mxu0 %v2241_v27 }
  0x83   :  { %1119 = vmatprep.mubr.bf16.mxu1 %v2242_v28  ;;  %2081 = vmatprep.mubr.bf16.mxu0 %v2244_v29 }
  0x8a   :  { %1120 = vmatmul.mubr.bf16.gmra.mrb[52].mxu1 %v2245_v30  ;;  %2082 = vmatmul.mubr.bf16.gmra.mrb[52].mxu0 %v2246_v31 }
  0x8b   :  { %1127 = vmatprep.mubr.bf16.mxu1 %v2247_v32  ;;  %2085 = vmatprep.mubr.bf16.mxu0 %v2249_v33 }
  0x92   :  { %1128 = vmatmul.mubr.bf16.gmra.mrb[56].mxu1 %v2250_v34  ;;  %2086 = vmatmul.mubr.bf16.gmra.mrb[56].mxu0 %v2251_v35 }
  0x93   :  { %1135 = vmatprep.mubr.bf16.mxu1 %v2252_v36  ;;  %2089 = vmatprep.mubr.bf16.mxu0 %v2254_v37 }
  0x9a   :  { %1136 = vmatmul.mubr.bf16.gmra.mrb[60].mxu1 %v2255_v38  ;;  %2090 = vmatmul.mubr.bf16.gmra.mrb[60].mxu0 %v2256_v39 }
  0x9b   :  { %1143 = vmatprep.mubr.bf16.mxu1 %v2257_v40  ;;  %2093 = vmatprep.mubr.bf16.mxu0 %v2259_v41 }
  0xa2   :  { %1144 = vmatmul.mubr.bf16.gmra.mrb[64].mxu1 %v2260_v42  ;;  %2094 = vmatmul.mubr.bf16.gmra.mrb[64].mxu0 %v2261_v43  ;;  %v2676_v42 = vld [vmem:[%s2855_s2] ss:$0 sm:$0xff] }
  0xa3   :  { %1151 = vmatprep.mubr.bf16.mxu1 %v2262_v44  ;;  %2097 = vmatprep.mubr.bf16.mxu0 %v2264_v45 }
  0xaa   :  { %1152 = vmatmul.mubr.bf16.gmra.mrb[68].mxu1 %v2265_v46  ;;  %2098 = vmatmul.mubr.bf16.gmra.mrb[68].mxu0 %v2266_v47 }
  0xab   :  { %1159 = vmatprep.mubr.bf16.mxu1 %v2267_v48  ;;  %2101 = vmatprep.mubr.bf16.mxu0 %v2269_v49 }
  0xb2   :  { %1160 = vmatmul.mubr.bf16.gmra.mrb[72].mxu1 %v2270_v50  ;;  %2102 = vmatmul.mubr.bf16.gmra.mrb[72].mxu0 %v2271_v51 }
  0xb3   :  { %1167 = vmatprep.mubr.bf16.mxu1 %v2272_v52  ;;  %2105 = vmatprep.mubr.bf16.mxu0 %v2274_v53 }
  0xba   :  { %1168 = vmatmul.mubr.bf16.gmra.mrb[76].mxu1 %v2275_v54  ;;  %2106 = vmatmul.mubr.bf16.gmra.mrb[76].mxu0 %v2276_v55 }
  0xf5   :  { %v1901_v56 = vpop.f32.mrb[0].mxu1  ;;  %v1829_v57 = vpop.f32.mrb[0].mxu0 }
  0xf6   :  { %v1902_v58 = vpop.f32.mrb[1].mxu1  ;;  %v1830_v59 = vpop.f32.mrb[1].mxu0 }
  0xf7   :  { %v2657_v60 = vadd.f32 %v1902_v58, %v1901_v56  ;;  %v1904_v61 = vpop.f32.mrb[2].mxu1  ;;  %v1831_v62 = vadd.f32 %v1830_v59, %v1829_v57  ;;  %v1832_v63 = vpop.f32.mrb[2].mxu0 }
  0xf8   :  { %v1905_v0 = vpop.f32.mrb[3].mxu1  ;;  %v1833_v1 = vpop.f32.mrb[3].mxu0 }
  0xf9   :  { %v2659_v2 = vadd.f32 %v1905_v0, %v1904_v61  ;;  %v1834_v3 = vadd.f32 %v1833_v1, %v1832_v63  ;;  %v889_v45 = vadd.f32 %v1831_v62, %v2676_v42 }
  0xfb   :  { %v892_v52 = vadd.f32 %v1834_v3, %v2676_v42 }
  0xfd   :  { %v1907_v4 = vpop.f32.mrb[4].mxu1  ;;  %v1835_v5 = vpop.f32.mrb[4].mxu0 }
  0xfe   :  { %v1908_v6 = vpop.f32.mrb[5].mxu1  ;;  %v1836_v7 = vpop.f32.mrb[5].mxu0 }
  0xff   :  { %v2661_v8 = vadd.f32 %v1908_v6, %v1907_v4  ;;  %v1910_v9 = vpop.f32.mrb[6].mxu1  ;;  %v1837_v10 = vadd.f32 %v1836_v7, %v1835_v5  ;;  %v1838_v11 = vpop.f32.mrb[6].mxu0 }
 0x100   :  { %v1911_v12 = vpop.f32.mrb[7].mxu1  ;;  %v1839_v13 = vpop.f32.mrb[7].mxu0 }
 0x101   :  { %v2663_v14 = vadd.f32 %v1911_v12, %v1910_v9  ;;  %v1840_v15 = vadd.f32 %v1839_v13, %v1838_v11  ;;  %v897_v62 = vadd.f32 %v1837_v10, %v2676_v42 }
 0x103   :  { %v900_v3 = vadd.f32 %v1840_v15, %v2676_v42 }
 0x105   :  { %v1913_v16 = vpop.f32.mrb[8].mxu1  ;;  %v1841_v17 = vpop.f32.mrb[8].mxu0 }
 0x106   :  { %v1914_v18 = vpop.f32.mrb[9].mxu1  ;;  %v1842_v19 = vpop.f32.mrb[9].mxu0 }
 0x107   :  { %v2665_v20 = vadd.f32 %v1914_v18, %v1913_v16  ;;  %v1916_v21 = vpop.f32.mrb[10].mxu1  ;;  %v1843_v22 = vadd.f32 %v1842_v19, %v1841_v17  ;;  %v1844_v23 = vpop.f32.mrb[10].mxu0 }
 0x108   :  { %v1917_v24 = vpop.f32.mrb[11].mxu1  ;;  %v1845_v25 = vpop.f32.mrb[11].mxu0 }
 0x109   :  { %v2667_v26 = vadd.f32 %v1917_v24, %v1916_v21  ;;  %v1846_v27 = vadd.f32 %v1845_v25, %v1844_v23  ;;  %v905_v10 = vadd.f32 %v1843_v22, %v2676_v42 }
 0x10b   :  { %v908_v15 = vadd.f32 %v1846_v27, %v2676_v42 }
 0x10d   :  { %v1919_v28 = vpop.f32.mrb[12].mxu1  ;;  %v1847_v29 = vpop.f32.mrb[12].mxu0 }
 0x10e   :  { %v1920_v30 = vpop.f32.mrb[13].mxu1  ;;  %v1848_v31 = vpop.f32.mrb[13].mxu0 }
 0x10f   :  { %v2669_v32 = vadd.f32 %v1920_v30, %v1919_v28  ;;  %v1922_v33 = vpop.f32.mrb[14].mxu1  ;;  %v1849_v34 = vadd.f32 %v1848_v31, %v1847_v29  ;;  %v1850_v35 = vpop.f32.mrb[14].mxu0 }
 0x110   :  { %v1923_v36 = vpop.f32.mrb[15].mxu1  ;;  %v1851_v37 = vpop.f32.mrb[15].mxu0 }
 0x111   :  { %v2671_v38 = vadd.f32 %v1923_v36, %v1922_v33  ;;  %v1852_v39 = vadd.f32 %v1851_v37, %v1850_v35  ;;  %v913_v22 = vadd.f32 %v1849_v34, %v2676_v42 }
 0x113   :  { %v916_v27 = vadd.f32 %v1852_v39, %v2676_v42 }
 0x115   :  { %v1941_v40 = vpop.f32.mrb[16].mxu1  ;;  %v1853_v41 = vpop.f32.mrb[16].mxu0 }
 0x116   :  { %v1942_v43 = vpop.f32.mrb[17].mxu1  ;;  %v1854_v44 = vpop.f32.mrb[17].mxu0 }
 0x117   :  { %v1943_v46 = vadd.f32 %v1942_v43, %v1941_v40  ;;  %v1944_v47 = vpop.f32.mrb[18].mxu1  ;;  %v1855_v48 = vadd.f32 %v1854_v44, %v1853_v41  ;;  %v1856_v49 = vpop.f32.mrb[18].mxu0 }
 0x118   :  { %v1945_v50 = vpop.f32.mrb[19].mxu1  ;;  %v1857_v51 = vpop.f32.mrb[19].mxu0 }
 0x119   :  { %v1946_v53 = vadd.f32 %v1945_v50, %v1944_v47  ;;  %v1858_v54 = vadd.f32 %v1857_v51, %v1856_v49  ;;  %v2680_v55 = vadd.f32 %v1943_v46, %v889_v45  ;;  %v921_v34 = vadd.f32 %v1855_v48, %v2676_v42 }
 0x11b   :  { %v2682_v56 = vadd.f32 %v1946_v53, %v892_v52  ;;  %v924_v39 = vadd.f32 %v1858_v54, %v2676_v42 }
 0x11d   :  { %v1947_v57 = vpop.f32.mrb[20].mxu1  ;;  %v1859_v58 = vpop.f32.mrb[20].mxu0 }
 0x11e   :  { %v1948_v59 = vpop.f32.mrb[21].mxu1  ;;  %v1860_v61 = vpop.f32.mrb[21].mxu0 }
 0x11f   :  { %v1949_v63 = vadd.f32 %v1948_v59, %v1947_v57  ;;  %v1950_v0 = vpop.f32.mrb[22].mxu1  ;;  %v1861_v1 = vadd.f32 %v1860_v61, %v1859_v58  ;;  %v1862_v4 = vpop.f32.mrb[22].mxu0 }
 0x120   :  { %v1951_v5 = vpop.f32.mrb[23].mxu1  ;;  %v1863_v6 = vpop.f32.mrb[23].mxu0 }
 0x121   :  { %v1952_v7 = vadd.f32 %v1951_v5, %v1950_v0  ;;  %v1864_v9 = vadd.f32 %v1863_v6, %v1862_v4  ;;  %v2686_v11 = vadd.f32 %v1949_v63, %v897_v62  ;;  %v929_v48 = vadd.f32 %v1861_v1, %v2676_v42 }
 0x123   :  { %v2688_v12 = vadd.f32 %v1952_v7, %v900_v3 }
 0x125   :  { %v1953_v13 = vpop.f32.mrb[24].mxu1  ;;  %v1865_v16 = vpop.f32.mrb[24].mxu0 }
 0x126   :  { %v1954_v17 = vpop.f32.mrb[25].mxu1  ;;  %v1866_v18 = vpop.f32.mrb[25].mxu0 }
 0x127   :  { %v1955_v19 = vadd.f32 %v1954_v17, %v1953_v13  ;;  %v1956_v21 = vpop.f32.mrb[26].mxu1  ;;  %v1867_v23 = vadd.f32 %v1866_v18, %v1865_v16  ;;  %v1868_v24 = vpop.f32.mrb[26].mxu0 }
 0x128   :  { %v1957_v25 = vpop.f32.mrb[27].mxu1  ;;  %v1869_v28 = vpop.f32.mrb[27].mxu0 }
 0x129   :  { %v1958_v29 = vadd.f32 %v1957_v25, %v1956_v21  ;;  %v1870_v30 = vadd.f32 %v1869_v28, %v1868_v24  ;;  %v2692_v31 = vadd.f32 %v1955_v19, %v905_v10 }
 0x12b   :  { %v2694_v33 = vadd.f32 %v1958_v29, %v908_v15  ;;  %v932_v15 = vadd.f32 %v1864_v9, %v2676_v42 }
 0x12d   :  { %v1959_v35 = vpop.f32.mrb[28].mxu1  ;;  %v1871_v36 = vpop.f32.mrb[28].mxu0 }
 0x12e   :  { %v1960_v37 = vpop.f32.mrb[29].mxu1  ;;  %v1872_v40 = vpop.f32.mrb[29].mxu0 }
 0x12f   :  { %v1961_v41 = vadd.f32 %v1960_v37, %v1959_v35  ;;  %v1962_v43 = vpop.f32.mrb[30].mxu1  ;;  %v1873_v44 = vadd.f32 %v1872_v40, %v1871_v36  ;;  %v1874_v45 = vpop.f32.mrb[30].mxu0 }
 0x130   :  { %v1963_v46 = vpop.f32.mrb[31].mxu1  ;;  %v1875_v47 = vpop.f32.mrb[31].mxu0 }
 0x131   :  { %v1964_v49 = vadd.f32 %v1963_v46, %v1962_v43  ;;  %v1876_v50 = vadd.f32 %v1875_v47, %v1874_v45  ;;  %v2698_v51 = vadd.f32 %v1961_v41, %v913_v22  ;;  %v937_v43 = vadd.f32 %v1867_v23, %v2676_v42 }
 0x133   :  { %v2700_v52 = vadd.f32 %v1964_v49, %v916_v27 }
 0x135   :  { %v1965_v53 = vpop.f32.mrb[32].mxu1  ;;  %v1877_v57 = vpop.f32.mrb[32].mxu0 }
 0x136   :  { %v1966_v58 = vpop.f32.mrb[33].mxu1  ;;  %v1878_v59 = vpop.f32.mrb[33].mxu0 }
 0x137   :  { %v1967_v61 = vadd.f32 %v1966_v58, %v1965_v53  ;;  %v1968_v62 = vpop.f32.mrb[34].mxu1  ;;  %v1879_v63 = vadd.f32 %v1878_v59, %v1877_v57  ;;  %v1880_v0 = vpop.f32.mrb[34].mxu0  ;;  %v940_v53 = vadd.f32 %v1870_v30, %v2676_v42 }
 0x138   :  { %v1969_v4 = vpop.f32.mrb[35].mxu1  ;;  %v1881_v5 = vpop.f32.mrb[35].mxu0 }
 0x139   :  { %v1970_v6 = vadd.f32 %v1969_v4, %v1968_v62  ;;  %v2704_v3 = vadd.f32 %v1881_v5, %v1880_v0  ;;  %v2706_v7 = vadd.f32 %v1967_v61, %v921_v34  ;;  %v945_v4 = vadd.f32 %v1873_v44, %v2676_v42 }
 0x13b   :  { %v2708_v13 = vadd.f32 %v1970_v6, %v924_v39 }
 0x13d   :  { %v1971_v16 = vpop.f32.mrb[36].mxu1  ;;  %v1883_v17 = vpop.f32.mrb[36].mxu0 }
 0x13e   :  { %v1972_v18 = vpop.f32.mrb[37].mxu1  ;;  %v1884_v10 = vpop.f32.mrb[37].mxu0 }
 0x13f   :  { %v1973_v19 = vadd.f32 %v1972_v18, %v1971_v16  ;;  %v1974_v21 = vpop.f32.mrb[38].mxu1  ;;  %v2711_v24 = vadd.f32 %v1884_v10, %v1883_v17  ;;  %v1886_v25 = vpop.f32.mrb[38].mxu0  ;;  %v948_v18 = vadd.f32 %v1876_v50, %v2676_v42 }
 0x140   :  { %v1975_v28 = vpop.f32.mrb[39].mxu1  ;;  %v1887_v54 = vpop.f32.mrb[39].mxu0 }
 0x141   :  { %v1976_v29 = vadd.f32 %v1975_v28, %v1974_v21  ;;  %v2714_v35 = vadd.f32 %v1887_v54, %v1886_v25  ;;  %v2716_v36 = vadd.f32 %v1973_v19, %v929_v48 }
 0x143   :  { %v2718_v37 = vadd.f32 %v1976_v29, %v932_v15  ;;  %v953_v29 = vadd.f32 %v1879_v63, %v2676_v42 }
 0x145   :  { %v1977_v40 = vpop.f32.mrb[40].mxu1  ;;  %v1889_v22 = vpop.f32.mrb[40].mxu0 }
 0x146   :  { %v1978_v41 = vpop.f32.mrb[41].mxu1  ;;  %v1890_v1 = vpop.f32.mrb[41].mxu0 }
 0x147   :  { %v1979_v45 = vadd.f32 %v1978_v41, %v1977_v40  ;;  %v1980_v46 = vpop.f32.mrb[42].mxu1  ;;  %v2721_v47 = vadd.f32 %v1890_v1, %v1889_v22  ;;  %v1892_v27 = vpop.f32.mrb[42].mxu0 }
 0x148   :  { %v1981_v49 = vpop.f32.mrb[43].mxu1  ;;  %v1893_v9 = vpop.f32.mrb[43].mxu0 }
 0x149   :  { %v1982_v57 = vadd.f32 %v1981_v49, %v1980_v46  ;;  %v2724_v58 = vadd.f32 %v1893_v9, %v1892_v27  ;;  %v2726_v59 = vadd.f32 %v1979_v45, %v937_v43  ;;  %v956_v46 = vadd.f32 %v2704_v3, %v2676_v42 }
 0x14b   :  { %v2728_v34 = vadd.f32 %v1982_v57, %v940_v53 }
 0x14d   :  { %v1983_v61 = vpop.f32.mrb[44].mxu1  ;;  %v1895_v62 = vpop.f32.mrb[44].mxu0 }
 0x14e   :  { %v1984_v0 = vpop.f32.mrb[45].mxu1  ;;  %v1896_v23 = vpop.f32.mrb[45].mxu0 }
 0x14f   :  { %v1985_v5 = vadd.f32 %v1984_v0, %v1983_v61  ;;  %v1986_v39 = vpop.f32.mrb[46].mxu1  ;;  %v2731_v6 = vadd.f32 %v1896_v23, %v1895_v62  ;;  %v1898_v16 = vpop.f32.mrb[46].mxu0 }
 0x150   :  { %v1987_v17 = vpop.f32.mrb[47].mxu1  ;;  %v1899_v30 = vpop.f32.mrb[47].mxu0 }
 0x151   :  { %v1988_v10 = vadd.f32 %v1987_v17, %v1986_v39  ;;  %v2734_v48 = vadd.f32 %v1899_v30, %v1898_v16  ;;  %v2736_v19 = vadd.f32 %v1985_v5, %v945_v4  ;;  %v961_v4 = vadd.f32 %v2711_v24, %v2676_v42 }
 0x153   :  { %v2738_v21 = vadd.f32 %v1988_v10, %v948_v18 }
 0x155   :  { %v1989_v25 = vpop.f32.mrb[48].mxu1  ;;  %v2079_v28 = vpop.f32.mrb[48].mxu0 }
 0x156   :  { %v1219_v44 = vadd.f32 %v2079_v28, %v2686_v11  ;;  %v1990_v54 = vpop.f32.mrb[49].mxu1  ;;  %v1210_v15 = vpop.f32.mrb[49].mxu0 }
 0x157   :  { %v1991_v40 = vadd.f32 %v1990_v54, %v1989_v25  ;;  %v1211_v22 = vadd.f32 %v1210_v15, %v2680_v55  ;;  %v1992_v41 = vpop.f32.mrb[50].mxu1  ;;  %v2080_v50 = vpop.f32.mrb[50].mxu0 }
 0x158   :  { %v1222_v1 = vadd.f32 %v2080_v50, %v2688_v12  ;;  %v1993_v43 = vpop.f32.mrb[51].mxu1  ;;  %v1213_v45 = vpop.f32.mrb[51].mxu0  ;;  %v1339_v9 = vmax.f32 %v1219_v44, 0.0 }
 0x159   :  { %v1994_v27 = vadd.f32 %v1993_v43, %v1992_v41  ;;  %v1214_v49 = vadd.f32 %v1213_v45, %v2682_v56  ;;  %v2747_v11 = vadd.f32 %v1991_v40, %v953_v29  ;;  %v1337_v63 = vmax.f32 %v1211_v22, 0.0 }
 0x15a   :  { %v1340_v53 = vmax.f32 %v1222_v1, 0.0  ;;  %v969_v1 = vadd.f32 %v2721_v47, %v2676_v42 }
 0x15b   :  { %v1338_v57 = vmax.f32 %v1214_v49, 0.0  ;;  %v2749_v61 = vadd.f32 %v1994_v27, %v956_v46 }
 0x15c   :  { %v1726_v55 = vpack.c.bf16 %v1340_v53, %v1339_v9 }
 0x15d   :  { %v1721_v62 = vpack.c.bf16 %v1338_v57, %v1337_v63  ;;  %v1995_v0 = vpop.f32.mrb[52].mxu1  ;;  %v2083_v12 = vpop.f32.mrb[52].mxu0 }
 0x15e   :  { %1798 = vst [vmem:[%s2856_s3 + $0x8] sm:$0xff] %v1726_v55   ;;  %v1235_v3 = vadd.f32 %v2083_v12, %v2698_v51  ;;  %v1996_v23 = vpop.f32.mrb[53].mxu1  ;;  %v1226_v56 = vpop.f32.mrb[53].mxu0  ;;  %v964_v51 = vadd.f32 %v2714_v35, %v2676_v42 }
 0x15f   :  { %1722 = vst [vmem:[%s2856_s3] sm:$0xff] %v1721_v62   ;;  %v1997_v5 = vadd.f32 %v1996_v23, %v1995_v0  ;;  %v1227_v39 = vadd.f32 %v1226_v56, %v2692_v31  ;;  %v1998_v16 = vpop.f32.mrb[54].mxu1  ;;  %v2084_v17 = vpop.f32.mrb[54].mxu0 }
 0x160   :  { %v1238_v30 = vadd.f32 %v2084_v17, %v2700_v52  ;;  %v1999_v18 = vpop.f32.mrb[55].mxu1  ;;  %v1229_v10 = vpop.f32.mrb[55].mxu0  ;;  %v1343_v44 = vmax.f32 %v1235_v3, 0.0 }
 0x161   :  { %v2000_v25 = vadd.f32 %v1999_v18, %v1998_v16  ;;  %v1230_v28 = vadd.f32 %v1229_v10, %v2694_v33  ;;  %v2765_v24 = vadd.f32 %v1997_v5, %v961_v4  ;;  %v1341_v15 = vmax.f32 %v1227_v39, 0.0 }
 0x162   :  { %v1344_v54 = vmax.f32 %v1238_v30, 0.0  ;;  %v977_v5 = vadd.f32 %v2731_v6, %v2676_v42 }
 0x163   :  { %v1342_v29 = vmax.f32 %v1230_v28, 0.0  ;;  %v2767_v40 = vadd.f32 %v2000_v25, %v964_v51 }
 0x164   :  { %v1736_v31 = vpack.c.bf16 %v1344_v54, %v1343_v44 }
 0x165   :  { %v1731_v22 = vpack.c.bf16 %v1342_v29, %v1341_v15  ;;  %v2001_v41 = vpop.f32.mrb[56].mxu1  ;;  %v2087_v52 = vpop.f32.mrb[56].mxu0 }
 0x166   :  { %1800 = vst [vmem:[%s2856_s3 + $0x18] sm:$0xff] %v1736_v31   ;;  %v1251_v35 = vadd.f32 %v2087_v52, %v2716_v36  ;;  %v2002_v50 = vpop.f32.mrb[57].mxu1  ;;  %v1242_v33 = vpop.f32.mrb[57].mxu0  ;;  %v972_v36 = vadd.f32 %v2724_v58, %v2676_v42 }
 0x167   :  { %1799 = vst [vmem:[%s2856_s3 + $0x10] sm:$0xff] %v1731_v22   ;;  %v2003_v43 = vadd.f32 %v2002_v50, %v2001_v41  ;;  %v1243_v45 = vadd.f32 %v1242_v33, %v2706_v7  ;;  %v2004_v46 = vpop.f32.mrb[58].mxu1  ;;  %v2088_v27 = vpop.f32.mrb[58].mxu0 }
 0x168   :  { %v1254_v49 = vadd.f32 %v2088_v27, %v2718_v37  ;;  %v2005_v9 = vpop.f32.mrb[59].mxu1  ;;  %v1245_v53 = vpop.f32.mrb[59].mxu0  ;;  %v1347_v55 = vmax.f32 %v1251_v35, 0.0 }
 0x169   :  { %v2006_v63 = vadd.f32 %v2005_v9, %v2004_v46  ;;  %v1246_v57 = vadd.f32 %v1245_v53, %v2708_v13  ;;  %v2783_v47 = vadd.f32 %v2003_v43, %v969_v1  ;;  %v1345_v0 = vmax.f32 %v1243_v45, 0.0 }
 0x16a   :  { %v1348_v62 = vmax.f32 %v1254_v49, 0.0 }
 0x16b   :  { %v1346_v12 = vmax.f32 %v1246_v57, 0.0  ;;  %v2785_v3 = vadd.f32 %v2006_v63, %v972_v36 }
 0x16c   :  { %v1746_v7 = vpack.c.bf16 %v1348_v62, %v1347_v55 }
 0x16d   :  { %v1741_v23 = vpack.c.bf16 %v1346_v12, %v1345_v0  ;;  %v2007_v56 = vpop.f32.mrb[60].mxu1  ;;  %v2091_v37 = vpop.f32.mrb[60].mxu0 }
 0x16e   :  { %1802 = vst [vmem:[%s2856_s3 + $0x28] sm:$0xff] %v1746_v7   ;;  %v1267_v58 = vadd.f32 %v2091_v37, %v2736_v19  ;;  %v2008_v4 = vpop.f32.mrb[61].mxu1  ;;  %v1258_v13 = vpop.f32.mrb[61].mxu0  ;;  %v980_v19 = vadd.f32 %v2734_v48, %v2676_v42 }
 0x16f   :  { %1801 = vst [vmem:[%s2856_s3 + $0x20] sm:$0xff] %v1741_v23   ;;  %v2009_v39 = vadd.f32 %v2008_v4, %v2007_v56  ;;  %v1259_v16 = vadd.f32 %v1258_v13, %v2726_v59  ;;  %v2010_v17 = vpop.f32.mrb[62].mxu1  ;;  %v2092_v30 = vpop.f32.mrb[62].mxu0 }
 0x170   :  { %v1270_v18 = vadd.f32 %v2092_v30, %v2738_v21  ;;  %v2011_v10 = vpop.f32.mrb[63].mxu1  ;;  %v1261_v51 = vpop.f32.mrb[63].mxu0  ;;  %v1351_v44 = vmax.f32 %v1267_v58, 0.0 }
 0x171   :  { %v2012_v25 = vadd.f32 %v2011_v10, %v2010_v17  ;;  %v1262_v28 = vadd.f32 %v1261_v51, %v2728_v34  ;;  %v1138_v6 = vadd.f32 %v2009_v39, %v977_v5  ;;  %v1349_v15 = vmax.f32 %v1259_v16, 0.0 }
 0x172   :  { %v1352_v54 = vmax.f32 %v1270_v18, 0.0  ;;  %v985_v34 = vadd.f32 %v2657_v60, %v2676_v42  ;;  %v996_v39 = vadd.f32 %v2663_v14, %v2676_v42 }
 0x173   :  { %v1350_v29 = vmax.f32 %v1262_v28, 0.0  ;;  %v1141_v31 = vadd.f32 %v2012_v25, %v980_v19 }
 0x174   :  { %v1756_v22 = vpack.c.bf16 %v1352_v54, %v1351_v44 }
 0x175   :  { %v1751_v59 = vpack.c.bf16 %v1350_v29, %v1349_v15  ;;  %v2013_v41 = vpop.f32.mrb[64].mxu1  ;;  %v2095_v52 = vpop.f32.mrb[64].mxu0 }
 0x176   :  { %1804 = vst [vmem:[%s2856_s3 + $0x38] sm:$0xff] %v1756_v22   ;;  %v1283_v21 = vadd.f32 %v2095_v52, %v2765_v24  ;;  %v2014_v48 = vpop.f32.mrb[65].mxu1  ;;  %v1274_v35 = vpop.f32.mrb[65].mxu0  ;;  %v988_v24 = vadd.f32 %v2659_v2, %v2676_v42 }
 0x177   :  { %1803 = vst [vmem:[%s2856_s3 + $0x30] sm:$0xff] %v1751_v59   ;;  %v2015_v50 = vadd.f32 %v2014_v48, %v2013_v41  ;;  %v1275_v33 = vadd.f32 %v1274_v35, %v2747_v11  ;;  %v2016_v1 = vpop.f32.mrb[66].mxu1  ;;  %v2096_v43 = vpop.f32.mrb[66].mxu0 }
 0x178   :  { %v1286_v45 = vadd.f32 %v2096_v43, %v2767_v40  ;;  %v2017_v46 = vpop.f32.mrb[67].mxu1  ;;  %v1277_v27 = vpop.f32.mrb[67].mxu0  ;;  %v1355_v53 = vmax.f32 %v1283_v21, 0.0  ;;  %v1004_v21 = vadd.f32 %v2667_v26, %v2676_v42  ;;  %v1009_v26 = vadd.f32 %v2669_v32, %v2676_v42 }
 0x179   :  { %v2018_v49 = vadd.f32 %v2017_v46, %v2016_v1  ;;  %v1278_v9 = vadd.f32 %v1277_v27, %v2749_v61  ;;  %v1146_v60 = vadd.f32 %v2015_v50, %v985_v34  ;;  %v1353_v63 = vmax.f32 %v1275_v33, 0.0 }
 0x17a   :  { %v1356_v36 = vmax.f32 %v1286_v45, 0.0  ;;  %v993_v61 = vadd.f32 %v2661_v8, %v2676_v42 }
 0x17b   :  { %v1354_v57 = vmax.f32 %v1278_v9, 0.0  ;;  %v1149_v55 = vadd.f32 %v2018_v49, %v988_v24 }
 0x17c   :  { %v1766_v62 = vpack.c.bf16 %v1356_v36, %v1355_v53 }
 0x17d   :  { %v1761_v11 = vpack.c.bf16 %v1354_v57, %v1353_v63  ;;  %v2019_v0 = vpop.f32.mrb[68].mxu1  ;;  %v2099_v12 = vpop.f32.mrb[68].mxu0 }
 0x17e   :  { %1806 = vst [vmem:[%s2856_s3 + $0x48] sm:$0xff] %v1766_v62   ;;  %v1299_v40 = vadd.f32 %v2099_v12, %v1138_v6  ;;  %v2020_v7 = vpop.f32.mrb[69].mxu1  ;;  %v1290_v2 = vpop.f32.mrb[69].mxu0  ;;  %v1012_v62 = vadd.f32 %v2671_v38, %v2676_v42 }
 0x17f   :  { %1805 = vst [vmem:[%s2856_s3 + $0x40] sm:$0xff] %v1761_v11   ;;  %v2021_v23 = vadd.f32 %v2020_v7, %v2019_v0  ;;  %v1291_v56 = vadd.f32 %v1290_v2, %v2783_v47  ;;  %v2022_v37 = vpop.f32.mrb[70].mxu1  ;;  %v2100_v58 = vpop.f32.mrb[70].mxu0 }
 0x180   :  { %v1302_v4 = vadd.f32 %v2100_v58, %v1141_v31  ;;  %v2023_v13 = vpop.f32.mrb[71].mxu1  ;;  %v1293_v5 = vpop.f32.mrb[71].mxu0  ;;  %v1359_v8 = vmax.f32 %v1299_v40, 0.0 }
 0x181   :  { %v2024_v16 = vadd.f32 %v2023_v13, %v2022_v37  ;;  %v1294_v17 = vadd.f32 %v1293_v5, %v2785_v3  ;;  %v1154_v30 = vadd.f32 %v2021_v23, %v993_v61  ;;  %v1357_v10 = vmax.f32 %v1291_v56, 0.0 }
 0x182   :  { %v1360_v18 = vmax.f32 %v1302_v4, 0.0  ;;  %v1001_v3 = vadd.f32 %v2665_v20, %v2676_v42 }
 0x183   :  { %v1358_v51 = vmax.f32 %v1294_v17, 0.0  ;;  %v1157_v19 = vadd.f32 %v2024_v16, %v996_v39 }
 0x184   :  { %v1776_v25 = vpack.c.bf16 %v1360_v18, %v1359_v8 }
 0x185   :  { %v1771_v28 = vpack.c.bf16 %v1358_v51, %v1357_v10  ;;  %v2025_v47 = vpop.f32.mrb[72].mxu1  ;;  %v2103_v6 = vpop.f32.mrb[72].mxu0 }
 0x186   :  { %1808 = vst [vmem:[%s2856_s3 + $0x58] sm:$0xff] %v1776_v25   ;;  %v1315_v44 = vadd.f32 %v2103_v6, %v1154_v30  ;;  %v2026_v54 = vpop.f32.mrb[73].mxu1  ;;  %v1306_v14 = vpop.f32.mrb[73].mxu0 }
 0x187   :  { %1807 = vst [vmem:[%s2856_s3 + $0x50] sm:$0xff] %v1771_v28   ;;  %v2027_v15 = vadd.f32 %v2026_v54, %v2025_v47  ;;  %v1307_v29 = vadd.f32 %v1306_v14, %v1146_v60  ;;  %v2028_v31 = vpop.f32.mrb[74].mxu1  ;;  %v2104_v22 = vpop.f32.mrb[74].mxu0 }
 0x188   :  { %v1318_v59 = vadd.f32 %v2104_v22, %v1157_v19  ;;  %v2029_v41 = vpop.f32.mrb[75].mxu1  ;;  %v1309_v52 = vpop.f32.mrb[75].mxu0  ;;  %v1363_v50 = vmax.f32 %v1315_v44, 0.0 }
 0x189   :  { %v2030_v48 = vadd.f32 %v2029_v41, %v2028_v31  ;;  %v1310_v35 = vadd.f32 %v1309_v52, %v1149_v55  ;;  %v1162_v34 = vadd.f32 %v2027_v15, %v1001_v3  ;;  %v1361_v20 = vmax.f32 %v1307_v29, 0.0 }
 0x18a   :  { %v1364_v33 = vmax.f32 %v1318_v59, 0.0 }
 0x18b   :  { %v1362_v1 = vmax.f32 %v1310_v35, 0.0  ;;  %v1165_v43 = vadd.f32 %v2030_v48, %v1004_v21 }
 0x18c   :  { %v1786_v45 = vpack.c.bf16 %v1364_v33, %v1363_v50 }
 0x18d   :  { %v1781_v46 = vpack.c.bf16 %v1362_v1, %v1361_v20  ;;  %v2031_v27 = vpop.f32.mrb[76].mxu1  ;;  %v2107_v24 = vpop.f32.mrb[76].mxu0 }
 0x18e   :  { %1810 = vst [vmem:[%s2856_s3 + $0x68] sm:$0xff] %v1786_v45   ;;  %v2032_v49 = vpop.f32.mrb[77].mxu1  ;;  %v1322_v9 = vpop.f32.mrb[77].mxu0 }
 0x18f   :  { %1809 = vst [vmem:[%s2856_s3 + $0x60] sm:$0xff] %v1781_v46   ;;  %v2033_v60 = vadd.f32 %v2032_v49, %v2031_v27  ;;  %v1323_v53 = vadd.f32 %v1322_v9, %v1162_v34  ;;  %v2034_v36 = vpop.f32.mrb[78].mxu1  ;;  %v2108_v63 = vpop.f32.mrb[78].mxu0 }
 0x190   :  { %v2035_v57 = vpop.f32.mrb[79].mxu1  ;;  %v1325_v55 = vpop.f32.mrb[79].mxu0 }
 0x191   :  { %v1170_v11 = vadd.f32 %v2033_v60, %v1009_v26  ;;  %v2036_v0 = vadd.f32 %v2035_v57, %v2034_v36  ;;  %v1326_v12 = vadd.f32 %v1325_v55, %v1165_v43  ;;  %v1365_v7 = vmax.f32 %v1323_v53, 0.0 }
 0x193   :  { %v1331_v40 = vadd.f32 %v2107_v24, %v1170_v11  ;;  %v1173_v2 = vadd.f32 %v2036_v0, %v1012_v62  ;;  %v1366_v32 = vmax.f32 %v1326_v12, 0.0 }
 0x195   :  { %v1334_v61 = vadd.f32 %v2108_v63, %v1173_v2  ;;  %v1791_v23 = vpack.c.bf16 %v1366_v32, %v1365_v7  ;;  %v1367_v56 = vmax.f32 %v1331_v40, 0.0 }
 0x197   :  { %v1368_v37 = vmax.f32 %v1334_v61, 0.0  ;;  %1811 = vst [vmem:[%s2856_s3 + $0x70] sm:$0xff] %v1791_v23  }
 0x199   :  { %v1796_v58 = vpack.c.bf16 %v1368_v37, %v1367_v56 }
 0x19b   :  { %1812 = vst [vmem:[%s2856_s3 + $0x78] sm:$0xff] %v1796_v58  }

// kernel: _lambda_.10
= control target key start
LH: loop header
LB: loop body
LE: loop exit
PB: predicated region body
PF: predicated region fallthrough
CT: control target
= control target key end

     0   :  { %s218_s0 = inlined_call_operand.vmem [shape: bf16[56,128], index: 0, kind: input, shape index: {}]   ;;  %s219_s1 = inlined_call_operand.vmem [shape: bf16[56,128], index: 1, kind: input, shape index: {}]   ;;  %s220_s2 = inlined_call_operand.vmem [shape: bf16[56,128], index: 2, kind: input, shape index: {}]   ;;  %s221_s3 = inlined_call_operand.vmem [shape: bf16[56,128], index: 3, kind: input, shape index: {}]   ;;  %s222_s4 = inlined_call_operand.vmem [shape: bf16[56,128], index: 4, kind: output, shape index: {}]  }
   0x1   :  { %v17_v0 = vld [vmem:[%s218_s0] sm:$0xf]  ;;  %v18_v1 = vld [vmem:[%s218_s0 + $0x4] sm:$0xf]  ;;  %v19_v10 = vld [vmem:[%s218_s0 + $0x8] sm:$0xf] }
   0x2   :  { %v24_v2 = vld [vmem:[%s219_s1] sm:$0xf]  ;;  %v25_v3 = vld [vmem:[%s219_s1 + $0x4] sm:$0xf]  ;;  %v20_v13 = vld [vmem:[%s218_s0 + $0xc] sm:$0xf] }
   0x3   :  { %v31_v4 = vmax.bf16 %v24_v2, %v17_v0  ;;  %v38_v5 = vld [vmem:[%s220_s2] sm:$0xf]  ;;  %v39_v6 = vld [vmem:[%s220_s2 + $0x4] sm:$0xf]  ;;  %v32_v7 = vmax.bf16 %v25_v3, %v18_v1  ;;  %v26_v14 = vld [vmem:[%s219_s1 + $0x8] sm:$0xf] }
   0x4   :  { %v45_v8 = vld [vmem:[%s221_s3] sm:$0xf]  ;;  %v46_v9 = vld [vmem:[%s221_s3 + $0x4] sm:$0xf]  ;;  %v27_v15 = vld [vmem:[%s219_s1 + $0xc] sm:$0xf]  ;;  %v33_v16 = vmax.bf16 %v26_v14, %v19_v10 }
   0x5   :  { %v52_v11 = vmax.bf16 %v45_v8, %v38_v5  ;;  %v53_v12 = vmax.bf16 %v46_v9, %v39_v6  ;;  %v34_v17 = vmax.bf16 %v27_v15, %v20_v13  ;;  %v40_v18 = vld [vmem:[%s220_s2 + $0x8] sm:$0xf]  ;;  %v41_v19 = vld [vmem:[%s220_s2 + $0xc] sm:$0xf]  ;;  %v21_v25 = vld [vmem:[%s218_s0 + $0x10] sm:$0xf] }
   0x6   :  { %v47_v20 = vld [vmem:[%s221_s3 + $0x8] sm:$0xf]  ;;  %v48_v23 = vld [vmem:[%s221_s3 + $0xc] sm:$0xf]  ;;  %v22_v26 = vld [vmem:[%s218_s0 + $0x14] sm:$0xf] }
   0x7   :  { %v59_v21 = vmax.bf16 %v52_v11, %v31_v4  ;;  %v60_v22 = vmax.bf16 %v53_v12, %v32_v7  ;;  %v54_v24 = vmax.bf16 %v47_v20, %v40_v18  ;;  %v55_v27 = vmax.bf16 %v48_v23, %v41_v19  ;;  %v28_v28 = vld [vmem:[%s219_s1 + $0x10] sm:$0xf]  ;;  %v29_v29 = vld [vmem:[%s219_s1 + $0x14] sm:$0xf]  ;;  %v23_v41 = vld [vmem:[%s218_s0 + $0x18] sm:$0xf] }
   0x8   :  { %v42_v30 = vld [vmem:[%s220_s2 + $0x10] sm:$0xf]  ;;  %v35_v33 = vmax.bf16 %v28_v28, %v21_v25  ;;  %v36_v34 = vmax.bf16 %v29_v29, %v22_v26  ;;  %v43_v35 = vld [vmem:[%s220_s2 + $0x14] sm:$0xf]  ;;  %v30_v42 = vld [vmem:[%s219_s1 + $0x18] sm:$0xf] }
   0x9   :  { %v92_v31 = vcombine.low %v59_v21, %v60_v22  ;;  %v61_v32 = vmax.bf16 %v54_v24, %v33_v16  ;;  %v49_v36 = vld [vmem:[%s221_s3 + $0x10] sm:$0xf]  ;;  %v50_v37 = vld [vmem:[%s221_s3 + $0x14] sm:$0xf]  ;;  %v62_v38 = vmax.bf16 %v55_v27, %v34_v17  ;;  %v44_v43 = vld [vmem:[%s220_s2 + $0x18] sm:$0xf]  ;;  %v37_v44 = vmax.bf16 %v30_v42, %v23_v41 }
   0xa   :  { %v56_v39 = vmax.bf16 %v49_v36, %v42_v30  ;;  %v57_v40 = vmax.bf16 %v50_v37, %v43_v35  ;;  %v51_v45 = vld [vmem:[%s221_s3 + $0x18] sm:$0xf] }
   0xb   :  { %81 = vst [vmem:[%s222_s4] sm:$0xff] %v92_v31   ;;  %v93_v46 = vcombine.low %v61_v32, %v62_v38  ;;  %v58_v49 = vmax.bf16 %v51_v45, %v44_v43 }
   0xc   :  { %v63_v47 = vmax.bf16 %v56_v39, %v35_v33  ;;  %v64_v48 = vmax.bf16 %v57_v40, %v36_v34 }
   0xd   :  { %94 = vst [vmem:[%s222_s4 + $0x8] sm:$0xff] %v93_v46   ;;  %v65_v51 = vmax.bf16 %v58_v49, %v37_v44 }
   0xe   :  { %v95_v50 = vcombine.low %v63_v47, %v64_v48 }
   0xf   :  { %72 = vst [vmem:[%s222_s4 + $0x18] sm:$0xf] %v65_v51 }
  0x10   :  { %96 = vst [vmem:[%s222_s4 + $0x10] sm:$0xff] %v95_v50  }

// kernel: _lambda_.11
= control target key start
LH: loop header
LB: loop body
LE: loop exit
PB: predicated region body
PF: predicated region fallthrough
CT: control target
= control target key end

     0   :  { %v282_v3 = vmov 0.0|0.0   ;;  %vm283_vm0 = vmmov 0   ;;  %v284_v6 = vmov 0.0   ;;  %vm33_vm1 = vcmask 1040384   ;;  %s394_s0 = inlined_call_operand.vmem [shape: bf16[2,25,128], index: 0, kind: input, shape index: {}]   ;;  %s395_s1 = inlined_call_operand.vmem [shape: f32[128,128], index: 1, kind: input, shape index: {}]   ;;  %s396_s2 = inlined_call_operand.vmem [shape: f32[1,128], index: 2, kind: input, shape index: {}]   ;;  %s397_s3 = inlined_call_operand.hbm [shape: f32[2,128], index: 3, kind: output, shape index: {}]  }
   0x1   :  { %v55_v0 = vld [vmem:[%s395_s1] sm:$0xff]  ;;  %v56_v1 = vld [vmem:[%s395_s1 + $0x8] sm:$0xff]  ;;  %v57_v2 = vld [vmem:[%s395_s1 + $0x10] sm:$0xff]  ;;  %230 = vmatprep.subr.bf16.mxu0 %v282_v3  ;;  %227 = vmatprep.mubr.msk.f32.mxu0 %vm283_vm0, %v284_v6 }
   0x2   :  { %v231_v4 = vpack.c.bf16 %v56_v1, %v55_v0  ;;  %v58_v5 = vld [vmem:[%s395_s1 + $0x18] sm:$0xff]  ;;  %v59_v8 = vld [vmem:[%s395_s1 + $0x20] sm:$0xff]  ;;  %v60_v9 = vld [vmem:[%s395_s1 + $0x28] sm:$0xff] }
   0x3   :  { %v234_v7 = vpack.c.bf16 %v58_v5, %v57_v2  ;;  %v170_v10 = vld [vmem:[%s394_s0] sm:$0xff]   ;;  %v17_v11 = vld [vmem:[%s394_s0 + $0x8] ss:$16 sps:$4 sm:$0xff]   ;;  %v237_v12 = vpack.c.bf16 %v60_v9, %v59_v8  ;;  %v18_v15 = vld [vmem:[%s394_s0 + $0xc] sm:$0x1] }
   0x4   :  { %232 = vmatpush3.bf16.msra.mxu0 %v231_v4  ;;  %v171_v13 = vunpack.c.l.bf16 %v170_v10  ;;  %v172_v14 = vunpack.c.h.bf16 %v170_v10  ;;  %v177_v16 = vld [vmem:[%s394_s0 + $0x10] sm:$0xff]   ;;  %v22_v17 = vld [vmem:[%s394_s0 + $0x1c] sm:$0x1]  ;;  %v25_v18 = vunpack.c.l.bf16 %v17_v11  ;;  %v26_v21 = vunpack.c.l.bf16 %v18_v15 }
   0x5   :  { %233 = vmatprep.subr.bf16.mxu0 %v282_v3  ;;  %v175_v19 = vunpack.c.l.bf16 %v177_v16  ;;  %v176_v20 = vunpack.c.h.bf16 %v177_v16  ;;  %v29_v22 = vunpack.c.h.bf16 %v17_v11 }
   0x8   :  { %235 = vmatpush3.bf16.msra.mxu0 %v234_v7 }
   0x9   :  { %8 = vsyncpa [#allocation3], 0  ;;  %236 = vmatprep.subr.bf16.mxu0 %v282_v3  ;;  %v61_v23 = vld [vmem:[%s395_s1 + $0x30] sm:$0xff]  ;;  %v62_v24 = vld [vmem:[%s395_s1 + $0x38] sm:$0xff]  ;;  %v30_v25 = vunpack.c.l.bf16 %v22_v17  ;;  %v31_v26 = vadd.f32 %v172_v14, %v171_v13  ;;  %v34_v27 = vsel %vm33_vm1, %v26_v21, 0.0  ;;  %v42_v28 = vadd.f32 %v176_v20, %v175_v19  ;;  %s285_s28 = smov [#allocation2]  }
   0xa   :  { %v240_v31 = vpack.c.bf16 %v62_v24, %v61_v23  ;;  %v63_v33 = vld [vmem:[%s395_s1 + $0x40] sm:$0xff]  ;;  %v64_v34 = vld [vmem:[%s395_s1 + $0x48] sm:$0xff]  ;;  %v65_v40 = vld [vmem:[%s395_s1 + $0x50] sm:$0xff]  ;;  %vm80_vm2 = vcmask 1041409   ;;  %s160_s29 = sshll.u32 %s285_s28, 4  ;;  %s161_s29 = int_to_ptr.vmem [resolvable:$true] %s160_s29 }
   0xb   :  { %v32_v29 = vadd.f32 %v31_v26, %v25_v18  ;;  %v44_v30 = vsel %vm33_vm1, %v30_v25, 0.0  ;;  %v43_v32 = vadd.f32 %v42_v28, %v29_v22  ;;  %v243_v38 = vpack.c.bf16 %v64_v34, %v63_v33  ;;  %v66_v41 = vld [vmem:[%s395_s1 + $0x58] sm:$0xff]  ;;  %v67_v47 = vld [vmem:[%s395_s1 + $0x60] sm:$0xff]  ;;  %v68_v48 = vld [vmem:[%s395_s1 + $0x68] sm:$0xff]  ;;  %p263_p1 = scmp.lt.s32.totalorder %s161_s29, %s161_s29 }
   0xc   :  { %238 = vmatpush3.bf16.msra.mxu0 %v237_v12  ;;  %v246_v45 = vpack.c.bf16 %v66_v41, %v65_v40  ;;  %v249_v52 = vpack.c.bf16 %v68_v48, %v67_v47  ;;  %v69_v54 = vld [vmem:[%s395_s1 + $0x70] sm:$0xff]  ;;  %v70_v55 = vld [vmem:[%s395_s1 + $0x78] sm:$0xff]  ;;  %v168_v62 = vld [vmem:[%s396_s2] ss:$0 sm:$0xff]  ;;  %s258_s1 = scalar_lea.vmem %s161_s29, 32 }
   0xd   :  { %239 = vmatprep.subr.bf16.mxu0 %v282_v3  ;;  %v35_v35 = vadd.f32 %v34_v27, %v32_v29  ;;  %v45_v36 = vadd.f32 %v44_v30, %v43_v32  ;;  %v252_v58 = vpack.c.bf16 %v70_v55, %v69_v54  ;;  %p259_p0 = scmp.ne.s32.totalorder %s161_s29, %s258_s1  ;;  %p264_p2 = scmp.lt.s32.totalorder %s258_s1, %s258_s1 }
   0xf   :  { %v36_v37 = vrot.slane %v35_v35, 4  ;;  %v46_v39 = vrot.slane %v45_v36, 4  ;;  %p265_p3 = por %p264_p2, %p263_p1 }
  0x10   :  { %241 = vmatpush3.bf16.msra.mxu0 %v240_v31 }
  0x11   :  { %242 = vmatprep.subr.bf16.mxu0 %v282_v3  ;;  %v37_v42 = vadd.f32 %v36_v37, %v35_v35  ;;  %v47_v43 = vadd.f32 %v46_v39, %v45_v36  ;;  %p266_p4 = pnand %p265_p3, %p259_p0 }
  0x13   :  { %v38_v44 = vrot.slane %v37_v42, 2  ;;  %v48_v46 = vrot.slane %v47_v43, 2 }
  0x14   :  { %244 = vmatpush3.bf16.msra.mxu0 %v243_v38 }
  0x15   :  { %245 = vmatprep.subr.bf16.mxu0 %v282_v3  ;;  %v39_v49 = vadd.f32 %v38_v44, %v37_v42  ;;  %v49_v50 = vadd.f32 %v48_v46, %v47_v43 }
  0x17   :  { %v40_v51 = vrot.slane %v39_v49, 1  ;;  %v50_v53 = vrot.slane %v49_v50, 1 }
  0x18   :  { %247 = vmatpush3.bf16.msra.mxu0 %v246_v45 }
  0x19   :  { %248 = vmatprep.subr.bf16.mxu0 %v282_v3  ;;  %v41_v56 = vadd.f32 %v40_v51, %v39_v49  ;;  %v51_v57 = vadd.f32 %v50_v53, %v49_v50 }
  0x1b   :  { %v53_v59 = vmul.f32 0.04, %v41_v56  ;;  %v54_v60 = vmul.f32 0.04, %v51_v57 }
  0x1c   :  { %250 = vmatpush3.bf16.msra.mxu0 %v249_v52 }
  0x1d   :  { %251 = vmatprep.subr.bf16.mxu0 %v282_v3  ;;  %v81_v61 = vsel %vm80_vm2, %v54_v60, %v53_v59 }
  0x20   :  { %253 = vmatpush3.bf16.msra.mxu0 %v252_v58 }
  0x23   :  { %228 = vmatmul.mubr.f32.vlgmr.msra.gmra.mrb[0].mxu0 %v81_v61 }
  0xf6   :  { %v149_v63 = vpop.f32.mrb[0].mxu0 }
  0xf7   :  { %v150_v0 = vadd.f32 %v168_v62, %v149_v63  ;;  %v229_v1 = vpop.f32.mrb[1].mxu0 }
  0xf9   :  { %153 = vst [vmem:[#allocation2] sm:$0x3] %v150_v0 }
  0xfa   :  { %269 = shalt.err (!%p266_p4)
}
  0xfb   :  { %s270_s5 = scalar_lea.hbm %s397_s3, 32 }
  0xfc   :  { %p271_p5 = scmp.ne.s32.totalorder %s397_s3, %s270_s5  ;;  %p274_p6 = scmp.lt.u32.totalorder %s270_s5, %s397_s3 }
  0xfe   :  { %p276_p7 = pnand %p274_p6, %p271_p5 }
 0x100   :  { %279 = shalt.err (!%p276_p7)
}
 0x101   :  { %163 = dma.vmem_to_hbm [thread:$0]  %s161_s29, 32, %s397_s3, [#allocation3]  }
 0x102   :  { %280 = dma.done.wait [#allocation3], 32  }
 0x103   :  { %281 = vsyncadd [#allocation3], 4294967264 }
 0x104   :  { %167 = vsyncpa [#allocation3], 1 }

</bundles_post_ra>
